<compile_context>
chip_gen: v7x
topology: tpu7x:2x2x1
jax: 0.10.0
libtpu: 0.0.40
codegen_flags: <defaults>
</compile_context>

<pallas_src>
import jax
import jax.numpy as jnp
from jax import lax
from jax.experimental import pallas as pl
from jax.experimental.pallas import tpu as pltpu

_SQRT2 = 1.4142135623730951


def _round_up(x, m):
    return (x + m - 1) // m * m


# --------------------------------------------------------------------------- #
# Pallas kernel: whole iMOE forward for one batch tile.
# --------------------------------------------------------------------------- #
def imoe_kernel(wb_ref, sim_ref, x_ref,
                wproj_ref, bproj_ref, w1_ref, b1_ref, w2_ref, b2_ref,
                wc3_ref, bc3_ref, wg_ref, bg_ref,
                expand_ref, pool_ref, fold_ref, out_ref):
    f32 = jnp.float32
    bf16 = jnp.bfloat16
    bt = sim_ref.shape[0]
    num_e = wg_ref.shape[-1]

    # sim_weight = similarity * w + b                               [Bt, 1]
    sim_weight = sim_ref[...] * wb_ref[0] + wb_ref[1]

    # --- Stage A: both projection branches as one block-diag matmul ---------
    # (Linear + folded eval-BN + ReLU; Dropout = identity)
    a = jnp.dot(x_ref[...], wproj_ref[...], preferred_element_type=f32)
    a = jnp.maximum(a + bproj_ref[...], 0.0)                    # [Bt, 512]
    half = a.shape[1] // 2                                       # 256 (aligned)
    sig = a[:, :half] * sim_weight                               # signal half
    temp = jnp.concatenate([sig, a[:, half:]], axis=1)          # [Bt, 512]

    # --- Stage B: expert first layers + classifier first layer (1 matmul) ---
    r = jnp.dot(temp.astype(bf16), w1_ref[...], preferred_element_type=f32)
    r = jnp.maximum(r + b1_ref[...], 0.0)                       # [Bt, E*256+64]

    # --- Stage C: expert second layers (block-diag) + classifier 2nd layer --
    z = jnp.dot(r.astype(bf16), w2_ref[...], preferred_element_type=f32)
    z = jnp.maximum(z + b2_ref[...], 0.0)                       # [Bt, E*De+64]
    e_de = z.shape[1] - 64
    assert e_de % num_e == 0, "expert lane block must divide evenly"
    de = e_de // num_e
    experts = z[:, :e_de]            # expert e lives in lanes [e*de, (e+1)*de)
    h2 = z[:, e_de:]                                            # [Bt, 64]

    # --- Stage D: pre_score, padded to 64 lanes (real score in lanes 0:2) ---
    score_pad = jnp.dot(h2.astype(bf16), wc3_ref[...],
                        preferred_element_type=f32) + bc3_ref[...]

    # --- Stage E: AvgPool1d(De) via MXU; MaxPool1d(De) via XLU reductions ---
    att_ave = jnp.dot(experts, pool_ref[...],
                      preferred_element_type=f32)               # [Bt, E]
    att_max = jnp.concatenate(
        [jnp.max(experts[:, e * de:(e + 1) * de], axis=-1, keepdims=True)
         for e in range(num_e)], axis=1)                        # [Bt, E]

    # senet on both pooled vectors in one batched pass (exact erf GELU)
    wg = wg_ref[...]                                            # [2, E, E] f32
    bg = bg_ref[...]                                            # [2, E]    f32
    att = jnp.concatenate([att_ave, att_max], axis=0)           # [2*Bt, E]
    g = jnp.dot(att, wg[0], preferred_element_type=f32) + bg[0:1]
    g = 0.5 * g * (1.0 + lax.erf(g / _SQRT2))
    g = jnp.dot(g, wg[1], preferred_element_type=f32) + bg[1:2]
    weights = jax.nn.sigmoid(g[:bt] + g[bt:])                   # [Bt, E]

    # --- Gate_out = sum_e weights[:, e] * expert_e (all on the MXU) ----------
    wexp = jnp.dot(weights, expand_ref[...],
                   preferred_element_type=f32)                  # [Bt, E*de]
    scaled = experts * wexp
    gate = jnp.dot(scaled, fold_ref[...],
                   preferred_element_type=f32)                  # [Bt, de]

    # --- lane-dense packed output: [gate | score_pad] = [Bt, de + 64] --------
    out_ref[...] = jnp.concatenate([gate, score_pad], axis=1)


# --------------------------------------------------------------------------- #
# Wrapper / glue
# --------------------------------------------------------------------------- #
def imoe_forward(signal_em, muti_em, similarity, kp, *, block_b=None):
    B, F = signal_em.shape
    E = kp["wg"].shape[-1]
    De = (kp["w2"].shape[1] - 64) // E
    assert De * E == kp["w2"].shape[1] - 64
    assert De == 64, "module's AvgPool1d/MaxPool1d(64) force ExpertOutDim == 64"
    out_w = De + 64                                             # 128 lane-dense

    # Concatenate branches in the wrapper (layout plumbing) and feed the MXU
    # in bf16 (halves HBM->VMEM bytes, single-pass MXU).
    x = jnp.concatenate([signal_em, muti_em], axis=1).astype(jnp.bfloat16)
    sim = similarity.reshape(B, 1).astype(jnp.float32)

    if block_b is None:
        if B <= 256:
            # Small batch: one tile, rounded to bf16 sublane packing (16 rows).
            block_b = _round_up(B, 16)
        elif B < 1024:
            # Fill the 256-row MXU M dim (v6e/v7x); >=2 grid steps for 2-TC v7x.
            block_b = 256
        else:
            block_b = 512
    Bp = _round_up(B, block_b)
    if Bp != B:
        x = jnp.pad(x, ((0, Bp - B), (0, 0)))
        sim = jnp.pad(sim, ((0, Bp - B), (0, 0)))

    def batch_spec(width):
        return pl.BlockSpec((block_b, width), lambda i: (i, 0))

    def resident(arr):
        # Whole array, same block every grid step -> single-buffered (no point
        # double-buffering a never-refetched weight; frees ~2.5 MiB VMEM).
        return pl.BlockSpec(arr.shape, lambda i, _n=arr.ndim: (0,) * _n,
                            pipeline_mode=pl.Buffered(1))

    out = pl.pallas_call(
        imoe_kernel,
        out_shape=jax.ShapeDtypeStruct((Bp, out_w), jnp.float32),
        grid=(Bp // block_b,),
        in_specs=[
            pl.BlockSpec(memory_space=pltpu.MemorySpace.SMEM),   # wb scalars
            batch_spec(1),                                       # similarity
            batch_spec(2 * F),                                   # [signal|muti]
            resident(kp["wproj"]), resident(kp["bproj"]),
            resident(kp["w1"]), resident(kp["b1"]),
            resident(kp["w2"]), resident(kp["b2"]),
            resident(kp["wc3"]), resident(kp["bc3"]),
            resident(kp["wg"]), resident(kp["bg"]),
            resident(kp["expand"]), resident(kp["pool"]), resident(kp["fold"]),
        ],
        out_specs=pl.BlockSpec((block_b, out_w), lambda i: (i, 0)),
        compiler_params=pltpu.CompilerParams(
            dimension_semantics=("parallel",),
            # Headroom even on v7x's 64 MiB per-TC VMEM; activations at
            # block_b=512 are only a few MiB, weights ~2.5 MiB single-buffered.
            vmem_limit_bytes=48 * 1024 * 1024),
    )(kp["wb"], sim, x,
      kp["wproj"], kp["bproj"], kp["w1"], kp["b1"],
      kp["w2"], kp["b2"], kp["wc3"], kp["bc3"], kp["wg"], kp["bg"],
      kp["expand"], kp["pool"], kp["fold"])

    gate_out = out[:B, :De]
    pre_score = out[:B, De:De + 2]
    return gate_out, pre_score


# --------------------------------------------------------------------------- #
# Parameter init (shapes from iMOE.__init__) + fused-weight packing
# --------------------------------------------------------------------------- #
def _uniform(key, shape, scale):
    return jax.random.uniform(key, shape, jnp.float32, -scale, scale)


def _linear(key, fan_in, fan_out):
    k1, k2 = jax.random.split(key)
    s = 1.0 / (fan_in ** 0.5)
    return _uniform(k1, (fan_in, fan_out), s), _uniform(k2, (fan_out,), s)


def _linear_bn(key, fan_in, fan_out):
    # Linear followed by eval-mode BatchNorm1d (mean=0, var=1) folded exactly.
    k1, k2, k3, k4 = jax.random.split(key, 4)
    s = 1.0 / (fan_in ** 0.5)
    w = _uniform(k1, (fan_in, fan_out), s)
    b = _uniform(k2, (fan_out,), s)
    gamma = jax.random.uniform(k3, (fan_out,), jnp.float32, 0.5, 1.5)
    beta = _uniform(k4, (fan_out,), 0.1)
    scale = gamma / jnp.sqrt(jnp.float32(1.0 + 1e-5))
    return w * scale[None, :], b * scale + beta


def init_params(key, experts_num, feature_dim, expert_out_dim):
    keys = jax.random.split(key, 10)
    p = {}
    p["wb"] = jax.random.uniform(keys[0], (2,), jnp.float32)      # (w, b)
    p["ws"], p["bs"] = _linear_bn(keys[1], feature_dim, 256)
    p["wm"], p["bm"] = _linear_bn(keys[2], feature_dim, 256)
    p["wc1"], p["bc1"] = _linear_bn(keys[3], feature_dim * 2, 64)
    p["wc2"], p["bc2"] = _linear_bn(keys[4], 64, 64)
    p["wc3"], p["bc3"] = _linear(keys[5], 64, 2)
    e1 = [_linear(k, feature_dim * 2, 256)
          for k in jax.random.split(keys[6], experts_num)]
    e2 = [_linear(k, 256, expert_out_dim)
          for k in jax.random.split(keys[7], experts_num)]
    p["we1"] = jnp.stack([w for w, _ in e1])
    p["be1"] = jnp.stack([b for _, b in e1])
    p["we2"] = jnp.stack([w for w, _ in e2])
    p["be2"] = jnp.stack([b for _, b in e2])
    p["wg1"], p["bg1"] = _linear(keys[8], experts_num, experts_num)
    p["wg2"], p["bg2"] = _linear(keys[9], experts_num, experts_num)
    return p


def pack_params(p):
    """Build the fused / block-diagonal bf16 weights the kernel consumes."""
    bf16 = jnp.bfloat16
    E, H, Hi = p["we1"].shape            # E, 2F(=512), 256
    De = p["we2"].shape[2]
    F = p["ws"].shape[0]

    # Stage A: blockdiag(ws, wm) : [2F, 512]
    wproj = jnp.zeros((2 * F, 512), jnp.float32)
    wproj = wproj.at[:F, :256].set(p["ws"]).at[F:, 256:].set(p["wm"])
    bproj = jnp.concatenate([p["bs"], p["bm"]])[None, :]

    # Stage B: [we1_0 | ... | we1_{E-1} | wc1] : [2F, E*256 + 64]
    we1_flat = jnp.transpose(p["we1"], (1, 0, 2)).reshape(H, E * Hi)
    w1 = jnp.concatenate([we1_flat, p["wc1"]], axis=1)
    b1 = jnp.concatenate([p["be1"].reshape(-1), p["bc1"]])[None, :]

    # Stage C: blockdiag(we2_0, ..., we2_{E-1}, wc2) : [E*256 + 64, E*De + 64]
    w2 = jnp.zeros((E * Hi + 64, E * De + 64), jnp.float32)
    for e in range(E):
        w2 = w2.at[e * Hi:(e + 1) * Hi, e * De:(e + 1) * De].set(p["we2"][e])
    w2 = w2.at[E * Hi:, E * De:].set(p["wc2"])
    b2 = jnp.concatenate([p["be2"].reshape(-1), p["bc2"]])[None, :]

    # Stage D: wc3 padded to 64 output lanes (score occupies lanes 0:2)
    wc3p = jnp.zeros((64, 64), jnp.float32).at[:, :2].set(p["wc3"])
    bc3p = jnp.zeros((64,), jnp.float32).at[:2].set(p["bc3"])[None, :]

    # Epilogue constants (hoisted out of the kernel body):
    #   pool   [E*De, E]  : mean-pooling per expert block (1/De entries)
    #   expand [E, E*De]  : broadcast weight e over its De output lanes
    #   fold   [E*De, De] : sum the E weighted expert blocks into one
    eye_e = jnp.eye(E, dtype=jnp.float32)
    pool = jnp.kron(eye_e, jnp.full((De, 1), 1.0 / De, jnp.float32))
    expand = jnp.kron(eye_e, jnp.ones((1, De), jnp.float32))
    fold = jnp.kron(jnp.ones((E, 1), jnp.float32), jnp.eye(De, dtype=jnp.float32))

    return dict(
        wb=p["wb"],
        wproj=wproj.astype(bf16), bproj=bproj,
        w1=w1.astype(bf16), b1=b1,
        w2=w2.astype(bf16), b2=b2,
        wc3=wc3p.astype(bf16), bc3=bc3p,
        wg=jnp.stack([p["wg1"], p["wg2"]]),     # senet stays f32 (tiny K=E)
        bg=jnp.stack([p["bg1"], p["bg2"]]),
        expand=expand, pool=pool, fold=fold,
    )


# --------------------------------------------------------------------------- #
# Pure-JAX f32 reference (faithful to the PyTorch module, eval mode)
# --------------------------------------------------------------------------- #
def imoe_reference(signal_em, muti_em, similarity, p):
    sim_weight = similarity[:, None] * p["wb"][0] + p["wb"][1]
    sig = jax.nn.relu(signal_em @ p["ws"] + p["bs"])
    mut = jax.nn.relu(muti_em @ p["wm"] + p["bm"])
    sig = sim_weight * sig
    temp = jnp.concatenate([sig, mut], axis=1)
    h = jax.nn.relu(temp @ p["wc1"] + p["bc1"])
    h = jax.nn.relu(h @ p["wc2"] + p["bc2"])
    pre_score = h @ p["wc3"] + p["bc3"]
    outs = []
    for e in range(p["we1"].shape[0]):
        he = jax.nn.relu(temp @ p["we1"][e] + p["be1"][e])
        outs.append(jax.nn.relu(he @ p["we2"][e] + p["be2"][e]))
    experts = jnp.stack(outs, axis=1)                           # [B, E, De]
    att_ave = experts.mean(-1)
    att_max = experts.max(-1)

    def senet(x):
        h1 = jax.nn.gelu(x @ p["wg1"] + p["bg1"], approximate=False)
        return h1 @ p["wg2"] + p["bg2"]

    w = jax.nn.sigmoid(senet(att_ave) + senet(att_max))
    gate = jnp.einsum("bed,be->bd", experts, w)
    return gate, pre_score


# --------------------------------------------------------------------------- #
if __name__ == "__main__":
    experts_num = 4
    feature_dim = 256    # forced: two 256-d projections concat -> Linear(2F, .)
    expert_out_dim = 64  # forced: AvgPool1d/MaxPool1d(kernel=64) -> senet(E)
    batch = 20           # small; block_b=16 exercises a 2-step grid + padding

    key = jax.random.PRNGKey(0)
    pkey, k_sig, k_mut, k_sim = jax.random.split(key, 4)
    params = init_params(pkey, experts_num, feature_dim, expert_out_dim)
    kparams = pack_params(params)

    signal_em = jax.random.normal(k_sig, (batch, feature_dim), jnp.float32)
    muti_em = jax.random.normal(k_mut, (batch, feature_dim), jnp.float32)
    similarity = jax.random.uniform(k_sim, (batch,), jnp.float32)

    gate_out, pre_score = jax.block_until_ready(
        imoe_forward(signal_em, muti_em, similarity, kparams, block_b=16))

    assert gate_out.shape == (batch, expert_out_dim)
    assert pre_score.shape == (batch, 2)

    ref_gate, ref_score = imoe_reference(signal_em, muti_em, similarity, params)
    # bf16 weights/activations on the MXU (f32 accumulation) vs. pure-f32
    # reference: ~1e-2 error budget; 5e-2 still catches any structural bug.
    assert jnp.allclose(gate_out, ref_gate, atol=5e-2, rtol=5e-2), \
        float(jnp.max(jnp.abs(gate_out - ref_gate)))
    assert jnp.allclose(pre_score, ref_score, atol=5e-2, rtol=5e-2), \
        float(jnp.max(jnp.abs(pre_score - ref_score)))

    print("KERNEL_OK")
</pallas_src>

<mosaic_0001>
module attributes {stable_mosaic.version = 11 : i64} {
  func.func @imoe_kernel(%arg0: i32, %arg1: memref<2xf32, #tpu.memory_space<smem>>, %arg2: memref<16x1xf32, #tpu.memory_space<vmem>>, %arg3: memref<16x512xbf16, #tpu.memory_space<vmem>>, %arg4: memref<512x512xbf16, #tpu.memory_space<vmem>>, %arg5: memref<1x512xf32, #tpu.memory_space<vmem>>, %arg6: memref<512x1088xbf16, #tpu.memory_space<vmem>>, %arg7: memref<1x1088xf32, #tpu.memory_space<vmem>>, %arg8: memref<1088x320xbf16, #tpu.memory_space<vmem>>, %arg9: memref<1x320xf32, #tpu.memory_space<vmem>>, %arg10: memref<64x64xbf16, #tpu.memory_space<vmem>>, %arg11: memref<1x64xf32, #tpu.memory_space<vmem>>, %arg12: memref<2x4x4xf32, #tpu.memory_space<vmem>>, %arg13: memref<2x4xf32, #tpu.memory_space<vmem>>, %arg14: memref<4x256xf32, #tpu.memory_space<vmem>>, %arg15: memref<256x4xf32, #tpu.memory_space<vmem>>, %arg16: memref<256x64xf32, #tpu.memory_space<vmem>>, %arg17: memref<16x128xf32, #tpu.memory_space<vmem>>) attributes {dimension_semantics = [#tpu.dimension_semantics<parallel>], iteration_bounds = array<i64: 2>, scalar_prefetch = 0 : i64, scratch_operands = 0 : i64, tpu.core_type = #tpu.core_type<tc>, window_params = [{transform_indices = @transform_0, window_bounds = array<i64: 2>}, {transform_indices = @transform_1, window_bounds = array<i64: 16, 1>}, {transform_indices = @transform_2, window_bounds = array<i64: 16, 512>}, {pipeline_mode = #tpu.pipeline_mode<synchronous>, transform_indices = @transform_3, window_bounds = array<i64: 512, 512>}, {pipeline_mode = #tpu.pipeline_mode<synchronous>, transform_indices = @transform_4, window_bounds = array<i64: 1, 512>}, {pipeline_mode = #tpu.pipeline_mode<synchronous>, transform_indices = @transform_5, window_bounds = array<i64: 512, 1088>}, {pipeline_mode = #tpu.pipeline_mode<synchronous>, transform_indices = @transform_6, window_bounds = array<i64: 1, 1088>}, {pipeline_mode = #tpu.pipeline_mode<synchronous>, transform_indices = @transform_7, window_bounds = array<i64: 1088, 320>}, {pipeline_mode = #tpu.pipeline_mode<synchronous>, transform_indices = @transform_8, window_bounds = array<i64: 1, 320>}, {pipeline_mode = #tpu.pipeline_mode<synchronous>, transform_indices = @transform_9, window_bounds = array<i64: 64, 64>}, {pipeline_mode = #tpu.pipeline_mode<synchronous>, transform_indices = @transform_10, window_bounds = array<i64: 1, 64>}, {pipeline_mode = #tpu.pipeline_mode<synchronous>, transform_indices = @transform_11, window_bounds = array<i64: 2, 4, 4>}, {pipeline_mode = #tpu.pipeline_mode<synchronous>, transform_indices = @transform_12, window_bounds = array<i64: 2, 4>}, {pipeline_mode = #tpu.pipeline_mode<synchronous>, transform_indices = @transform_13, window_bounds = array<i64: 4, 256>}, {pipeline_mode = #tpu.pipeline_mode<synchronous>, transform_indices = @transform_14, window_bounds = array<i64: 256, 4>}, {pipeline_mode = #tpu.pipeline_mode<synchronous>, transform_indices = @transform_15, window_bounds = array<i64: 256, 64>}, {transform_indices = @transform_16, window_bounds = array<i64: 16, 128>}]} {
    %c0 = arith.constant 0 : index
    %c0_0 = arith.constant 0 : index
    %0 = vector.load %arg2[%c0, %c0_0] : memref<16x1xf32, #tpu.memory_space<vmem>>, vector<16x1xf32>
    %c0_1 = arith.constant 0 : index
    %1 = memref.load %arg1[%c0_1] : memref<2xf32, #tpu.memory_space<smem>>
    %2 = vector.broadcast %1 : f32 to vector<16x1xf32>
    %3 = arith.mulf %0, %2 : vector<16x1xf32>
    %c1 = arith.constant 1 : index
    %4 = memref.load %arg1[%c1] : memref<2xf32, #tpu.memory_space<smem>>
    %5 = vector.broadcast %4 : f32 to vector<16x1xf32>
    %6 = arith.addf %3, %5 : vector<16x1xf32>
    %c0_2 = arith.constant 0 : index
    %c0_3 = arith.constant 0 : index
    %7 = vector.load %arg3[%c0_2, %c0_3] : memref<16x512xbf16, #tpu.memory_space<vmem>>, vector<16x512xbf16>
    %c0_4 = arith.constant 0 : index
    %c0_5 = arith.constant 0 : index
    %8 = vector.load %arg4[%c0_4, %c0_5] : memref<512x512xbf16, #tpu.memory_space<vmem>>, vector<512x512xbf16>
    %cst = arith.constant dense<0.000000e+00> : vector<16x512xf32>
    %9 = tpu.matmul %7, %8, %cst {dimension_numbers = #tpu.dot_dimension_numbers<[1], [0], [0], [1], [0, 0, 1, 1], [], []>} : vector<16x512xbf16>, vector<512x512xbf16>, vector<16x512xf32> -> vector<16x512xf32>
    %c0_6 = arith.constant 0 : index
    %c0_7 = arith.constant 0 : index
    %10 = vector.load %arg5[%c0_6, %c0_7] : memref<1x512xf32, #tpu.memory_space<vmem>>, vector<1x512xf32>
    %11 = vector.broadcast %10 : vector<1x512xf32> to vector<16x512xf32>
    %12 = arith.addf %9, %11 : vector<16x512xf32>
    %cst_8 = arith.constant 0.000000e+00 : f32
    %13 = vector.broadcast %cst_8 : f32 to vector<16x512xf32>
    %14 = arith.maximumf %12, %13 : vector<16x512xf32>
    %15 = vector.extract_strided_slice %14 {offsets = [0, 0], sizes = [16, 256], strides = [1, 1]} : vector<16x512xf32> to vector<16x256xf32>
    %16 = vector.broadcast %6 : vector<16x1xf32> to vector<16x256xf32>
    %17 = arith.mulf %15, %16 : vector<16x256xf32>
    %18 = vector.extract_strided_slice %14 {offsets = [0, 256], sizes = [16, 256], strides = [1, 1]} : vector<16x512xf32> to vector<16x256xf32>
    %19 = tpu.concatenate %17, %18 in 1 : vector<16x256xf32>, vector<16x256xf32> -> vector<16x512xf32>
    %20 = arith.truncf %19 : vector<16x512xf32> to vector<16x512xbf16>
    %c0_9 = arith.constant 0 : index
    %c0_10 = arith.constant 0 : index
    %21 = vector.load %arg6[%c0_9, %c0_10] : memref<512x1088xbf16, #tpu.memory_space<vmem>>, vector<512x1088xbf16>
    %cst_11 = arith.constant dense<0.000000e+00> : vector<16x1088xf32>
    %22 = tpu.matmul %20, %21, %cst_11 {dimension_numbers = #tpu.dot_dimension_numbers<[1], [0], [0], [1], [0, 0, 1, 1], [], []>} : vector<16x512xbf16>, vector<512x1088xbf16>, vector<16x1088xf32> -> vector<16x1088xf32>
    %c0_12 = arith.constant 0 : index
    %c0_13 = arith.constant 0 : index
    %23 = vector.load %arg7[%c0_12, %c0_13] : memref<1x1088xf32, #tpu.memory_space<vmem>>, vector<1x1088xf32>
    %24 = vector.broadcast %23 : vector<1x1088xf32> to vector<16x1088xf32>
    %25 = arith.addf %22, %24 : vector<16x1088xf32>
    %cst_14 = arith.constant 0.000000e+00 : f32
    %26 = vector.broadcast %cst_14 : f32 to vector<16x1088xf32>
    %27 = arith.maximumf %25, %26 : vector<16x1088xf32>
    %28 = arith.truncf %27 : vector<16x1088xf32> to vector<16x1088xbf16>
    %c0_15 = arith.constant 0 : index
    %c0_16 = arith.constant 0 : index
    %29 = vector.load %arg8[%c0_15, %c0_16] : memref<1088x320xbf16, #tpu.memory_space<vmem>>, vector<1088x320xbf16>
    %cst_17 = arith.constant dense<0.000000e+00> : vector<16x320xf32>
    %30 = tpu.matmul %28, %29, %cst_17 {dimension_numbers = #tpu.dot_dimension_numbers<[1], [0], [0], [1], [0, 0, 1, 1], [], []>} : vector<16x1088xbf16>, vector<1088x320xbf16>, vector<16x320xf32> -> vector<16x320xf32>
    %c0_18 = arith.constant 0 : index
    %c0_19 = arith.constant 0 : index
    %31 = vector.load %arg9[%c0_18, %c0_19] : memref<1x320xf32, #tpu.memory_space<vmem>>, vector<1x320xf32>
    %32 = vector.broadcast %31 : vector<1x320xf32> to vector<16x320xf32>
    %33 = arith.addf %30, %32 : vector<16x320xf32>
    %cst_20 = arith.constant 0.000000e+00 : f32
    %34 = vector.broadcast %cst_20 : f32 to vector<16x320xf32>
    %35 = arith.maximumf %33, %34 : vector<16x320xf32>
    %36 = vector.extract_strided_slice %35 {offsets = [0, 0], sizes = [16, 256], strides = [1, 1]} : vector<16x320xf32> to vector<16x256xf32>
    %37 = vector.extract_strided_slice %35 {offsets = [0, 256], sizes = [16, 64], strides = [1, 1]} : vector<16x320xf32> to vector<16x64xf32>
    %38 = arith.truncf %37 : vector<16x64xf32> to vector<16x64xbf16>
    %c0_21 = arith.constant 0 : index
    %c0_22 = arith.constant 0 : index
    %39 = vector.load %arg10[%c0_21, %c0_22] : memref<64x64xbf16, #tpu.memory_space<vmem>>, vector<64x64xbf16>
    %cst_23 = arith.constant dense<0.000000e+00> : vector<16x64xf32>
    %40 = tpu.matmul %38, %39, %cst_23 {dimension_numbers = #tpu.dot_dimension_numbers<[1], [0], [0], [1], [0, 0, 1, 1], [], []>} : vector<16x64xbf16>, vector<64x64xbf16>, vector<16x64xf32> -> vector<16x64xf32>
    %c0_24 = arith.constant 0 : index
    %c0_25 = arith.constant 0 : index
    %41 = vector.load %arg11[%c0_24, %c0_25] : memref<1x64xf32, #tpu.memory_space<vmem>>, vector<1x64xf32>
    %42 = vector.broadcast %41 : vector<1x64xf32> to vector<16x64xf32>
    %43 = arith.addf %40, %42 : vector<16x64xf32>
    %c0_26 = arith.constant 0 : index
    %c0_27 = arith.constant 0 : index
    %44 = vector.load %arg15[%c0_26, %c0_27] : memref<256x4xf32, #tpu.memory_space<vmem>>, vector<256x4xf32>
    %cst_28 = arith.constant dense<0.000000e+00> : vector<16x4xf32>
    %45 = tpu.matmul %36, %44, %cst_28 {dimension_numbers = #tpu.dot_dimension_numbers<[1], [0], [0], [1], [0, 0, 1, 1], [], []>} : vector<16x256xf32>, vector<256x4xf32>, vector<16x4xf32> -> vector<16x4xf32>
    %46 = vector.extract_strided_slice %36 {offsets = [0, 0], sizes = [16, 64], strides = [1, 1]} : vector<16x256xf32> to vector<16x64xf32>
    %cst_29 = arith.constant dense<0xFF800000> : vector<16xf32>
    %47 = vector.multi_reduction <maximumf>, %46, %cst_29 [1] : vector<16x64xf32> to vector<16xf32>
    %48 = vector.shape_cast %47 : vector<16xf32> to vector<16x1xf32>
    %49 = vector.extract_strided_slice %36 {offsets = [0, 64], sizes = [16, 64], strides = [1, 1]} : vector<16x256xf32> to vector<16x64xf32>
    %cst_30 = arith.constant dense<0xFF800000> : vector<16xf32>
    %50 = vector.multi_reduction <maximumf>, %49, %cst_30 [1] : vector<16x64xf32> to vector<16xf32>
    %51 = vector.shape_cast %50 : vector<16xf32> to vector<16x1xf32>
    %52 = vector.extract_strided_slice %36 {offsets = [0, 128], sizes = [16, 64], strides = [1, 1]} : vector<16x256xf32> to vector<16x64xf32>
    %cst_31 = arith.constant dense<0xFF800000> : vector<16xf32>
    %53 = vector.multi_reduction <maximumf>, %52, %cst_31 [1] : vector<16x64xf32> to vector<16xf32>
    %54 = vector.shape_cast %53 : vector<16xf32> to vector<16x1xf32>
    %55 = vector.extract_strided_slice %36 {offsets = [0, 192], sizes = [16, 64], strides = [1, 1]} : vector<16x256xf32> to vector<16x64xf32>
    %cst_32 = arith.constant dense<0xFF800000> : vector<16xf32>
    %56 = vector.multi_reduction <maximumf>, %55, %cst_32 [1] : vector<16x64xf32> to vector<16xf32>
    %57 = vector.shape_cast %56 : vector<16xf32> to vector<16x1xf32>
    %58 = tpu.concatenate %48, %51, %54, %57 in 1 : vector<16x1xf32>, vector<16x1xf32>, vector<16x1xf32>, vector<16x1xf32> -> vector<16x4xf32>
    %c0_33 = arith.constant 0 : index
    %c0_34 = arith.constant 0 : index
    %c0_35 = arith.constant 0 : index
    %59 = vector.load %arg12[%c0_33, %c0_34, %c0_35] : memref<2x4x4xf32, #tpu.memory_space<vmem>>, vector<2x4x4xf32>
    %c0_36 = arith.constant 0 : index
    %c0_37 = arith.constant 0 : index
    %60 = vector.load %arg13[%c0_36, %c0_37] : memref<2x4xf32, #tpu.memory_space<vmem>>, vector<2x4xf32>
    %61 = tpu.concatenate %45, %58 in 0 : vector<16x4xf32>, vector<16x4xf32> -> vector<32x4xf32>
    %62 = vector.extract_strided_slice %59 {offsets = [0, 0, 0], sizes = [1, 4, 4], strides = [1, 1, 1]} : vector<2x4x4xf32> to vector<1x4x4xf32>
    %63 = vector.shape_cast %62 : vector<1x4x4xf32> to vector<4x4xf32>
    %cst_38 = arith.constant dense<0.000000e+00> : vector<32x4xf32>
    %64 = tpu.matmul %61, %63, %cst_38 {dimension_numbers = #tpu.dot_dimension_numbers<[1], [0], [0], [1], [0, 0, 1, 1], [], []>} : vector<32x4xf32>, vector<4x4xf32>, vector<32x4xf32> -> vector<32x4xf32>
    %65 = vector.extract_strided_slice %60 {offsets = [0, 0], sizes = [1, 4], strides = [1, 1]} : vector<2x4xf32> to vector<1x4xf32>
    %66 = vector.broadcast %65 : vector<1x4xf32> to vector<32x4xf32>
    %67 = arith.addf %64, %66 : vector<32x4xf32>
    %cst_39 = arith.constant 5.000000e-01 : f32
    %68 = vector.broadcast %cst_39 : f32 to vector<32x4xf32>
    %69 = arith.mulf %68, %67 : vector<32x4xf32>
    %cst_40 = arith.constant 1.41421354 : f32
    %70 = vector.broadcast %cst_40 : f32 to vector<32x4xf32>
    %71 = arith.divf %67, %70 : vector<32x4xf32>
    %72 = math.erf %71 : vector<32x4xf32>
    %cst_41 = arith.constant 1.000000e+00 : f32
    %73 = vector.broadcast %cst_41 : f32 to vector<32x4xf32>
    %74 = arith.addf %73, %72 : vector<32x4xf32>
    %75 = arith.mulf %69, %74 : vector<32x4xf32>
    %76 = vector.extract_strided_slice %59 {offsets = [1, 0, 0], sizes = [1, 4, 4], strides = [1, 1, 1]} : vector<2x4x4xf32> to vector<1x4x4xf32>
    %77 = vector.shape_cast %76 : vector<1x4x4xf32> to vector<4x4xf32>
    %cst_42 = arith.constant dense<0.000000e+00> : vector<32x4xf32>
    %78 = tpu.matmul %75, %77, %cst_42 {dimension_numbers = #tpu.dot_dimension_numbers<[1], [0], [0], [1], [0, 0, 1, 1], [], []>} : vector<32x4xf32>, vector<4x4xf32>, vector<32x4xf32> -> vector<32x4xf32>
    %79 = vector.extract_strided_slice %60 {offsets = [1, 0], sizes = [1, 4], strides = [1, 1]} : vector<2x4xf32> to vector<1x4xf32>
    %80 = vector.broadcast %79 : vector<1x4xf32> to vector<32x4xf32>
    %81 = arith.addf %78, %80 : vector<32x4xf32>
    %82 = vector.extract_strided_slice %81 {offsets = [0, 0], sizes = [16, 4], strides = [1, 1]} : vector<32x4xf32> to vector<16x4xf32>
    %83 = vector.extract_strided_slice %81 {offsets = [16, 0], sizes = [16, 4], strides = [1, 1]} : vector<32x4xf32> to vector<16x4xf32>
    %84 = arith.addf %82, %83 : vector<16x4xf32>
    %85 = arith.negf %84 : vector<16x4xf32>
    %86 = math.exp %85 : vector<16x4xf32>
    %cst_43 = arith.constant 1.000000e+00 : f32
    %87 = vector.broadcast %cst_43 : f32 to vector<16x4xf32>
    %88 = arith.addf %87, %86 : vector<16x4xf32>
    %89 = arith.divf %87, %88 : vector<16x4xf32>
    %c0_44 = arith.constant 0 : index
    %c0_45 = arith.constant 0 : index
    %90 = vector.load %arg14[%c0_44, %c0_45] : memref<4x256xf32, #tpu.memory_space<vmem>>, vector<4x256xf32>
    %cst_46 = arith.constant dense<0.000000e+00> : vector<16x256xf32>
    %91 = tpu.matmul %89, %90, %cst_46 {dimension_numbers = #tpu.dot_dimension_numbers<[1], [0], [0], [1], [0, 0, 1, 1], [], []>} : vector<16x4xf32>, vector<4x256xf32>, vector<16x256xf32> -> vector<16x256xf32>
    %92 = arith.mulf %36, %91 : vector<16x256xf32>
    %c0_47 = arith.constant 0 : index
    %c0_48 = arith.constant 0 : index
    %93 = vector.load %arg16[%c0_47, %c0_48] : memref<256x64xf32, #tpu.memory_space<vmem>>, vector<256x64xf32>
    %cst_49 = arith.constant dense<0.000000e+00> : vector<16x64xf32>
    %94 = tpu.matmul %92, %93, %cst_49 {dimension_numbers = #tpu.dot_dimension_numbers<[1], [0], [0], [1], [0, 0, 1, 1], [], []>} : vector<16x256xf32>, vector<256x64xf32>, vector<16x64xf32> -> vector<16x64xf32>
    %95 = tpu.concatenate %94, %43 in 1 : vector<16x64xf32>, vector<16x64xf32> -> vector<16x128xf32>
    %c0_50 = arith.constant 0 : index
    %c0_51 = arith.constant 0 : index
    %96 = vector.load %arg17[%c0_50, %c0_51] : memref<16x128xf32, #tpu.memory_space<vmem>>, vector<16x128xf32>
    tpu.vector_store %arg17[%c0_50, %c0_51], %95 {strides = array<i32>} : memref<16x128xf32, #tpu.memory_space<vmem>>, vector<16x128xf32>,
    return
  }
  func.func @transform_0(%arg0: i32) -> i32 {
    %c0_i32 = arith.constant 0 : i32
    %c0_i32_0 = arith.constant 0 : i32
    return %c0_i32 : i32
  }
  func.func @transform_1(%arg0: i32) -> (i32, i32) {
    %c0_i32 = arith.constant 0 : i32
    %c0_i32_0 = arith.constant 0 : i32
    return %arg0, %c0_i32 : i32, i32
  }
  func.func @transform_2(%arg0: i32) -> (i32, i32) {
    %c0_i32 = arith.constant 0 : i32
    %c0_i32_0 = arith.constant 0 : i32
    return %arg0, %c0_i32 : i32, i32
  }
  func.func @transform_3(%arg0: i32) -> (i32, i32) {
    %c0_i32 = arith.constant 0 : i32
    %c0_i32_0 = arith.constant 0 : i32
    %c0_i32_1 = arith.constant 0 : i32
    return %c0_i32, %c0_i32_0 : i32, i32
  }
  func.func @transform_4(%arg0: i32) -> (i32, i32) {
    %c0_i32 = arith.constant 0 : i32
    %c0_i32_0 = arith.constant 0 : i32
    %c0_i32_1 = arith.constant 0 : i32
    return %c0_i32, %c0_i32_0 : i32, i32
  }
  func.func @transform_5(%arg0: i32) -> (i32, i32) {
    %c0_i32 = arith.constant 0 : i32
    %c0_i32_0 = arith.constant 0 : i32
    %c0_i32_1 = arith.constant 0 : i32
    return %c0_i32, %c0_i32_0 : i32, i32
  }
  func.func @transform_6(%arg0: i32) -> (i32, i32) {
    %c0_i32 = arith.constant 0 : i32
    %c0_i32_0 = arith.constant 0 : i32
    %c0_i32_1 = arith.constant 0 : i32
    return %c0_i32, %c0_i32_0 : i32, i32
  }
  func.func @transform_7(%arg0: i32) -> (i32, i32) {
    %c0_i32 = arith.constant 0 : i32
    %c0_i32_0 = arith.constant 0 : i32
    %c0_i32_1 = arith.constant 0 : i32
    return %c0_i32, %c0_i32_0 : i32, i32
  }
  func.func @transform_8(%arg0: i32) -> (i32, i32) {
    %c0_i32 = arith.constant 0 : i32
    %c0_i32_0 = arith.constant 0 : i32
    %c0_i32_1 = arith.constant 0 : i32
    return %c0_i32, %c0_i32_0 : i32, i32
  }
  func.func @transform_9(%arg0: i32) -> (i32, i32) {
    %c0_i32 = arith.constant 0 : i32
    %c0_i32_0 = arith.constant 0 : i32
    %c0_i32_1 = arith.constant 0 : i32
    return %c0_i32, %c0_i32_0 : i32, i32
  }
  func.func @transform_10(%arg0: i32) -> (i32, i32) {
    %c0_i32 = arith.constant 0 : i32
    %c0_i32_0 = arith.constant 0 : i32
    %c0_i32_1 = arith.constant 0 : i32
    return %c0_i32, %c0_i32_0 : i32, i32
  }
  func.func @transform_11(%arg0: i32) -> (i32, i32, i32) {
    %c0_i32 = arith.constant 0 : i32
    %c0_i32_0 = arith.constant 0 : i32
    %c0_i32_1 = arith.constant 0 : i32
    %c0_i32_2 = arith.constant 0 : i32
    return %c0_i32, %c0_i32_0, %c0_i32_1 : i32, i32, i32
  }
  func.func @transform_12(%arg0: i32) -> (i32, i32) {
    %c0_i32 = arith.constant 0 : i32
    %c0_i32_0 = arith.constant 0 : i32
    %c0_i32_1 = arith.constant 0 : i32
    return %c0_i32, %c0_i32_0 : i32, i32
  }
  func.func @transform_13(%arg0: i32) -> (i32, i32) {
    %c0_i32 = arith.constant 0 : i32
    %c0_i32_0 = arith.constant 0 : i32
    %c0_i32_1 = arith.constant 0 : i32
    return %c0_i32, %c0_i32_0 : i32, i32
  }
  func.func @transform_14(%arg0: i32) -> (i32, i32) {
    %c0_i32 = arith.constant 0 : i32
    %c0_i32_0 = arith.constant 0 : i32
    %c0_i32_1 = arith.constant 0 : i32
    return %c0_i32, %c0_i32_0 : i32, i32
  }
  func.func @transform_15(%arg0: i32) -> (i32, i32) {
    %c0_i32 = arith.constant 0 : i32
    %c0_i32_0 = arith.constant 0 : i32
    %c0_i32_1 = arith.constant 0 : i32
    return %c0_i32, %c0_i32_0 : i32, i32
  }
  func.func @transform_16(%arg0: i32) -> (i32, i32) {
    %c0_i32 = arith.constant 0 : i32
    %c0_i32_0 = arith.constant 0 : i32
    return %arg0, %c0_i32 : i32, i32
  }
}

</mosaic_0001>

<bundles_post_ra>
// kernel: tpu_custom_call.1
= control target key start
LH: loop header
LB: loop body
LE: loop exit
PB: predicated region body
PF: predicated region fallthrough
CT: control target
= control target key end

     0   :  { %s11095_s0 = inlined_call_operand.vmem [shape: f32[2], index: 0, kind: input, shape index: {}]   ;;  %s11096_s1 = inlined_call_operand.vmem [shape: f32[32,1], index: 1, kind: input, shape index: {}]   ;;  %s11097_s2 = inlined_call_operand.vmem [shape: bf16[32,512], index: 2, kind: input, shape index: {}]   ;;  %s11098_s3 = inlined_call_operand.vmem [shape: bf16[512,512], index: 3, kind: input, shape index: {}]   ;;  %s11099_s4 = inlined_call_operand.vmem [shape: f32[1,512], index: 4, kind: input, shape index: {}]   ;;  %s11100_s5 = inlined_call_operand.vmem [shape: bf16[512,1088], index: 5, kind: input, shape index: {}]   ;;  %s11101_s6 = inlined_call_operand.vmem [shape: f32[1,1088], index: 6, kind: input, shape index: {}]   ;;  %s11102_s7 = inlined_call_operand.vmem [shape: bf16[1088,320], index: 7, kind: input, shape index: {}]   ;;  %s11103_s8 = inlined_call_operand.vmem [shape: f32[1,320], index: 8, kind: input, shape index: {}]   ;;  %s11104_s9 = inlined_call_operand.vmem [shape: bf16[64,64], index: 9, kind: input, shape index: {}]   ;;  %s11105_s10 = inlined_call_operand.vmem [shape: f32[1,64], index: 10, kind: input, shape index: {}]   ;;  %s11106_s11 = inlined_call_operand.vmem [shape: f32[2,4,4], index: 11, kind: input, shape index: {}]   ;;  %s11107_s12 = inlined_call_operand.vmem [shape: f32[2,4], index: 12, kind: input, shape index: {}]   ;;  %s11108_s13 = inlined_call_operand.vmem [shape: f32[4,256], index: 13, kind: input, shape index: {}]   ;;  %s11109_s14 = inlined_call_operand.vmem [shape: f32[256,4], index: 14, kind: input, shape index: {}]   ;;  %s11110_s15 = inlined_call_operand.vmem [shape: f32[256,64], index: 15, kind: input, shape index: {}]   ;;  %s11111_s16 = inlined_call_operand.hbm [shape: f32[32,128], index: 16, kind: output, shape index: {}]  }
   0x1   :  { %11121 = sst [smem:[#allocation15_spill]] %s11095_s0 }
   0x2   :  { %11122 = sst [smem:[#allocation16_spill]] %s11097_s2 }
   0x3   :  { %11123 = sst [smem:[#allocation17_spill]] %s11111_s16 }
   0x4   :  { %21 = vsyncpa [#allocation4], 0 }
   0x5   :  { %22 = vsyncpa [#allocation3], 0 }
   0x6   :  { %24 = vsyncpa [#allocation3 + $0x1], 0  ;;  %s8689_s21 = smov 0   ;;  %s8691_s22 = smov 0  }
   0x7   :  { %s8693_s23 = smov 0   ;;  %s8695_s24 = smov 0  }
   0x8 LB: > { %11124 = sst [smem:[#allocation8_spill]] %s8582_s21  ;;  %s8710_s25 = sadd.s32 4294967295, %s8594_s24   ;;  %s8594_s24 = sphi %s8695_s24, %s11141_s24   ;;  %s8590_s23 = sphi %s8693_s23, %s11143_s23   ;;  %s8586_s22 = sphi %s8691_s22, %s11145_s22   ;;  %s8582_s21 = sphi %s8689_s21, %s11144_s21  }
   0x9   : > { %11125 = sst [smem:[#allocation9_spill]] %s8590_s23  ;;  %s6472_s26 = sadd.s32 4294967294, %s8594_s24  }
   0xa   : > { %11126 = sst [smem:[#allocation10_spill]] %s8594_s24  ;;  %s8714_s27 = sadd.s32 1, %s8594_s24  }
   0xb   : > { %11127 = sst [smem:[#allocation11_spill]] %s8714_s27  ;;  %s383_s28 = sadd.s32 1, %s8590_s23 }
   0xc   : > { %s380_s29 = ssub.s32 %s8594_s24, %s8714_s27  ;;  %p393_p0 = scmp.ne.s32.totalorder %s8590_s23, %s8586_s22 }
   0xd   : > { %p381_p1 = scmp.eq.s32.totalorder %s380_s29, 0  ;;  %p394_p2 = scmp.eq.s32.totalorder %s8710_s25, 1 }
   0xe   : > { %p399_p3 = scmp.ne.s32.totalorder %s8586_s22, %s8582_s21  ;;  %p400_p4 = scmp.eq.s32.totalorder %s6472_s26, 1 }
   0xf   : > { %s8725_s30 = scalar_select %p381_p1, %s8590_s23, %s383_s28  }
  0x10   : > { %p8727_p5 = por %p394_p2, %p393_p0  ;;  %p8731_p6 = por %p400_p4, %p399_p3 }
  0x11   : > { %11128 = sst [smem:[#allocation12_spill]] %s8725_s30  ;;  %p6473_p7 = scmp.ge.s32.totalorder %s8594_s24, 1 }
  0x12   : > { %s11129_s0 = scalar_select %p8727_p5, 1, 0 }
  0x13   : > { %s11131_s17 = scalar_select %p8731_p6, 1, 0 }
  0x14   : > { %11130 = sst [smem:[#allocation13_spill]] %s11129_s0  ;;  %p407_p8 = scmp.lt.s32.totalorder %s8594_s24, 3 }
  0x15   : > { %11132 = sst [smem:[#allocation14_spill]] %s11131_s17  ;;  %p7563_p9 = scmp.eq.s32.totalorder %s8710_s25, 0 }
  0x16   : > { %p8738_p10 = pnand %p6473_p7, %p407_p8  ;;  %s11134_s26 = sld [smem:[#allocation15_spill]] }
  0x18   : > { %p7555_p11 = pneg %p8738_p10 }
  0x1a   : > { %p7556_p12 = pnand %p7563_p9, %p7555_p11 }
  0x1c   : > { %s420_s28 = sshll.u32 %s11134_s26, 4  ;;  %p8515_p0 = pneg %p7556_p12  ;;  %s421_s28 = int_to_ptr.vmem [resolvable:$true] %s420_s28 }
  0x1d   : > { %s8513_s29 = scalar_lea.vmem %s421_s28, 16  ;;  %p8521_p3 = scmp.lt.s32.totalorder %s421_s28, %s421_s28 }
  0x1e   : > { %p8514_p13 = scmp.ne.s32.totalorder %s421_s28, %s8513_s29  ;;  %p8522_p4 = scmp.lt.s32.totalorder %s8513_s29, %s8513_s29 }
  0x20   : > { %p8516_p1 = pnand %p8515_p0, %p8514_p13  ;;  %p8523_p7 = por %p8522_p4, %p8521_p3 }
  0x22   : > { %p8517_p2 = pneg %p8516_p1 }
  0x24   : > { %p8524_p8 = pnand %p8523_p7, %p8517_p2 }
  0x26   : > { %8527 = shalt.err (!%p8524_p8)
}
  0x27   : > { %s8596_s30 = smov [#allocation2]   ;;  %491 = sbr.rel (%p8738_p10) target bundleno = 2399 (0x95f), region = 84 }
  0x28   : > { %7558 = dma.vmem_to_smem (!%p7556_p12), %s421_s28, 16, %s8596_s30, [#allocation4]  }
  0x2e   : > { %8573 = dma.done.wait (%p7563_p9), [#allocation4], 16  }
  0x2f   : > { %8575 = vsyncadd (%p7563_p9), [#allocation4], 4294967280 }
  0x30   : > { %497 = sfence }
  0x31   : > { %v7606_v0 = vld [vmem:[%s11098_s3 + $0x4] ss:$16 sps:$4 sm:$0xff]   ;;  %v7608_v1 = vld [vmem:[%s11098_s3 + $0xc] ss:$16 sps:$4 sm:$0xff]   ;;  %v7610_v2 = vld [vmem:[%s11098_s3] ss:$16 sps:$4 sm:$0xff]  }
  0x32   : > { %1387 = vmatprep.subr.bf16.mxu0 %v7606_v0  ;;  %v7611_v3 = vld [vmem:[%s11098_s3 + $0x8] ss:$16 sps:$4 sm:$0xff]   ;;  %1473 = vmatprep.subr.bf16.mxu1 %v7608_v1  ;;  %v7612_v4 = vld [vmem:[%s11098_s3 + $0x24] ss:$16 sps:$4 sm:$0xff]   ;;  %v7614_v5 = vld [vmem:[%s11098_s3 + $0x2c] ss:$16 sps:$4 sm:$0xff]  }
  0x33   : > { %1388 = vmatpush1.bf16.msra.mxu0 %v7610_v2  ;;  %1474 = vmatpush1.bf16.msra.mxu1 %v7611_v3  ;;  %v7616_v6 = vld [vmem:[%s11098_s3 + $0x20] ss:$16 sps:$4 sm:$0xff]   ;;  %v7617_v7 = vld [vmem:[%s11098_s3 + $0x28] ss:$16 sps:$4 sm:$0xff]   ;;  %v8597_v8 = vmov 0   ;;  %s6479_s19 = sshll.u32 %s8710_s25, 1 }
  0x34   : > { %1389 = vmatprep.subr.bf16.mxu0 %v7612_v4  ;;  %7605 = vset.pattern.permute.xlu0 %v8597_v8  ;;  %v7618_v9 = vld [vmem:[%s11098_s3 + $0x44] ss:$16 sps:$4 sm:$0xff]   ;;  %v7620_v10 = vld [vmem:[%s11098_s3 + $0x4c] ss:$16 sps:$4 sm:$0xff]   ;;  %v7622_v11 = vld [vmem:[%s11098_s3 + $0x40] ss:$16 sps:$4 sm:$0xff]  }
  0x35   : > { %1475 = vmatprep.subr.bf16.mxu1 %v7614_v5  ;;  %v7623_v12 = vld [vmem:[%s11098_s3 + $0x48] ss:$16 sps:$4 sm:$0xff]   ;;  %v7624_v13 = vld [vmem:[%s11098_s3 + $0x64] ss:$16 sps:$4 sm:$0xff]   ;;  %v7626_v14 = vld [vmem:[%s11098_s3 + $0x6c] ss:$16 sps:$4 sm:$0xff]  }
  0x36   : > { %v7628_v15 = vld [vmem:[%s11098_s3 + $0x60] ss:$16 sps:$4 sm:$0xff]   ;;  %v7629_v16 = vld [vmem:[%s11098_s3 + $0x68] ss:$16 sps:$4 sm:$0xff]   ;;  %v7630_v17 = vld [vmem:[%s11098_s3 + $0x84] ss:$16 sps:$4 sm:$0xff]  }
  0x37   : > { %1390 = vmatpush1.bf16.msra.mxu0 %v7616_v6  ;;  %1476 = vmatpush1.bf16.msra.mxu1 %v7617_v7  ;;  %v7632_v18 = vld [vmem:[%s11098_s3 + $0x8c] ss:$16 sps:$4 sm:$0xff]   ;;  %v7634_v19 = vld [vmem:[%s11098_s3 + $0x80] ss:$16 sps:$4 sm:$0xff]   ;;  %v7635_v20 = vld [vmem:[%s11098_s3 + $0x88] ss:$16 sps:$4 sm:$0xff]  }
  0x38   : > { %1391 = vmatprep.subr.bf16.mxu0 %v7618_v9  ;;  %1477 = vmatprep.subr.bf16.mxu1 %v7620_v10  ;;  %v7636_v21 = vld [vmem:[%s11098_s3 + $0xa4] ss:$16 sps:$4 sm:$0xff]   ;;  %v7638_v22 = vld [vmem:[%s11098_s3 + $0xac] ss:$16 sps:$4 sm:$0xff]   ;;  %v7640_v23 = vld [vmem:[%s11098_s3 + $0xa0] ss:$16 sps:$4 sm:$0xff]  }
  0x39   : > { %v7641_v24 = vld [vmem:[%s11098_s3 + $0xa8] ss:$16 sps:$4 sm:$0xff]   ;;  %v7642_v25 = vld [vmem:[%s11098_s3 + $0xc4] ss:$16 sps:$4 sm:$0xff]   ;;  %v7644_v26 = vld [vmem:[%s11098_s3 + $0xcc] ss:$16 sps:$4 sm:$0xff]  }
  0x3a   : > { %v7646_v27 = vld [vmem:[%s11098_s3 + $0xc0] ss:$16 sps:$4 sm:$0xff]   ;;  %v7647_v28 = vld [vmem:[%s11098_s3 + $0xc8] ss:$16 sps:$4 sm:$0xff]   ;;  %v7648_v29 = vld [vmem:[%s11098_s3 + $0xe4] ss:$16 sps:$4 sm:$0xff]  }
  0x3b   : > { %1392 = vmatpush1.bf16.msra.mxu0 %v7622_v11  ;;  %1478 = vmatpush1.bf16.msra.mxu1 %v7623_v12  ;;  %v7650_v30 = vld [vmem:[%s11098_s3 + $0xec] ss:$16 sps:$4 sm:$0xff]   ;;  %v7652_v31 = vld [vmem:[%s11098_s3 + $0xe0] ss:$16 sps:$4 sm:$0xff]   ;;  %v7653_v32 = vld [vmem:[%s11098_s3 + $0xe8] ss:$16 sps:$4 sm:$0xff]  }
  0x3c   : > { %1393 = vmatprep.subr.bf16.mxu0 %v7624_v13  ;;  %1479 = vmatprep.subr.bf16.mxu1 %v7626_v14  ;;  %v7654_v33 = vld [vmem:[%s11098_s3 + $0x104] ss:$16 sps:$4 sm:$0xff]   ;;  %v7656_v34 = vld [vmem:[%s11098_s3 + $0x10c] ss:$16 sps:$4 sm:$0xff]   ;;  %p549_p9 = scmp.lt.s32.totalorder %s6479_s19, 3  ;;  %s11135_s2 = sld [smem:[#allocation16_spill]] }
  0x3d   : > { %v7658_v35 = vld [vmem:[%s11098_s3 + $0x100] ss:$16 sps:$4 sm:$0xff]   ;;  %v7659_v36 = vld [vmem:[%s11098_s3 + $0x108] ss:$16 sps:$4 sm:$0xff]   ;;  %v7660_v37 = vld [vmem:[%s11098_s3 + $0x124] ss:$16 sps:$4 sm:$0xff]  }
  0x3e   : > { %v7662_v38 = vld [vmem:[%s11098_s3 + $0x12c] ss:$16 sps:$4 sm:$0xff]   ;;  %s11147_s19 = smov (!%p549_p9, %s6479_s19), 3  ;;  %v7664_v39 = vld [vmem:[%s11098_s3 + $0x120] ss:$16 sps:$4 sm:$0xff]   ;;  %s9013_s18 = sld [smem:[#allocation2]] }
  0x3f   : > { %1394 = vmatpush1.bf16.msra.mxu0 %v7628_v15  ;;  %1480 = vmatpush1.bf16.msra.mxu1 %v7629_v16  ;;  %v7665_v40 = vld [vmem:[%s11098_s3 + $0x128] ss:$16 sps:$4 sm:$0xff]   ;;  %v7666_v41 = vld [vmem:[%s11098_s3 + $0x144] ss:$16 sps:$4 sm:$0xff]   ;;  %v7668_v42 = vld [vmem:[%s11098_s3 + $0x14c] ss:$16 sps:$4 sm:$0xff]  }
  0x40   : > { %1395 = vmatprep.subr.bf16.mxu0 %v7630_v17  ;;  %1481 = vmatprep.subr.bf16.mxu1 %v7632_v18  ;;  %s7139_s28 = sshll.u32 %s11147_s19, 4  ;;  %v7670_v43 = vld [vmem:[%s11098_s3 + $0x140] ss:$16 sps:$4 sm:$0xff]   ;;  %v7671_v44 = vld [vmem:[%s11098_s3 + $0x148] ss:$16 sps:$4 sm:$0xff]   ;;  %s9024_s27 = sld [smem:[#allocation2 + $0x1]] }
  0x41   : > { %v7672_v45 = vld [vmem:[%s11098_s3 + $0x164] ss:$16 sps:$4 sm:$0xff]   ;;  %v7674_v46 = vld [vmem:[%s11098_s3 + $0x16c] ss:$16 sps:$4 sm:$0xff]   ;;  %v7676_v47 = vld [vmem:[%s11098_s3 + $0x160] ss:$16 sps:$4 sm:$0xff]  }
  0x42   : > { %s8898_s29 = scalar_lea.vmem %s11135_s2, %s7139_s28  ;;  %v7677_v48 = vld [vmem:[%s11098_s3 + $0x168] ss:$16 sps:$4 sm:$0xff]   ;;  %v7678_v50 = vld [vmem:[%s11098_s3 + $0x184] ss:$16 sps:$4 sm:$0xff]   ;;  %v7680_v51 = vld [vmem:[%s11098_s3 + $0x18c] ss:$16 sps:$4 sm:$0xff]  }
  0x43   : > { %1396 = vmatpush1.bf16.msra.mxu0 %v7634_v19  ;;  %1482 = vmatpush1.bf16.msra.mxu1 %v7635_v20  ;;  %v7704_v49 = vld [vmem:[%s8898_s29 + $0x4] ss:$16 sps:$4 sm:$0xff]   ;;  %v7682_v52 = vld [vmem:[%s11098_s3 + $0x180] ss:$16 sps:$4 sm:$0xff]   ;;  %v7683_v53 = vld [vmem:[%s11098_s3 + $0x188] ss:$16 sps:$4 sm:$0xff]  }
  0x44   : > { %1397 = vmatprep.subr.bf16.mxu0 %v7636_v21  ;;  %1483 = vmatprep.subr.bf16.mxu1 %v7638_v22  ;;  %v7684_v54 = vld [vmem:[%s11098_s3 + $0x1a4] ss:$16 sps:$4 sm:$0xff]   ;;  %v7686_v55 = vld [vmem:[%s11098_s3 + $0x1ac] ss:$16 sps:$4 sm:$0xff]   ;;  %v7688_v56 = vld [vmem:[%s11098_s3 + $0x1a0] ss:$16 sps:$4 sm:$0xff]  }
  0x45   : > { %1419 = vmatprep.mubr.bf16.mxu0 %v7704_v49  ;;  %1505 = vmatprep.mubr.bf16.mxu1 %v7704_v49  ;;  %v7689_v57 = vld [vmem:[%s11098_s3 + $0x1a8] ss:$16 sps:$4 sm:$0xff]   ;;  %v7690_v58 = vld [vmem:[%s11098_s3 + $0x1c4] ss:$16 sps:$4 sm:$0xff]   ;;  %v7692_v59 = vld [vmem:[%s11098_s3 + $0x1cc] ss:$16 sps:$4 sm:$0xff]  }
  0x46   : > { %v7694_v60 = vld [vmem:[%s11098_s3 + $0x1c0] ss:$16 sps:$4 sm:$0xff]   ;;  %v7695_v61 = vld [vmem:[%s11098_s3 + $0x1c8] ss:$16 sps:$4 sm:$0xff]   ;;  %v7696_v62 = vld [vmem:[%s11098_s3 + $0x1e4] ss:$16 sps:$4 sm:$0xff]  }
  0x47   : > { %1398 = vmatpush1.bf16.msra.mxu0 %v7640_v23  ;;  %1484 = vmatpush1.bf16.msra.mxu1 %v7641_v24  ;;  %v7698_v63 = vld [vmem:[%s11098_s3 + $0x1ec] ss:$16 sps:$4 sm:$0xff]   ;;  %v7700_v0 = vld [vmem:[%s11098_s3 + $0x1e0] ss:$16 sps:$4 sm:$0xff]   ;;  %v7701_v1 = vld [vmem:[%s11098_s3 + $0x1e8] ss:$16 sps:$4 sm:$0xff]  }
  0x48   : > { %1399 = vmatprep.subr.bf16.mxu0 %v7642_v25  ;;  %1485 = vmatprep.subr.bf16.mxu1 %v7644_v26  ;;  %v7707_v2 = vld [vmem:[%s11098_s3 + $0x204] ss:$16 sps:$4 sm:$0xff]   ;;  %v7710_v3 = vld [vmem:[%s11098_s3 + $0x20c] ss:$16 sps:$4 sm:$0xff]   ;;  %v7702_v4 = vld [vmem:[%s8898_s29] ss:$16 sps:$4 sm:$0xff]  }
  0x49   : > { %v7705_v5 = vld [vmem:[%s11098_s3 + $0x200] ss:$16 sps:$4 sm:$0xff]   ;;  %v7708_v6 = vld [vmem:[%s11098_s3 + $0x208] ss:$16 sps:$4 sm:$0xff]   ;;  %v7713_v7 = vld [vmem:[%s11098_s3 + $0x224] ss:$16 sps:$4 sm:$0xff]  }
  0x4a   : > { %v7716_v9 = vld [vmem:[%s11098_s3 + $0x22c] ss:$16 sps:$4 sm:$0xff]   ;;  %v7711_v10 = vld [vmem:[%s11098_s3 + $0x220] ss:$16 sps:$4 sm:$0xff]   ;;  %v7714_v11 = vld [vmem:[%s11098_s3 + $0x228] ss:$16 sps:$4 sm:$0xff]  }
  0x4b   : > { %1400 = vmatpush1.bf16.msra.mxu0 %v7646_v27  ;;  %1486 = vmatpush1.bf16.msra.mxu1 %v7647_v28  ;;  %v7719_v12 = vld [vmem:[%s11098_s3 + $0x244] ss:$16 sps:$4 sm:$0xff]   ;;  %v7722_v13 = vld [vmem:[%s11098_s3 + $0x24c] ss:$16 sps:$4 sm:$0xff]   ;;  %v7717_v14 = vld [vmem:[%s11098_s3 + $0x240] ss:$16 sps:$4 sm:$0xff]  }
  0x4c   : > { %1401 = vmatprep.subr.bf16.mxu0 %v7648_v29  ;;  %1487 = vmatprep.subr.bf16.mxu1 %v7650_v30  ;;  %v7720_v15 = vld [vmem:[%s11098_s3 + $0x248] ss:$16 sps:$4 sm:$0xff]   ;;  %v7725_v16 = vld [vmem:[%s11098_s3 + $0x264] ss:$16 sps:$4 sm:$0xff]   ;;  %v7728_v17 = vld [vmem:[%s11098_s3 + $0x26c] ss:$16 sps:$4 sm:$0xff]  }
  0x4d   : > { %v7723_v18 = vld [vmem:[%s11098_s3 + $0x260] ss:$16 sps:$4 sm:$0xff]   ;;  %v7726_v19 = vld [vmem:[%s11098_s3 + $0x268] ss:$16 sps:$4 sm:$0xff]   ;;  %v7731_v20 = vld [vmem:[%s11098_s3 + $0x284] ss:$16 sps:$4 sm:$0xff]  }
  0x4e   : > { %v7734_v21 = vld [vmem:[%s11098_s3 + $0x28c] ss:$16 sps:$4 sm:$0xff]   ;;  %v7729_v22 = vld [vmem:[%s11098_s3 + $0x280] ss:$16 sps:$4 sm:$0xff]   ;;  %v7732_v23 = vld [vmem:[%s11098_s3 + $0x288] ss:$16 sps:$4 sm:$0xff]  }
  0x4f   : > { %1402 = vmatpush1.bf16.msra.mxu0 %v7652_v31  ;;  %1488 = vmatpush1.bf16.msra.mxu1 %v7653_v32  ;;  %v7737_v24 = vld [vmem:[%s11098_s3 + $0x2a4] ss:$16 sps:$4 sm:$0xff]   ;;  %v7740_v25 = vld [vmem:[%s11098_s3 + $0x2ac] ss:$16 sps:$4 sm:$0xff]   ;;  %s6480_s21 = sshll.u32 %s11147_s19, 3  ;;  %v566_v31 = vstv %s9013_s18  ;;  %vm5256_vm0 = vcmask 523264  }
  0x50   : > { %1403 = vmatprep.subr.bf16.mxu0 %v7654_v33  ;;  %1489 = vmatprep.subr.bf16.mxu1 %v7656_v34  ;;  %v7735_v26 = vld [vmem:[%s11098_s3 + $0x2a0] ss:$16 sps:$4 sm:$0xff]   ;;  %v7738_v27 = vld [vmem:[%s11098_s3 + $0x2a8] ss:$16 sps:$4 sm:$0xff]   ;;  %v7743_v28 = vld [vmem:[%s11098_s3 + $0x2c4] ss:$16 sps:$4 sm:$0xff]   ;;  %s552_s26 = scalar_lea.vmem %s11096_s1, %s6480_s21 }
  0x51   : > { %v7746_v29 = vld [vmem:[%s11098_s3 + $0x2cc] ss:$16 sps:$4 sm:$0xff]   ;;  %v7741_v30 = vld [vmem:[%s11098_s3 + $0x2c0] ss:$16 sps:$4 sm:$0xff]   ;;  %v7744_v32 = vld [vmem:[%s11098_s3 + $0x2c8] ss:$16 sps:$4 sm:$0xff]  }
  0x52   : > { %v7803_v33 = vld [vmem:[%s8898_s29 + $0xc] ss:$16 sps:$4 sm:$0xff]   ;;  %v563_v34 = vld [vmem:[%s552_s26] sm:$0xff]  ;;  %vm8599_vm1 = vmmov 0   ;;  %vm5883_vm2 = vcmask 1048064   ;;  %vm5931_vm3 = vcmask 1043456  }
  0x53   : > { %1404 = vmatpush1.bf16.msra.mxu0 %v7658_v35  ;;  %1490 = vmatpush1.bf16.msra.mxu1 %v7659_v36  ;;  %v564_v35 = vld [vmem:[%s552_s26 + $0x8] sm:$0xff]  ;;  %v570_v36 = vstv %s9024_s27  ;;  %v7761_v49 = vld [vmem:[%s11098_s3 + $0x324] ss:$16 sps:$4 sm:$0xff]   ;;  %vm5902_vm4 = vcmask 7168   ;;  %vm5905_vm5 = vcmask 15360   ;;  %vm5908_vm6 = vcmask 23552  }
  0x54   : > { %1405 = vmatprep.subr.bf16.mxu0 %v7660_v37  ;;  %1491 = vmatprep.subr.bf16.mxu1 %v7662_v38  ;;  %v7749_v37 = vld [vmem:[%s11098_s3 + $0x2e4] ss:$16 sps:$4 sm:$0xff]   ;;  %v7752_v38 = vld [vmem:[%s11098_s3 + $0x2ec] ss:$16 sps:$4 sm:$0xff]   ;;  %vm5918_vm7 = vcmask 31744   ;;  %s8600_s18 = smov 64  }
  0x55   : > { %s545_s24 = sand.u32 1, %s8586_s22   ;;  %s7140_s27 = sshll.u32 %s8710_s25, 8 }
  0x56   : > { %s6478_s21 = sshll.u32 %s545_s24, 4  ;;  %s11137_s19 = sld [smem:[#allocation17_spill]] }
  0x57   : > { %1406 = vmatpush1.bf16.msra.mxu0 %v7664_v39  ;;  %1492 = vmatpush1.bf16.msra.mxu1 %v7665_v40  ;;  %v567_v39 = vmul.f32 %v566_v31, %v563_v34  ;;  %v568_v40 = vmul.f32 %v566_v31, %v564_v35  ;;  %v7830_v31 = vld [vmem:[%s11100_s5 + $0x124] ss:$36 sps:$4 sm:$0xff]   ;;  %v7836_v35 = vld [vmem:[%s11100_s5 + $0x16c] ss:$36 sps:$4 sm:$0xff]   ;;  %s547_s2 = scalar_lea.vmem [#allocation5], %s6478_s21  ;;  %s11054_s25 = scalar_lea.sflag [#allocation3], %s545_s24 }
  0x58   : > { %1407 = vmatprep.subr.bf16.mxu0 %v7666_v41  ;;  %1493 = vmatprep.subr.bf16.mxu1 %v7668_v42  ;;  %v7747_v42 = vld [vmem:[%s11098_s3 + $0x2e0] ss:$16 sps:$4 sm:$0xff]   ;;  %v7831_v34 = vld [vmem:[%s11100_s5 + $0x128] ss:$36 sps:$4 sm:$0xff]   ;;  %s8601_s30 = smov [#allocation5]  }
  0x59   : > { %v571_v41 = vadd.f32 %v570_v36, %v567_v39  ;;  %v7842_v39 = vld [vmem:[%s11100_s5 + $0x1b4] ss:$36 sps:$4 sm:$0xff]   ;;  %s8532_s16 = sshll.u32 %s8601_s30, 4  ;;  %s8533_s16 = int_to_ptr.vmem [resolvable:$false] %s8532_s16 }
  0x5b   : > { %1408 = vmatpush1.bf16.msra.mxu0 %v7670_v43  ;;  %1494 = vmatpush1.bf16.msra.mxu1 %v7671_v44  ;;  %v7750_v43 = vld [vmem:[%s11098_s3 + $0x2e8] ss:$16 sps:$4 sm:$0xff]   ;;  %v7755_v44 = vld [vmem:[%s11098_s3 + $0x304] ss:$16 sps:$4 sm:$0xff]  }
  0x5c   : > { %1409 = vmatprep.subr.bf16.mxu0 %v7672_v45  ;;  %1495 = vmatprep.subr.bf16.mxu1 %v7674_v46  ;;  %v7758_v45 = vld [vmem:[%s11098_s3 + $0x30c] ss:$16 sps:$4 sm:$0xff]   ;;  %v572_v46 = vadd.f32 %v570_v36, %v568_v40  ;;  %v7839_v36 = vld [vmem:[%s11100_s5 + $0x174] ss:$36 sps:$4 sm:$0xff]   ;;  %s11051_s20 = scalar_lea.hbm %s11137_s19, %s7140_s27 }
  0x5d   : > { %1569 = vperm.xlu0 %7605, %v571_v41   ;;  %v7845_v40 = vld [vmem:[%s11100_s5 + $0x1bc] ss:$36 sps:$4 sm:$0xff]   ;;  %v7840_v41 = vld [vmem:[%s11100_s5 + $0x1b0] ss:$36 sps:$4 sm:$0xff]  }
  0x5f   : > { %1410 = vmatpush1.bf16.msra.mxu0 %v7676_v47  ;;  %1496 = vmatpush1.bf16.msra.mxu1 %v7677_v48  ;;  %v7753_v47 = vld [vmem:[%s11098_s3 + $0x300] ss:$16 sps:$4 sm:$0xff]   ;;  %v7756_v48 = vld [vmem:[%s11098_s3 + $0x308] ss:$16 sps:$4 sm:$0xff]  }
  0x60   : > { %1411 = vmatprep.subr.bf16.mxu0 %v7678_v50  ;;  %1497 = vmatprep.subr.bf16.mxu1 %v7680_v51  ;;  %v7764_v50 = vld [vmem:[%s11098_s3 + $0x32c] ss:$16 sps:$4 sm:$0xff]   ;;  %v7759_v51 = vld [vmem:[%s11098_s3 + $0x320] ss:$16 sps:$4 sm:$0xff]  }
  0x61   : > { %1574 = vperm.xlu0 %7605, %v572_v46   ;;  %v7849_v46 = vld [vmem:[%s11100_s5 + $0x200] ss:$36 sps:$4 sm:$0xff]  }
  0x63   : > { %1412 = vmatpush1.bf16.msra.mxu0 %v7682_v52  ;;  %1498 = vmatpush1.bf16.msra.mxu1 %v7683_v53  ;;  %v7762_v52 = vld [vmem:[%s11098_s3 + $0x328] ss:$16 sps:$4 sm:$0xff]   ;;  %v7767_v53 = vld [vmem:[%s11098_s3 + $0x344] ss:$16 sps:$4 sm:$0xff]  }
  0x64   : > { %1413 = vmatprep.subr.bf16.mxu0 %v7684_v54  ;;  %1499 = vmatprep.subr.bf16.mxu1 %v7686_v55  ;;  %v7770_v54 = vld [vmem:[%s11098_s3 + $0x34c] ss:$16 sps:$4 sm:$0xff]   ;;  %v7765_v55 = vld [vmem:[%s11098_s3 + $0x340] ss:$16 sps:$4 sm:$0xff]  }
  0x67   : > { %1414 = vmatpush1.bf16.msra.mxu0 %v7688_v56  ;;  %1500 = vmatpush1.bf16.msra.mxu1 %v7689_v57  ;;  %v7768_v56 = vld [vmem:[%s11098_s3 + $0x348] ss:$16 sps:$4 sm:$0xff]   ;;  %v7773_v57 = vld [vmem:[%s11098_s3 + $0x364] ss:$16 sps:$4 sm:$0xff]  }
  0x68   : > { %1415 = vmatprep.subr.bf16.mxu0 %v7690_v58  ;;  %1501 = vmatprep.subr.bf16.mxu1 %v7692_v59  ;;  %v7776_v58 = vld [vmem:[%s11098_s3 + $0x36c] ss:$16 sps:$4 sm:$0xff]   ;;  %v7771_v59 = vld [vmem:[%s11098_s3 + $0x360] ss:$16 sps:$4 sm:$0xff]  }
  0x6b   : > { %1416 = vmatpush1.bf16.msra.mxu0 %v7694_v60  ;;  %1502 = vmatpush1.bf16.msra.mxu1 %v7695_v61  ;;  %v7774_v60 = vld [vmem:[%s11098_s3 + $0x368] ss:$16 sps:$4 sm:$0xff]   ;;  %v7779_v61 = vld [vmem:[%s11098_s3 + $0x384] ss:$16 sps:$4 sm:$0xff]  }
  0x6c   : > { %1417 = vmatprep.subr.bf16.mxu0 %v7696_v62  ;;  %1503 = vmatprep.subr.bf16.mxu1 %v7698_v63  ;;  %v7782_v62 = vld [vmem:[%s11098_s3 + $0x38c] ss:$16 sps:$4 sm:$0xff]   ;;  %v7777_v63 = vld [vmem:[%s11098_s3 + $0x380] ss:$16 sps:$4 sm:$0xff]  }
  0x6f   : > { %1418 = vmatpush1.bf16.msra.mxu0 %v7700_v0  ;;  %1504 = vmatpush1.bf16.msra.mxu1 %v7701_v1  ;;  %v7780_v0 = vld [vmem:[%s11098_s3 + $0x388] ss:$16 sps:$4 sm:$0xff]   ;;  %v7785_v1 = vld [vmem:[%s11098_s3 + $0x3a4] ss:$16 sps:$4 sm:$0xff]  }
  0x70   : > { %1430 = vmatprep.subr.bf16.mxu0 %v7707_v2  ;;  %1516 = vmatprep.subr.bf16.mxu1 %v7710_v3  ;;  %v7788_v2 = vld [vmem:[%s11098_s3 + $0x3ac] ss:$16 sps:$4 sm:$0xff]   ;;  %v7783_v3 = vld [vmem:[%s11098_s3 + $0x3a0] ss:$16 sps:$4 sm:$0xff]  }
  0x72   : > { %1420 = vmatmul.mubr.bf16.vlgmr.msra.gmra.mrb[0].mxu0 %v7702_v4  ;;  %1506 = vmatmul.mubr.bf16.vlgmr.msra.gmra.mrb[0].mxu1 %v7702_v4  ;;  %v7786_v4 = vld [vmem:[%s11098_s3 + $0x3a8] ss:$16 sps:$4 sm:$0xff]  }
  0x73   : > { %1431 = vmatpush1.bf16.msra.mxu0 %v7705_v5  ;;  %1517 = vmatpush1.bf16.msra.mxu1 %v7708_v6  ;;  %v7791_v5 = vld [vmem:[%s11098_s3 + $0x3c4] ss:$16 sps:$4 sm:$0xff]   ;;  %v7794_v6 = vld [vmem:[%s11098_s3 + $0x3cc] ss:$16 sps:$4 sm:$0xff]  }
  0x74   : > { %1432 = vmatprep.subr.bf16.mxu0 %v7713_v7  ;;  %1518 = vmatprep.subr.bf16.mxu1 %v7716_v9  ;;  %v7789_v7 = vld [vmem:[%s11098_s3 + $0x3c0] ss:$16 sps:$4 sm:$0xff]   ;;  %v7792_v9 = vld [vmem:[%s11098_s3 + $0x3c8] ss:$16 sps:$4 sm:$0xff]  }
  0x75   : > { %1462 = vmatprep.mubr.bf16.mxu0 %v7803_v33  ;;  %1548 = vmatprep.mubr.bf16.mxu1 %v7803_v33  ;;  %v7828_v33 = vld [vmem:[%s11100_s5 + $0x120] ss:$36 sps:$4 sm:$0xff]  }
  0x77   : > { %1433 = vmatpush1.bf16.msra.mxu0 %v7711_v10  ;;  %1519 = vmatpush1.bf16.msra.mxu1 %v7714_v11  ;;  %v7797_v10 = vld [vmem:[%s11098_s3 + $0x3e4] ss:$16 sps:$4 sm:$0xff]   ;;  %v7800_v11 = vld [vmem:[%s11098_s3 + $0x3ec] ss:$16 sps:$4 sm:$0xff]  }
  0x78   : > { %1434 = vmatprep.subr.bf16.mxu0 %v7719_v12  ;;  %1520 = vmatprep.subr.bf16.mxu1 %v7722_v13  ;;  %v7795_v12 = vld [vmem:[%s11098_s3 + $0x3e0] ss:$16 sps:$4 sm:$0xff]   ;;  %v7798_v13 = vld [vmem:[%s11098_s3 + $0x3e8] ss:$16 sps:$4 sm:$0xff]  }
  0x7b   : > { %1435 = vmatpush1.bf16.msra.mxu0 %v7717_v14  ;;  %1521 = vmatpush1.bf16.msra.mxu1 %v7720_v15  ;;  %v7806_v14 = vld [vmem:[%s11100_s5 + $0x4] ss:$36 sps:$4 sm:$0xff]   ;;  %v7809_v15 = vld [vmem:[%s11100_s5 + $0xc] ss:$36 sps:$4 sm:$0xff]  }
  0x7c   : > { %1436 = vmatprep.subr.bf16.mxu0 %v7725_v16  ;;  %1522 = vmatprep.subr.bf16.mxu1 %v7728_v17  ;;  %v7801_v16 = vld [vmem:[%s8898_s29 + $0x8] ss:$16 sps:$4 sm:$0xff]   ;;  %v7804_v17 = vld [vmem:[%s11100_s5] ss:$36 sps:$4 sm:$0xff]   ;;  %s8534_s29 = scalar_lea.vmem %s8533_s16, 512 }
  0x7f   : > { %1437 = vmatpush1.bf16.msra.mxu0 %v7723_v18  ;;  %1523 = vmatpush1.bf16.msra.mxu1 %v7726_v19  ;;  %v7807_v18 = vld [vmem:[%s11100_s5 + $0x8] ss:$36 sps:$4 sm:$0xff]  }
  0x80   : > { %1438 = vmatprep.subr.bf16.mxu0 %v7731_v20  ;;  %1524 = vmatprep.subr.bf16.mxu1 %v7734_v21  ;;  %v7812_v19 = vld [vmem:[%s11100_s5 + $0x4c] ss:$36 sps:$4 sm:$0xff]   ;;  %v7815_v20 = vld [vmem:[%s11100_s5 + $0x54] ss:$36 sps:$4 sm:$0xff]  }
  0x81   : > { %v7810_v21 = vld [vmem:[%s11100_s5 + $0x48] ss:$36 sps:$4 sm:$0xff]  }
  0x83   : > { %1439 = vmatpush1.bf16.msra.mxu0 %v7729_v22  ;;  %1525 = vmatpush1.bf16.msra.mxu1 %v7732_v23  ;;  %v7813_v22 = vld [vmem:[%s11100_s5 + $0x50] ss:$36 sps:$4 sm:$0xff]  }
  0x84   : > { %1440 = vmatprep.subr.bf16.mxu0 %v7737_v24  ;;  %1526 = vmatprep.subr.bf16.mxu1 %v7740_v25  ;;  %v7818_v23 = vld [vmem:[%s11100_s5 + $0x94] ss:$36 sps:$4 sm:$0xff]   ;;  %v7821_v24 = vld [vmem:[%s11100_s5 + $0x9c] ss:$36 sps:$4 sm:$0xff]  }
  0x85   : > { %v7816_v25 = vld [vmem:[%s11100_s5 + $0x90] ss:$36 sps:$4 sm:$0xff]  }
  0x87   : > { %1441 = vmatpush1.bf16.msra.mxu0 %v7735_v26  ;;  %1527 = vmatpush1.bf16.msra.mxu1 %v7738_v27  ;;  %v7819_v26 = vld [vmem:[%s11100_s5 + $0x98] ss:$36 sps:$4 sm:$0xff]  }
  0x88   : > { %1442 = vmatprep.subr.bf16.mxu0 %v7743_v28  ;;  %1528 = vmatprep.subr.bf16.mxu1 %v7746_v29  ;;  %v7824_v27 = vld [vmem:[%s11100_s5 + $0xdc] ss:$36 sps:$4 sm:$0xff]   ;;  %v7827_v28 = vld [vmem:[%s11100_s5 + $0xe4] ss:$36 sps:$4 sm:$0xff]  }
  0x89   : > { %v7822_v29 = vld [vmem:[%s11100_s5 + $0xd8] ss:$36 sps:$4 sm:$0xff]  }
  0x8b   : > { %1443 = vmatpush1.bf16.msra.mxu0 %v7741_v30  ;;  %1529 = vmatpush1.bf16.msra.mxu1 %v7744_v32  ;;  %v7825_v30 = vld [vmem:[%s11100_s5 + $0xe0] ss:$36 sps:$4 sm:$0xff]   ;;  %v7833_v32 = vld [vmem:[%s11100_s5 + $0x12c] ss:$36 sps:$4 sm:$0xff]  }
  0x8c   : > { %1444 = vmatprep.subr.bf16.mxu0 %v7749_v37  ;;  %1530 = vmatprep.subr.bf16.mxu1 %v7752_v38  ;;  %v7834_v37 = vld [vmem:[%s11100_s5 + $0x168] ss:$36 sps:$4 sm:$0xff]   ;;  %v7837_v38 = vld [vmem:[%s11100_s5 + $0x170] ss:$36 sps:$4 sm:$0xff]  }
  0x8f   : > { %1445 = vmatpush1.bf16.msra.mxu0 %v7747_v42  ;;  %1531 = vmatpush1.bf16.msra.mxu1 %v7750_v43  ;;  %v7843_v42 = vld [vmem:[%s11100_s5 + $0x1b8] ss:$36 sps:$4 sm:$0xff]  }
  0x90   : > { %1446 = vmatprep.subr.bf16.mxu0 %v7755_v44  ;;  %1532 = vmatprep.subr.bf16.mxu1 %v7758_v45  ;;  %v7848_v43 = vld [vmem:[%s11100_s5 + $0x1fc] ss:$36 sps:$4 sm:$0xff]   ;;  %v7851_v44 = vld [vmem:[%s11100_s5 + $0x204] ss:$36 sps:$4 sm:$0xff]  }
  0x91   : > { %v7846_v45 = vld [vmem:[%s11100_s5 + $0x1f8] ss:$36 sps:$4 sm:$0xff]  }
  0x93   : > { %1447 = vmatpush1.bf16.msra.mxu0 %v7753_v47  ;;  %1533 = vmatpush1.bf16.msra.mxu1 %v7756_v48  ;;  %v7854_v47 = vld [vmem:[%s11100_s5 + $0x244] ss:$36 sps:$4 sm:$0xff]   ;;  %v7857_v48 = vld [vmem:[%s11100_s5 + $0x24c] ss:$36 sps:$4 sm:$0xff]  }
  0x94   : > { %1448 = vmatprep.subr.bf16.mxu0 %v7761_v49  ;;  %1534 = vmatprep.subr.bf16.mxu1 %v7764_v50  ;;  %v7852_v49 = vld [vmem:[%s11100_s5 + $0x240] ss:$36 sps:$4 sm:$0xff]   ;;  %v7855_v50 = vld [vmem:[%s11100_s5 + $0x248] ss:$36 sps:$4 sm:$0xff]  }
  0x97   : > { %1449 = vmatpush1.bf16.msra.mxu0 %v7759_v51  ;;  %1535 = vmatpush1.bf16.msra.mxu1 %v7762_v52  ;;  %v7860_v51 = vld [vmem:[%s11100_s5 + $0x28c] ss:$36 sps:$4 sm:$0xff]   ;;  %v7863_v52 = vld [vmem:[%s11100_s5 + $0x294] ss:$36 sps:$4 sm:$0xff]  }
  0x98   : > { %1450 = vmatprep.subr.bf16.mxu0 %v7767_v53  ;;  %1536 = vmatprep.subr.bf16.mxu1 %v7770_v54  ;;  %v7858_v53 = vld [vmem:[%s11100_s5 + $0x288] ss:$36 sps:$4 sm:$0xff]   ;;  %v7861_v54 = vld [vmem:[%s11100_s5 + $0x290] ss:$36 sps:$4 sm:$0xff]  }
  0x9b   : > { %1451 = vmatpush1.bf16.msra.mxu0 %v7765_v55  ;;  %1537 = vmatpush1.bf16.msra.mxu1 %v7768_v56  ;;  %v7866_v55 = vld [vmem:[%s11100_s5 + $0x2d4] ss:$36 sps:$4 sm:$0xff]   ;;  %v7869_v56 = vld [vmem:[%s11100_s5 + $0x2dc] ss:$36 sps:$4 sm:$0xff]  }
  0x9c   : > { %1452 = vmatprep.subr.bf16.mxu0 %v7773_v57  ;;  %1538 = vmatprep.subr.bf16.mxu1 %v7776_v58  ;;  %v7864_v57 = vld [vmem:[%s11100_s5 + $0x2d0] ss:$36 sps:$4 sm:$0xff]   ;;  %v7867_v58 = vld [vmem:[%s11100_s5 + $0x2d8] ss:$36 sps:$4 sm:$0xff]  }
  0x9f   : > { %1453 = vmatpush1.bf16.msra.mxu0 %v7771_v59  ;;  %1539 = vmatpush1.bf16.msra.mxu1 %v7774_v60  ;;  %v7872_v59 = vld [vmem:[%s11100_s5 + $0x31c] ss:$36 sps:$4 sm:$0xff]   ;;  %v7875_v60 = vld [vmem:[%s11100_s5 + $0x324] ss:$36 sps:$4 sm:$0xff]  }
  0xa0   : > { %1454 = vmatprep.subr.bf16.mxu0 %v7779_v61  ;;  %1540 = vmatprep.subr.bf16.mxu1 %v7782_v62  ;;  %v7870_v61 = vld [vmem:[%s11100_s5 + $0x318] ss:$36 sps:$4 sm:$0xff]   ;;  %v7873_v62 = vld [vmem:[%s11100_s5 + $0x320] ss:$36 sps:$4 sm:$0xff]  }
  0xa3   : > { %1455 = vmatpush1.bf16.msra.mxu0 %v7777_v63  ;;  %1541 = vmatpush1.bf16.msra.mxu1 %v7780_v0  ;;  %v7878_v63 = vld [vmem:[%s11100_s5 + $0x364] ss:$36 sps:$4 sm:$0xff]   ;;  %v7881_v0 = vld [vmem:[%s11100_s5 + $0x36c] ss:$36 sps:$4 sm:$0xff]  }
  0xa4   : > { %1456 = vmatprep.subr.bf16.mxu0 %v7785_v1  ;;  %1542 = vmatprep.subr.bf16.mxu1 %v7788_v2  ;;  %v7876_v1 = vld [vmem:[%s11100_s5 + $0x360] ss:$36 sps:$4 sm:$0xff]   ;;  %v7879_v2 = vld [vmem:[%s11100_s5 + $0x368] ss:$36 sps:$4 sm:$0xff]  }
  0xa7   : > { %1457 = vmatpush1.bf16.msra.mxu0 %v7783_v3  ;;  %1543 = vmatpush1.bf16.msra.mxu1 %v7786_v4  ;;  %v7884_v3 = vld [vmem:[%s11100_s5 + $0x3ac] ss:$36 sps:$4 sm:$0xff]   ;;  %v7887_v4 = vld [vmem:[%s11100_s5 + $0x3b4] ss:$36 sps:$4 sm:$0xff]  }
  0xa8   : > { %1458 = vmatprep.subr.bf16.mxu0 %v7791_v5  ;;  %1544 = vmatprep.subr.bf16.mxu1 %v7794_v6  ;;  %v7882_v5 = vld [vmem:[%s11100_s5 + $0x3a8] ss:$36 sps:$4 sm:$0xff]   ;;  %v7885_v6 = vld [vmem:[%s11100_s5 + $0x3b0] ss:$36 sps:$4 sm:$0xff]  }
  0xab   : > { %1459 = vmatpush1.bf16.msra.mxu0 %v7789_v7  ;;  %1545 = vmatpush1.bf16.msra.mxu1 %v7792_v9  ;;  %v7890_v7 = vld [vmem:[%s11100_s5 + $0x3f4] ss:$36 sps:$4 sm:$0xff]   ;;  %v7893_v9 = vld [vmem:[%s11100_s5 + $0x3fc] ss:$36 sps:$4 sm:$0xff]  }
  0xac   : > { %1460 = vmatprep.subr.bf16.mxu0 %v7797_v10  ;;  %1546 = vmatprep.subr.bf16.mxu1 %v7800_v11  ;;  %v7888_v10 = vld [vmem:[%s11100_s5 + $0x3f0] ss:$36 sps:$4 sm:$0xff]   ;;  %v7891_v11 = vld [vmem:[%s11100_s5 + $0x3f8] ss:$36 sps:$4 sm:$0xff]  }
  0xaf   : > { %1461 = vmatpush1.bf16.msra.mxu0 %v7795_v12  ;;  %1547 = vmatpush1.bf16.msra.mxu1 %v7798_v13  ;;  %v7896_v12 = vld [vmem:[%s11100_s5 + $0x43c] ss:$36 sps:$4 sm:$0xff]   ;;  %v7899_v13 = vld [vmem:[%s11100_s5 + $0x444] ss:$36 sps:$4 sm:$0xff]  }
  0xb0   : > { %3426 = vmatprep.subr.bf16.mxu0 %v7806_v14  ;;  %3512 = vmatprep.subr.bf16.mxu1 %v7809_v15  ;;  %v7894_v14 = vld [vmem:[%s11100_s5 + $0x438] ss:$36 sps:$4 sm:$0xff]   ;;  %v7897_v15 = vld [vmem:[%s11100_s5 + $0x440] ss:$36 sps:$4 sm:$0xff]  }
  0xb2   : > { %1463 = vmatmul.mubr.bf16.vlgmr.msra.gmra.mrb[0].mxu0 %v7801_v16  ;;  %1549 = vmatmul.mubr.bf16.vlgmr.msra.gmra.mrb[0].mxu1 %v7801_v16  ;;  %v7902_v16 = vld [vmem:[%s11100_s5 + $0x484] ss:$36 sps:$4 sm:$0xff]  }
  0xb3   : > { %3427 = vmatpush1.bf16.msra.mxu0 %v7804_v17  ;;  %3513 = vmatpush1.bf16.msra.mxu1 %v7807_v18  ;;  %v7905_v17 = vld [vmem:[%s11100_s5 + $0x48c] ss:$36 sps:$4 sm:$0xff]   ;;  %v707_v18 = vlaneseq }
  0xb4   : > { %3428 = vmatprep.subr.bf16.mxu0 %v7812_v19  ;;  %3514 = vmatprep.subr.bf16.mxu1 %v7815_v20 }
  0xb5   : > { %v9361_v19 = vshrl.u32 %v707_v18, 7  ;;  %v7932_v18 = vld [vmem:[%s11100_s5 + $0x5ec] ss:$36 sps:$4 sm:$0xff]  }
  0xb7   : > { %3429 = vmatpush1.bf16.msra.mxu0 %v7810_v21  ;;  %3515 = vmatpush1.bf16.msra.mxu1 %v7813_v22  ;;  %v9364_v20 = vsub.s32 0, %v9361_v19  ;;  %v9367_v21 = vsub.s32 1, %v9361_v19  ;;  %v705_v22 = vld [vmem:[%s11099_s4] sm:$0xf] }
  0xb8   : > { %3430 = vmatprep.subr.bf16.mxu0 %v7818_v23  ;;  %3516 = vmatprep.subr.bf16.mxu1 %v7821_v24  ;;  %v9373_v23 = vsub.s32 2, %v9361_v19  ;;  %v721_v24 = vsub.s32 3, %v9361_v19 }
  0xbb   : > { %3431 = vmatpush1.bf16.msra.mxu0 %v7816_v25  ;;  %3517 = vmatpush1.bf16.msra.mxu1 %v7819_v26  ;;  %v710_v25 = vrot.slane %v705_v22, %v9364_v20  ;;  %v718_v26 = vrot.slane %v705_v22, %v9373_v23 }
  0xbc   : > { %3432 = vmatprep.subr.bf16.mxu0 %v7824_v27  ;;  %3518 = vmatprep.subr.bf16.mxu1 %v7827_v28  ;;  %v714_v27 = vrot.slane %v705_v22, %v9367_v21  ;;  %v722_v28 = vrot.slane %v705_v22, %v721_v24  ;;  %v7935_v22 = vld [vmem:[%s11100_s5 + $0x5f4] ss:$36 sps:$4 sm:$0xff]  }
  0xbf   : > { %3433 = vmatpush1.bf16.msra.mxu0 %v7822_v29  ;;  %3519 = vmatpush1.bf16.msra.mxu1 %v7825_v30 }
  0xc0   : > { %3434 = vmatprep.subr.bf16.mxu0 %v7830_v31  ;;  %3520 = vmatprep.subr.bf16.mxu1 %v7833_v32 }
  0xc3   : > { %3435 = vmatpush1.bf16.msra.mxu0 %v7828_v33  ;;  %3521 = vmatpush1.bf16.msra.mxu1 %v7831_v34 }
  0xc4   : > { %3436 = vmatprep.subr.bf16.mxu0 %v7836_v35  ;;  %3522 = vmatprep.subr.bf16.mxu1 %v7839_v36 }
  0xc7   : > { %3437 = vmatpush1.bf16.msra.mxu0 %v7834_v37  ;;  %3523 = vmatpush1.bf16.msra.mxu1 %v7837_v38 }
  0xc8   : > { %3438 = vmatprep.subr.bf16.mxu0 %v7842_v39  ;;  %3524 = vmatprep.subr.bf16.mxu1 %v7845_v40 }
  0xcb   : > { %3439 = vmatpush1.bf16.msra.mxu0 %v7840_v41  ;;  %3525 = vmatpush1.bf16.msra.mxu1 %v7843_v42 }
  0xcc   : > { %3440 = vmatprep.subr.bf16.mxu0 %v7848_v43  ;;  %3526 = vmatprep.subr.bf16.mxu1 %v7851_v44 }
  0xcf   : > { %3441 = vmatpush1.bf16.msra.mxu0 %v7846_v45  ;;  %3527 = vmatpush1.bf16.msra.mxu1 %v7849_v46 }
  0xd0   : > { %3442 = vmatprep.subr.bf16.mxu0 %v7854_v47  ;;  %3528 = vmatprep.subr.bf16.mxu1 %v7857_v48 }
  0xd3   : > { %3443 = vmatpush1.bf16.msra.mxu0 %v7852_v49  ;;  %3529 = vmatpush1.bf16.msra.mxu1 %v7855_v50 }
  0xd4   : > { %3444 = vmatprep.subr.bf16.mxu0 %v7860_v51  ;;  %3530 = vmatprep.subr.bf16.mxu1 %v7863_v52 }
  0xd7   : > { %3445 = vmatpush1.bf16.msra.mxu0 %v7858_v53  ;;  %3531 = vmatpush1.bf16.msra.mxu1 %v7861_v54 }
  0xd8   : > { %3446 = vmatprep.subr.bf16.mxu0 %v7866_v55  ;;  %3532 = vmatprep.subr.bf16.mxu1 %v7869_v56 }
  0xdb   : > { %3447 = vmatpush1.bf16.msra.mxu0 %v7864_v57  ;;  %3533 = vmatpush1.bf16.msra.mxu1 %v7867_v58 }
  0xdc   : > { %3448 = vmatprep.subr.bf16.mxu0 %v7872_v59  ;;  %3534 = vmatprep.subr.bf16.mxu1 %v7875_v60  ;;  %v1570_v29 = vpop.permute.xlu0 %1569 }
  0xdf   : > { %3449 = vmatpush1.bf16.msra.mxu0 %v7870_v61  ;;  %3535 = vmatpush1.bf16.msra.mxu1 %v7873_v62  ;;  %v7900_v61 = vld [vmem:[%s11100_s5 + $0x480] ss:$36 sps:$4 sm:$0xff]   ;;  %v7903_v62 = vld [vmem:[%s11100_s5 + $0x488] ss:$36 sps:$4 sm:$0xff]  }
  0xe0   : > { %3450 = vmatprep.subr.bf16.mxu0 %v7878_v63  ;;  %3536 = vmatprep.subr.bf16.mxu1 %v7881_v0  ;;  %v1575_v54 = vpop.permute.xlu0 %1574 }
  0xe3   : > { %3451 = vmatpush1.bf16.msra.mxu0 %v7876_v1  ;;  %3537 = vmatpush1.bf16.msra.mxu1 %v7879_v2  ;;  %v7908_v1 = vld [vmem:[%s11100_s5 + $0x4cc] ss:$36 sps:$4 sm:$0xff]   ;;  %v7911_v2 = vld [vmem:[%s11100_s5 + $0x4d4] ss:$36 sps:$4 sm:$0xff]  }
  0xe4   : > { %3452 = vmatprep.subr.bf16.mxu0 %v7884_v3  ;;  %3538 = vmatprep.subr.bf16.mxu1 %v7887_v4  ;;  %v7906_v3 = vld [vmem:[%s11100_s5 + $0x4c8] ss:$36 sps:$4 sm:$0xff]   ;;  %v7909_v4 = vld [vmem:[%s11100_s5 + $0x4d0] ss:$36 sps:$4 sm:$0xff]  }
  0xe7   : > { %3453 = vmatpush1.bf16.msra.mxu0 %v7882_v5  ;;  %3539 = vmatpush1.bf16.msra.mxu1 %v7885_v6  ;;  %v7914_v5 = vld [vmem:[%s11100_s5 + $0x514] ss:$36 sps:$4 sm:$0xff]   ;;  %v7917_v6 = vld [vmem:[%s11100_s5 + $0x51c] ss:$36 sps:$4 sm:$0xff]  }
  0xe8   : > { %3454 = vmatprep.subr.bf16.mxu0 %v7890_v7  ;;  %3540 = vmatprep.subr.bf16.mxu1 %v7893_v9  ;;  %v7912_v7 = vld [vmem:[%s11100_s5 + $0x510] ss:$36 sps:$4 sm:$0xff]   ;;  %v7915_v9 = vld [vmem:[%s11100_s5 + $0x518] ss:$36 sps:$4 sm:$0xff]  }
  0xeb   : > { %3455 = vmatpush1.bf16.msra.mxu0 %v7888_v10  ;;  %3541 = vmatpush1.bf16.msra.mxu1 %v7891_v11  ;;  %v7920_v10 = vld [vmem:[%s11100_s5 + $0x55c] ss:$36 sps:$4 sm:$0xff]   ;;  %v7923_v11 = vld [vmem:[%s11100_s5 + $0x564] ss:$36 sps:$4 sm:$0xff]  }
  0xec   : > { %3456 = vmatprep.subr.bf16.mxu0 %v7896_v12  ;;  %3542 = vmatprep.subr.bf16.mxu1 %v7899_v13  ;;  %v7918_v12 = vld [vmem:[%s11100_s5 + $0x558] ss:$36 sps:$4 sm:$0xff]   ;;  %v7921_v13 = vld [vmem:[%s11100_s5 + $0x560] ss:$36 sps:$4 sm:$0xff]  }
  0xef   : > { %3457 = vmatpush1.bf16.msra.mxu0 %v7894_v14  ;;  %3543 = vmatpush1.bf16.msra.mxu1 %v7897_v15  ;;  %v7926_v14 = vld [vmem:[%s11100_s5 + $0x5a4] ss:$36 sps:$4 sm:$0xff]   ;;  %v7929_v15 = vld [vmem:[%s11100_s5 + $0x5ac] ss:$36 sps:$4 sm:$0xff]  }
  0xf0   : > { %3469 = vmatprep.subr.bf16.mxu0 %v7902_v16  ;;  %3555 = vmatprep.subr.bf16.mxu1 %v7905_v17  ;;  %v7924_v16 = vld [vmem:[%s11100_s5 + $0x5a0] ss:$36 sps:$4 sm:$0xff]   ;;  %v7927_v17 = vld [vmem:[%s11100_s5 + $0x5a8] ss:$36 sps:$4 sm:$0xff]  }
 0x185   : > { %v1464_v30 = vpop.f32.mrb[0].mxu0  ;;  %v1550_v31 = vpop.f32.mrb[0].mxu1 }
 0x186   : > { %v7475_v32 = vadd.f32 %v1464_v30, %v710_v25  ;;  %v7479_v33 = vadd.f32 %v1550_v31, %v718_v26  ;;  %v1466_v34 = vpop.f32.mrb[1].mxu0  ;;  %v1552_v35 = vpop.f32.mrb[1].mxu1  ;;  %v7939_v30 = vld [vmem:[%s11100_s5 + $0x638] ss:$36 sps:$4 sm:$0xff]  }
 0x187   : > { %v7476_v36 = vadd.f32 %v1466_v34, %v714_v27  ;;  %v7480_v37 = vadd.f32 %v1552_v35, %v722_v28  ;;  %v1468_v38 = vpop.f32.mrb[2].mxu0  ;;  %v1554_v39 = vpop.f32.mrb[2].mxu1  ;;  %v7944_v31 = vld [vmem:[%s11100_s5 + $0x67c] ss:$36 sps:$4 sm:$0xff]   ;;  %v7950_v35 = vld [vmem:[%s11100_s5 + $0x6c4] ss:$36 sps:$4 sm:$0xff]  }
 0x188   : > { %v1559_v40 = vmax.f32 %v7475_v32, 0.0  ;;  %v1561_v41 = vmax.f32 %v7479_v33, 0.0  ;;  %v7477_v42 = vadd.f32 %v1468_v38, %v710_v25  ;;  %v7481_v43 = vadd.f32 %v1554_v39, %v718_v26  ;;  %v1470_v44 = vpop.f32.mrb[3].mxu0  ;;  %v1556_v45 = vpop.f32.mrb[3].mxu1  ;;  %v7930_v25 = vld [vmem:[%s11100_s5 + $0x5e8] ss:$36 sps:$4 sm:$0xff]  }
 0x189   : > { %v1560_v46 = vmax.f32 %v7476_v36, 0.0  ;;  %v1562_v47 = vmax.f32 %v7480_v37, 0.0  ;;  %v7478_v48 = vadd.f32 %v1470_v44, %v714_v27  ;;  %v7482_v49 = vadd.f32 %v1556_v45, %v722_v28  ;;  %v7933_v26 = vld [vmem:[%s11100_s5 + $0x5f0] ss:$36 sps:$4 sm:$0xff]   ;;  %v7941_v28 = vld [vmem:[%s11100_s5 + $0x63c] ss:$36 sps:$4 sm:$0xff]  }
 0x18a   : > { %v1563_v50 = vmax.f32 %v7477_v42, 0.0  ;;  %v1565_v51 = vmax.f32 %v7481_v43, 0.0  ;;  %v1577_v55 = vmul.f32 %v1570_v29, %v1559_v40  ;;  %v7938_v27 = vld [vmem:[%s11100_s5 + $0x634] ss:$36 sps:$4 sm:$0xff]   ;;  %v7947_v32 = vld [vmem:[%s11100_s5 + $0x684] ss:$36 sps:$4 sm:$0xff]  }
 0x18b   : > { %v1564_v52 = vmax.f32 %v7478_v48, 0.0  ;;  %v1566_v53 = vmax.f32 %v7482_v49, 0.0  ;;  %v1578_v58 = vmul.f32 %v1570_v29, %v1560_v46  ;;  %v7936_v29 = vld [vmem:[%s11100_s5 + $0x630] ss:$36 sps:$4 sm:$0xff]   ;;  %v7942_v33 = vld [vmem:[%s11100_s5 + $0x678] ss:$36 sps:$4 sm:$0xff]  }
 0x18c   : > { %v9381_v56 = vpack.c.bf16 %v1565_v51, %v1561_v41  ;;  %v1579_v57 = vmul.f32 %v1575_v54, %v1563_v50  ;;  %v7945_v34 = vld [vmem:[%s11100_s5 + $0x680] ss:$36 sps:$4 sm:$0xff]   ;;  %v7953_v36 = vld [vmem:[%s11100_s5 + $0x6cc] ss:$36 sps:$4 sm:$0xff]   ;;  %v7959_v40 = vld [vmem:[%s11100_s5 + $0x714] ss:$36 sps:$4 sm:$0xff]  }
 0x18d   : > { %v9383_v59 = vpack.c.bf16 %v1566_v53, %v1562_v47  ;;  %v1580_v60 = vmul.f32 %v1575_v54, %v1564_v52  ;;  %v7948_v37 = vld [vmem:[%s11100_s5 + $0x6c0] ss:$36 sps:$4 sm:$0xff]   ;;  %v7951_v38 = vld [vmem:[%s11100_s5 + $0x6c8] ss:$36 sps:$4 sm:$0xff]   ;;  %v7957_v42 = vld [vmem:[%s11100_s5 + $0x710] ss:$36 sps:$4 sm:$0xff]  }
 0x18e   : > { %v9391_v63 = vpack.c.bf16 %v1579_v57, %v1577_v55  ;;  %v7956_v39 = vld [vmem:[%s11100_s5 + $0x70c] ss:$36 sps:$4 sm:$0xff]   ;;  %v7962_v43 = vld [vmem:[%s11100_s5 + $0x754] ss:$36 sps:$4 sm:$0xff]   ;;  %v7965_v44 = vld [vmem:[%s11100_s5 + $0x75c] ss:$36 sps:$4 sm:$0xff]  }
 0x18f   : > { %v9393_v0 = vpack.c.bf16 %v1580_v60, %v1578_v58  ;;  %v7954_v41 = vld [vmem:[%s11100_s5 + $0x708] ss:$36 sps:$4 sm:$0xff]   ;;  %v7960_v45 = vld [vmem:[%s11100_s5 + $0x750] ss:$36 sps:$4 sm:$0xff]   ;;  %v7963_v46 = vld [vmem:[%s11100_s5 + $0x758] ss:$36 sps:$4 sm:$0xff]  }
 0x190   : > { %v7968_v47 = vld [vmem:[%s11100_s5 + $0x79c] ss:$36 sps:$4 sm:$0xff]   ;;  %v7971_v48 = vld [vmem:[%s11100_s5 + $0x7a4] ss:$36 sps:$4 sm:$0xff]   ;;  %v7977_v52 = vld [vmem:[%s11100_s5 + $0x7ec] ss:$36 sps:$4 sm:$0xff]  }
 0x191   : > { %3458 = vmatprep.mubr.bf16.mxu0 %v9393_v0  ;;  %3544 = vmatprep.mubr.bf16.mxu1 %v9393_v0  ;;  %v7966_v49 = vld [vmem:[%s11100_s5 + $0x798] ss:$36 sps:$4 sm:$0xff]   ;;  %v7969_v50 = vld [vmem:[%s11100_s5 + $0x7a0] ss:$36 sps:$4 sm:$0xff]   ;;  %v7975_v54 = vld [vmem:[%s11100_s5 + $0x7e8] ss:$36 sps:$4 sm:$0xff]  }
 0x192   : > { %3459 = vmatmul.mubr.bf16.vlgmr.msra.gmra.mrb[4].mxu0 %v9391_v63  ;;  %3545 = vmatmul.mubr.bf16.vlgmr.msra.gmra.mrb[4].mxu1 %v9391_v63  ;;  %v7974_v51 = vld [vmem:[%s11100_s5 + $0x7e4] ss:$36 sps:$4 sm:$0xff]   ;;  %v7980_v55 = vld [vmem:[%s11100_s5 + $0x82c] ss:$36 sps:$4 sm:$0xff]   ;;  %v7983_v57 = vld [vmem:[%s11100_s5 + $0x834] ss:$36 sps:$4 sm:$0xff]  }
 0x193   : > { %3470 = vmatpush1.bf16.msra.mxu0 %v7900_v61  ;;  %3556 = vmatpush1.bf16.msra.mxu1 %v7903_v62  ;;  %v7972_v53 = vld [vmem:[%s11100_s5 + $0x7e0] ss:$36 sps:$4 sm:$0xff]   ;;  %v7978_v58 = vld [vmem:[%s11100_s5 + $0x828] ss:$36 sps:$4 sm:$0xff]   ;;  %v7981_v60 = vld [vmem:[%s11100_s5 + $0x830] ss:$36 sps:$4 sm:$0xff]  }
 0x194   : > { %3501 = vmatprep.mubr.bf16.mxu0 %v9383_v59  ;;  %3587 = vmatprep.mubr.bf16.mxu1 %v9383_v59  ;;  %v7986_v61 = vld [vmem:[%s11100_s5 + $0x874] ss:$36 sps:$4 sm:$0xff]   ;;  %v7989_v62 = vld [vmem:[%s11100_s5 + $0x87c] ss:$36 sps:$4 sm:$0xff]  }
 0x195   : > { %3471 = vmatprep.subr.bf16.mxu0 %v7908_v1  ;;  %3557 = vmatprep.subr.bf16.mxu1 %v7911_v2  ;;  %v7984_v1 = vld [vmem:[%s11100_s5 + $0x870] ss:$36 sps:$4 sm:$0xff]   ;;  %v7987_v2 = vld [vmem:[%s11100_s5 + $0x878] ss:$36 sps:$4 sm:$0xff]  }
 0x197   : > { %3472 = vmatpush1.bf16.msra.mxu0 %v7906_v3  ;;  %3558 = vmatpush1.bf16.msra.mxu1 %v7909_v4  ;;  %v7992_v3 = vld [vmem:[%s11100_s5 + $0x8bc] ss:$36 sps:$4 sm:$0xff]   ;;  %v7995_v4 = vld [vmem:[%s11100_s5 + $0x8c4] ss:$36 sps:$4 sm:$0xff]  }
 0x198   : > { %3473 = vmatprep.subr.bf16.mxu0 %v7914_v5  ;;  %3559 = vmatprep.subr.bf16.mxu1 %v7917_v6  ;;  %v7990_v5 = vld [vmem:[%s11100_s5 + $0x8b8] ss:$36 sps:$4 sm:$0xff]   ;;  %v7993_v6 = vld [vmem:[%s11100_s5 + $0x8c0] ss:$36 sps:$4 sm:$0xff]  }
 0x19b   : > { %3474 = vmatpush1.bf16.msra.mxu0 %v7912_v7  ;;  %3560 = vmatpush1.bf16.msra.mxu1 %v7915_v9  ;;  %v7998_v7 = vld [vmem:[%s11100_s5 + $0x14] ss:$36 sps:$4 sm:$0xff]   ;;  %v8001_v9 = vld [vmem:[%s11100_s5 + $0x1c] ss:$36 sps:$4 sm:$0xff]  }
 0x19c   : > { %3475 = vmatprep.subr.bf16.mxu0 %v7920_v10  ;;  %3561 = vmatprep.subr.bf16.mxu1 %v7923_v11  ;;  %v7996_v10 = vld [vmem:[%s11100_s5 + $0x10] ss:$36 sps:$4 sm:$0xff]   ;;  %v7999_v11 = vld [vmem:[%s11100_s5 + $0x18] ss:$36 sps:$4 sm:$0xff]  }
 0x19f   : > { %3476 = vmatpush1.bf16.msra.mxu0 %v7918_v12  ;;  %3562 = vmatpush1.bf16.msra.mxu1 %v7921_v13  ;;  %v8004_v12 = vld [vmem:[%s11100_s5 + $0x5c] ss:$36 sps:$4 sm:$0xff]   ;;  %v8007_v13 = vld [vmem:[%s11100_s5 + $0x64] ss:$36 sps:$4 sm:$0xff]  }
 0x1a0   : > { %3477 = vmatprep.subr.bf16.mxu0 %v7926_v14  ;;  %3563 = vmatprep.subr.bf16.mxu1 %v7929_v15  ;;  %v8002_v14 = vld [vmem:[%s11100_s5 + $0x58] ss:$36 sps:$4 sm:$0xff]   ;;  %v8005_v15 = vld [vmem:[%s11100_s5 + $0x60] ss:$36 sps:$4 sm:$0xff]  }
 0x1a3   : > { %3478 = vmatpush1.bf16.msra.mxu0 %v7924_v16  ;;  %3564 = vmatpush1.bf16.msra.mxu1 %v7927_v17  ;;  %v8010_v16 = vld [vmem:[%s11100_s5 + $0xa4] ss:$36 sps:$4 sm:$0xff]   ;;  %v8013_v17 = vld [vmem:[%s11100_s5 + $0xac] ss:$36 sps:$4 sm:$0xff]  }
 0x1a4   : > { %3479 = vmatprep.subr.bf16.mxu0 %v7932_v18  ;;  %3565 = vmatprep.subr.bf16.mxu1 %v7935_v22  ;;  %v8008_v18 = vld [vmem:[%s11100_s5 + $0xa0] ss:$36 sps:$4 sm:$0xff]   ;;  %v8011_v22 = vld [vmem:[%s11100_s5 + $0xa8] ss:$36 sps:$4 sm:$0xff]  }
 0x1a7   : > { %3480 = vmatpush1.bf16.msra.mxu0 %v7930_v25  ;;  %3566 = vmatpush1.bf16.msra.mxu1 %v7933_v26  ;;  %v8016_v25 = vld [vmem:[%s11100_s5 + $0xec] ss:$36 sps:$4 sm:$0xff]   ;;  %v8019_v26 = vld [vmem:[%s11100_s5 + $0xf4] ss:$36 sps:$4 sm:$0xff]  }
 0x1a8   : > { %3481 = vmatprep.subr.bf16.mxu0 %v7938_v27  ;;  %3567 = vmatprep.subr.bf16.mxu1 %v7941_v28  ;;  %v8014_v27 = vld [vmem:[%s11100_s5 + $0xe8] ss:$36 sps:$4 sm:$0xff]   ;;  %v8017_v28 = vld [vmem:[%s11100_s5 + $0xf0] ss:$36 sps:$4 sm:$0xff]  }
 0x1ab   : > { %3482 = vmatpush1.bf16.msra.mxu0 %v7936_v29  ;;  %3568 = vmatpush1.bf16.msra.mxu1 %v7939_v30  ;;  %v8022_v29 = vld [vmem:[%s11100_s5 + $0x134] ss:$36 sps:$4 sm:$0xff]   ;;  %v8025_v30 = vld [vmem:[%s11100_s5 + $0x13c] ss:$36 sps:$4 sm:$0xff]  }
 0x1ac   : > { %3483 = vmatprep.subr.bf16.mxu0 %v7944_v31  ;;  %3569 = vmatprep.subr.bf16.mxu1 %v7947_v32  ;;  %v8020_v31 = vld [vmem:[%s11100_s5 + $0x130] ss:$36 sps:$4 sm:$0xff]   ;;  %v8023_v32 = vld [vmem:[%s11100_s5 + $0x138] ss:$36 sps:$4 sm:$0xff]  }
 0x1af   : > { %3484 = vmatpush1.bf16.msra.mxu0 %v7942_v33  ;;  %3570 = vmatpush1.bf16.msra.mxu1 %v7945_v34  ;;  %v8028_v33 = vld [vmem:[%s11100_s5 + $0x17c] ss:$36 sps:$4 sm:$0xff]   ;;  %v8031_v34 = vld [vmem:[%s11100_s5 + $0x184] ss:$36 sps:$4 sm:$0xff]  }
 0x1b0   : > { %3485 = vmatprep.subr.bf16.mxu0 %v7950_v35  ;;  %3571 = vmatprep.subr.bf16.mxu1 %v7953_v36  ;;  %v8026_v35 = vld [vmem:[%s11100_s5 + $0x178] ss:$36 sps:$4 sm:$0xff]   ;;  %v8029_v36 = vld [vmem:[%s11100_s5 + $0x180] ss:$36 sps:$4 sm:$0xff]  }
 0x1b3   : > { %3486 = vmatpush1.bf16.msra.mxu0 %v7948_v37  ;;  %3572 = vmatpush1.bf16.msra.mxu1 %v7951_v38  ;;  %v8034_v37 = vld [vmem:[%s11100_s5 + $0x1c4] ss:$36 sps:$4 sm:$0xff]   ;;  %v8037_v38 = vld [vmem:[%s11100_s5 + $0x1cc] ss:$36 sps:$4 sm:$0xff]  }
 0x1b4   : > { %3487 = vmatprep.subr.bf16.mxu0 %v7956_v39  ;;  %3573 = vmatprep.subr.bf16.mxu1 %v7959_v40  ;;  %v8032_v39 = vld [vmem:[%s11100_s5 + $0x1c0] ss:$36 sps:$4 sm:$0xff]   ;;  %v8035_v40 = vld [vmem:[%s11100_s5 + $0x1c8] ss:$36 sps:$4 sm:$0xff]  }
 0x1b7   : > { %3488 = vmatpush1.bf16.msra.mxu0 %v7954_v41  ;;  %3574 = vmatpush1.bf16.msra.mxu1 %v7957_v42  ;;  %v8040_v41 = vld [vmem:[%s11100_s5 + $0x20c] ss:$36 sps:$4 sm:$0xff]   ;;  %v8043_v42 = vld [vmem:[%s11100_s5 + $0x214] ss:$36 sps:$4 sm:$0xff]  }
 0x1b8   : > { %3489 = vmatprep.subr.bf16.mxu0 %v7962_v43  ;;  %3575 = vmatprep.subr.bf16.mxu1 %v7965_v44  ;;  %v8038_v43 = vld [vmem:[%s11100_s5 + $0x208] ss:$36 sps:$4 sm:$0xff]   ;;  %v8041_v44 = vld [vmem:[%s11100_s5 + $0x210] ss:$36 sps:$4 sm:$0xff]  }
 0x1bb   : > { %3490 = vmatpush1.bf16.msra.mxu0 %v7960_v45  ;;  %3576 = vmatpush1.bf16.msra.mxu1 %v7963_v46  ;;  %v8046_v45 = vld [vmem:[%s11100_s5 + $0x254] ss:$36 sps:$4 sm:$0xff]   ;;  %v8049_v46 = vld [vmem:[%s11100_s5 + $0x25c] ss:$36 sps:$4 sm:$0xff]  }
 0x1bc   : > { %3491 = vmatprep.subr.bf16.mxu0 %v7968_v47  ;;  %3577 = vmatprep.subr.bf16.mxu1 %v7971_v48  ;;  %v8044_v47 = vld [vmem:[%s11100_s5 + $0x250] ss:$36 sps:$4 sm:$0xff]   ;;  %v8047_v48 = vld [vmem:[%s11100_s5 + $0x258] ss:$36 sps:$4 sm:$0xff]  }
 0x1bf   : > { %3492 = vmatpush1.bf16.msra.mxu0 %v7966_v49  ;;  %3578 = vmatpush1.bf16.msra.mxu1 %v7969_v50  ;;  %v8052_v49 = vld [vmem:[%s11100_s5 + $0x29c] ss:$36 sps:$4 sm:$0xff]   ;;  %v8055_v50 = vld [vmem:[%s11100_s5 + $0x2a4] ss:$36 sps:$4 sm:$0xff]  }
 0x1c0   : > { %3493 = vmatprep.subr.bf16.mxu0 %v7974_v51  ;;  %3579 = vmatprep.subr.bf16.mxu1 %v7977_v52  ;;  %v8050_v51 = vld [vmem:[%s11100_s5 + $0x298] ss:$36 sps:$4 sm:$0xff]   ;;  %v8053_v52 = vld [vmem:[%s11100_s5 + $0x2a0] ss:$36 sps:$4 sm:$0xff]  }
 0x1c3   : > { %3494 = vmatpush1.bf16.msra.mxu0 %v7972_v53  ;;  %3580 = vmatpush1.bf16.msra.mxu1 %v7975_v54  ;;  %v8058_v53 = vld [vmem:[%s11100_s5 + $0x2e4] ss:$36 sps:$4 sm:$0xff]   ;;  %v8061_v54 = vld [vmem:[%s11100_s5 + $0x2ec] ss:$36 sps:$4 sm:$0xff]  }
 0x1c4   : > { %3495 = vmatprep.subr.bf16.mxu0 %v7980_v55  ;;  %3581 = vmatprep.subr.bf16.mxu1 %v7983_v57  ;;  %v8056_v55 = vld [vmem:[%s11100_s5 + $0x2e0] ss:$36 sps:$4 sm:$0xff]   ;;  %v8059_v57 = vld [vmem:[%s11100_s5 + $0x2e8] ss:$36 sps:$4 sm:$0xff]  }
 0x1c7   : > { %3496 = vmatpush1.bf16.msra.mxu0 %v7978_v58  ;;  %3582 = vmatpush1.bf16.msra.mxu1 %v7981_v60  ;;  %v8064_v58 = vld [vmem:[%s11100_s5 + $0x32c] ss:$36 sps:$4 sm:$0xff]   ;;  %v8067_v60 = vld [vmem:[%s11100_s5 + $0x334] ss:$36 sps:$4 sm:$0xff]  }
 0x1c8   : > { %3497 = vmatprep.subr.bf16.mxu0 %v7986_v61  ;;  %3583 = vmatprep.subr.bf16.mxu1 %v7989_v62  ;;  %v8062_v61 = vld [vmem:[%s11100_s5 + $0x328] ss:$36 sps:$4 sm:$0xff]   ;;  %v8065_v62 = vld [vmem:[%s11100_s5 + $0x330] ss:$36 sps:$4 sm:$0xff]  }
 0x1cb   : > { %3498 = vmatpush1.bf16.msra.mxu0 %v7984_v1  ;;  %3584 = vmatpush1.bf16.msra.mxu1 %v7987_v2  ;;  %v8070_v1 = vld [vmem:[%s11100_s5 + $0x374] ss:$36 sps:$4 sm:$0xff]   ;;  %v8073_v2 = vld [vmem:[%s11100_s5 + $0x37c] ss:$36 sps:$4 sm:$0xff]  }
 0x1cc   : > { %3499 = vmatprep.subr.bf16.mxu0 %v7992_v3  ;;  %3585 = vmatprep.subr.bf16.mxu1 %v7995_v4  ;;  %v8068_v3 = vld [vmem:[%s11100_s5 + $0x370] ss:$36 sps:$4 sm:$0xff]   ;;  %v8071_v4 = vld [vmem:[%s11100_s5 + $0x378] ss:$36 sps:$4 sm:$0xff]  }
 0x1cf   : > { %3500 = vmatpush1.bf16.msra.mxu0 %v7990_v5  ;;  %3586 = vmatpush1.bf16.msra.mxu1 %v7993_v6  ;;  %v8076_v5 = vld [vmem:[%s11100_s5 + $0x3bc] ss:$36 sps:$4 sm:$0xff]   ;;  %v8079_v6 = vld [vmem:[%s11100_s5 + $0x3c4] ss:$36 sps:$4 sm:$0xff]  }
 0x1d0   : > { %3598 = vmatprep.subr.bf16.mxu0 %v7998_v7  ;;  %3684 = vmatprep.subr.bf16.mxu1 %v8001_v9  ;;  %v8074_v7 = vld [vmem:[%s11100_s5 + $0x3b8] ss:$36 sps:$4 sm:$0xff]   ;;  %v8077_v9 = vld [vmem:[%s11100_s5 + $0x3c0] ss:$36 sps:$4 sm:$0xff]  }
 0x1d2   : > { %3502 = vmatmul.mubr.bf16.vlgmr.msra.gmra.mrb[4].mxu0 %v9381_v56  ;;  %3588 = vmatmul.mubr.bf16.vlgmr.msra.gmra.mrb[4].mxu1 %v9381_v56 }
 0x1d3   : > { %3599 = vmatpush1.bf16.msra.mxu0 %v7996_v10  ;;  %3630 = vmatprep.mubr.bf16.mxu0 %v9393_v0  ;;  %v8082_v10 = vld [vmem:[%s11100_s5 + $0x404] ss:$36 sps:$4 sm:$0xff]  }
 0x1d4   : > { %3685 = vmatpush1.bf16.msra.mxu1 %v7999_v11  ;;  %3716 = vmatprep.mubr.bf16.mxu1 %v9393_v0  ;;  %v8085_v11 = vld [vmem:[%s11100_s5 + $0x40c] ss:$36 sps:$4 sm:$0xff]  }
 0x1d5   : > { %3600 = vmatprep.subr.bf16.mxu0 %v8004_v12  ;;  %3686 = vmatprep.subr.bf16.mxu1 %v8007_v13  ;;  %v8080_v12 = vld [vmem:[%s11100_s5 + $0x400] ss:$36 sps:$4 sm:$0xff]   ;;  %v8083_v13 = vld [vmem:[%s11100_s5 + $0x408] ss:$36 sps:$4 sm:$0xff]  }
 0x1d7   : > { %3601 = vmatpush1.bf16.msra.mxu0 %v8002_v14  ;;  %v8088_v14 = vld [vmem:[%s11100_s5 + $0x44c] ss:$36 sps:$4 sm:$0xff]  }
 0x1d8   : > { %3687 = vmatpush1.bf16.msra.mxu1 %v8005_v15  ;;  %3602 = vmatprep.subr.bf16.mxu0 %v8010_v16  ;;  %v8091_v15 = vld [vmem:[%s11100_s5 + $0x454] ss:$36 sps:$4 sm:$0xff]   ;;  %v8086_v16 = vld [vmem:[%s11100_s5 + $0x448] ss:$36 sps:$4 sm:$0xff]  }
 0x1d9   : > { %3688 = vmatprep.subr.bf16.mxu1 %v8013_v17  ;;  %v8089_v17 = vld [vmem:[%s11100_s5 + $0x450] ss:$36 sps:$4 sm:$0xff]  }
 0x1db   : > { %3603 = vmatpush1.bf16.msra.mxu0 %v8008_v18  ;;  %v8094_v18 = vld [vmem:[%s11100_s5 + $0x494] ss:$36 sps:$4 sm:$0xff]  }
 0x1dc   : > { %3689 = vmatpush1.bf16.msra.mxu1 %v8011_v22  ;;  %3604 = vmatprep.subr.bf16.mxu0 %v8016_v25  ;;  %v8097_v22 = vld [vmem:[%s11100_s5 + $0x49c] ss:$36 sps:$4 sm:$0xff]   ;;  %v8092_v25 = vld [vmem:[%s11100_s5 + $0x490] ss:$36 sps:$4 sm:$0xff]  }
 0x1dd   : > { %3690 = vmatprep.subr.bf16.mxu1 %v8019_v26  ;;  %v8095_v26 = vld [vmem:[%s11100_s5 + $0x498] ss:$36 sps:$4 sm:$0xff]  }
 0x1df   : > { %3605 = vmatpush1.bf16.msra.mxu0 %v8014_v27  ;;  %v8100_v27 = vld [vmem:[%s11100_s5 + $0x4dc] ss:$36 sps:$4 sm:$0xff]  }
 0x1e0   : > { %3691 = vmatpush1.bf16.msra.mxu1 %v8017_v28  ;;  %3606 = vmatprep.subr.bf16.mxu0 %v8022_v29  ;;  %v8103_v28 = vld [vmem:[%s11100_s5 + $0x4e4] ss:$36 sps:$4 sm:$0xff]   ;;  %v8098_v29 = vld [vmem:[%s11100_s5 + $0x4d8] ss:$36 sps:$4 sm:$0xff]  }
 0x1e1   : > { %3692 = vmatprep.subr.bf16.mxu1 %v8025_v30  ;;  %v8101_v30 = vld [vmem:[%s11100_s5 + $0x4e0] ss:$36 sps:$4 sm:$0xff]  }
 0x1e3   : > { %3607 = vmatpush1.bf16.msra.mxu0 %v8020_v31  ;;  %v8106_v31 = vld [vmem:[%s11100_s5 + $0x524] ss:$36 sps:$4 sm:$0xff]  }
 0x1e4   : > { %3693 = vmatpush1.bf16.msra.mxu1 %v8023_v32  ;;  %3608 = vmatprep.subr.bf16.mxu0 %v8028_v33  ;;  %v8109_v32 = vld [vmem:[%s11100_s5 + $0x52c] ss:$36 sps:$4 sm:$0xff]   ;;  %v8104_v33 = vld [vmem:[%s11100_s5 + $0x520] ss:$36 sps:$4 sm:$0xff]  }
 0x1e5   : > { %3694 = vmatprep.subr.bf16.mxu1 %v8031_v34  ;;  %v8107_v34 = vld [vmem:[%s11100_s5 + $0x528] ss:$36 sps:$4 sm:$0xff]  }
 0x1e7   : > { %3609 = vmatpush1.bf16.msra.mxu0 %v8026_v35  ;;  %v8112_v35 = vld [vmem:[%s11100_s5 + $0x56c] ss:$36 sps:$4 sm:$0xff]  }
 0x1e8   : > { %3695 = vmatpush1.bf16.msra.mxu1 %v8029_v36  ;;  %3610 = vmatprep.subr.bf16.mxu0 %v8034_v37  ;;  %v8115_v36 = vld [vmem:[%s11100_s5 + $0x574] ss:$36 sps:$4 sm:$0xff]   ;;  %v8110_v37 = vld [vmem:[%s11100_s5 + $0x568] ss:$36 sps:$4 sm:$0xff]  }
 0x1e9   : > { %3696 = vmatprep.subr.bf16.mxu1 %v8037_v38  ;;  %v8113_v38 = vld [vmem:[%s11100_s5 + $0x570] ss:$36 sps:$4 sm:$0xff]  }
 0x1eb   : > { %3611 = vmatpush1.bf16.msra.mxu0 %v8032_v39  ;;  %v8118_v39 = vld [vmem:[%s11100_s5 + $0x5b4] ss:$36 sps:$4 sm:$0xff]  }
 0x1ec   : > { %3697 = vmatpush1.bf16.msra.mxu1 %v8035_v40  ;;  %3612 = vmatprep.subr.bf16.mxu0 %v8040_v41  ;;  %v8121_v40 = vld [vmem:[%s11100_s5 + $0x5bc] ss:$36 sps:$4 sm:$0xff]   ;;  %v8116_v41 = vld [vmem:[%s11100_s5 + $0x5b0] ss:$36 sps:$4 sm:$0xff]  }
 0x1ed   : > { %3698 = vmatprep.subr.bf16.mxu1 %v8043_v42  ;;  %v8119_v42 = vld [vmem:[%s11100_s5 + $0x5b8] ss:$36 sps:$4 sm:$0xff]  }
 0x1ef   : > { %3613 = vmatpush1.bf16.msra.mxu0 %v8038_v43  ;;  %v8124_v43 = vld [vmem:[%s11100_s5 + $0x5fc] ss:$36 sps:$4 sm:$0xff]  }
 0x1f0   : > { %3699 = vmatpush1.bf16.msra.mxu1 %v8041_v44  ;;  %3614 = vmatprep.subr.bf16.mxu0 %v8046_v45  ;;  %v8127_v44 = vld [vmem:[%s11100_s5 + $0x604] ss:$36 sps:$4 sm:$0xff]   ;;  %v8122_v45 = vld [vmem:[%s11100_s5 + $0x5f8] ss:$36 sps:$4 sm:$0xff]  }
 0x1f1   : > { %3700 = vmatprep.subr.bf16.mxu1 %v8049_v46  ;;  %v8125_v46 = vld [vmem:[%s11100_s5 + $0x600] ss:$36 sps:$4 sm:$0xff]  }
 0x1f3   : > { %3615 = vmatpush1.bf16.msra.mxu0 %v8044_v47  ;;  %v8130_v47 = vld [vmem:[%s11100_s5 + $0x644] ss:$36 sps:$4 sm:$0xff]  }
 0x1f4   : > { %3701 = vmatpush1.bf16.msra.mxu1 %v8047_v48  ;;  %3616 = vmatprep.subr.bf16.mxu0 %v8052_v49  ;;  %v8133_v48 = vld [vmem:[%s11100_s5 + $0x64c] ss:$36 sps:$4 sm:$0xff]   ;;  %v8128_v49 = vld [vmem:[%s11100_s5 + $0x640] ss:$36 sps:$4 sm:$0xff]  }
 0x1f5   : > { %3702 = vmatprep.subr.bf16.mxu1 %v8055_v50  ;;  %v8131_v50 = vld [vmem:[%s11100_s5 + $0x648] ss:$36 sps:$4 sm:$0xff]  }
 0x1f7   : > { %3617 = vmatpush1.bf16.msra.mxu0 %v8050_v51  ;;  %v8136_v51 = vld [vmem:[%s11100_s5 + $0x68c] ss:$36 sps:$4 sm:$0xff]  }
 0x1f8   : > { %3703 = vmatpush1.bf16.msra.mxu1 %v8053_v52  ;;  %3618 = vmatprep.subr.bf16.mxu0 %v8058_v53  ;;  %v8139_v52 = vld [vmem:[%s11100_s5 + $0x694] ss:$36 sps:$4 sm:$0xff]   ;;  %v8134_v53 = vld [vmem:[%s11100_s5 + $0x688] ss:$36 sps:$4 sm:$0xff]  }
 0x1f9   : > { %3704 = vmatprep.subr.bf16.mxu1 %v8061_v54  ;;  %v8137_v54 = vld [vmem:[%s11100_s5 + $0x690] ss:$36 sps:$4 sm:$0xff]  }
 0x1fb   : > { %3619 = vmatpush1.bf16.msra.mxu0 %v8056_v55  ;;  %v8142_v55 = vld [vmem:[%s11100_s5 + $0x6d4] ss:$36 sps:$4 sm:$0xff]  }
 0x1fc   : > { %3705 = vmatpush1.bf16.msra.mxu1 %v8059_v57  ;;  %3620 = vmatprep.subr.bf16.mxu0 %v8064_v58  ;;  %v8145_v57 = vld [vmem:[%s11100_s5 + $0x6dc] ss:$36 sps:$4 sm:$0xff]   ;;  %v8140_v58 = vld [vmem:[%s11100_s5 + $0x6d0] ss:$36 sps:$4 sm:$0xff]  }
 0x1fd   : > { %3706 = vmatprep.subr.bf16.mxu1 %v8067_v60  ;;  %v8143_v60 = vld [vmem:[%s11100_s5 + $0x6d8] ss:$36 sps:$4 sm:$0xff]  }
 0x1ff   : > { %3621 = vmatpush1.bf16.msra.mxu0 %v8062_v61  ;;  %v8148_v61 = vld [vmem:[%s11100_s5 + $0x71c] ss:$36 sps:$4 sm:$0xff]  }
 0x200   : > { %3707 = vmatpush1.bf16.msra.mxu1 %v8065_v62  ;;  %3622 = vmatprep.subr.bf16.mxu0 %v8070_v1  ;;  %v8151_v62 = vld [vmem:[%s11100_s5 + $0x724] ss:$36 sps:$4 sm:$0xff]   ;;  %v8146_v1 = vld [vmem:[%s11100_s5 + $0x718] ss:$36 sps:$4 sm:$0xff]  }
 0x201   : > { %3708 = vmatprep.subr.bf16.mxu1 %v8073_v2  ;;  %v8149_v2 = vld [vmem:[%s11100_s5 + $0x720] ss:$36 sps:$4 sm:$0xff]  }
 0x203   : > { %3623 = vmatpush1.bf16.msra.mxu0 %v8068_v3  ;;  %v8154_v3 = vld [vmem:[%s11100_s5 + $0x764] ss:$36 sps:$4 sm:$0xff]  }
 0x204   : > { %3709 = vmatpush1.bf16.msra.mxu1 %v8071_v4  ;;  %3624 = vmatprep.subr.bf16.mxu0 %v8076_v5  ;;  %v8157_v4 = vld [vmem:[%s11100_s5 + $0x76c] ss:$36 sps:$4 sm:$0xff]   ;;  %v8152_v5 = vld [vmem:[%s11100_s5 + $0x760] ss:$36 sps:$4 sm:$0xff]  }
 0x205   : > { %3710 = vmatprep.subr.bf16.mxu1 %v8079_v6  ;;  %v8155_v6 = vld [vmem:[%s11100_s5 + $0x768] ss:$36 sps:$4 sm:$0xff]  }
 0x207   : > { %3625 = vmatpush1.bf16.msra.mxu0 %v8074_v7  ;;  %v8160_v7 = vld [vmem:[%s11100_s5 + $0x7ac] ss:$36 sps:$4 sm:$0xff]  }
 0x208   : > { %3711 = vmatpush1.bf16.msra.mxu1 %v8077_v9  ;;  %3626 = vmatprep.subr.bf16.mxu0 %v8082_v10  ;;  %v8163_v9 = vld [vmem:[%s11100_s5 + $0x7b4] ss:$36 sps:$4 sm:$0xff]   ;;  %v8158_v10 = vld [vmem:[%s11100_s5 + $0x7a8] ss:$36 sps:$4 sm:$0xff]  }
 0x209   : > { %3712 = vmatprep.subr.bf16.mxu1 %v8085_v11  ;;  %v8161_v11 = vld [vmem:[%s11100_s5 + $0x7b0] ss:$36 sps:$4 sm:$0xff]  }
 0x20b   : > { %3627 = vmatpush1.bf16.msra.mxu0 %v8080_v12  ;;  %v8166_v12 = vld [vmem:[%s11100_s5 + $0x7f4] ss:$36 sps:$4 sm:$0xff]  }
 0x20c   : > { %3713 = vmatpush1.bf16.msra.mxu1 %v8083_v13  ;;  %3628 = vmatprep.subr.bf16.mxu0 %v8088_v14  ;;  %v8169_v13 = vld [vmem:[%s11100_s5 + $0x7fc] ss:$36 sps:$4 sm:$0xff]   ;;  %v8164_v14 = vld [vmem:[%s11100_s5 + $0x7f0] ss:$36 sps:$4 sm:$0xff]  }
 0x20d   : > { %3714 = vmatprep.subr.bf16.mxu1 %v8091_v15  ;;  %v8167_v15 = vld [vmem:[%s11100_s5 + $0x7f8] ss:$36 sps:$4 sm:$0xff]  }
 0x20f   : > { %3629 = vmatpush1.bf16.msra.mxu0 %v8086_v16  ;;  %v8172_v16 = vld [vmem:[%s11100_s5 + $0x83c] ss:$36 sps:$4 sm:$0xff]  }
 0x210   : > { %3715 = vmatpush1.bf16.msra.mxu1 %v8089_v17  ;;  %3641 = vmatprep.subr.bf16.mxu0 %v8094_v18  ;;  %v8175_v17 = vld [vmem:[%s11100_s5 + $0x844] ss:$36 sps:$4 sm:$0xff]   ;;  %v8170_v18 = vld [vmem:[%s11100_s5 + $0x838] ss:$36 sps:$4 sm:$0xff]  }
 0x211   : > { %3727 = vmatprep.subr.bf16.mxu1 %v8097_v22  ;;  %v8173_v22 = vld [vmem:[%s11100_s5 + $0x840] ss:$36 sps:$4 sm:$0xff]  }
 0x212   : > { %3631 = vmatmul.mubr.bf16.vlgmr.msra.gmra.mrb[8].mxu0 %v9391_v63 }
 0x213   : > { %3717 = vmatmul.mubr.bf16.vlgmr.msra.gmra.mrb[8].mxu1 %v9391_v63  ;;  %3642 = vmatpush1.bf16.msra.mxu0 %v8092_v25  ;;  %v8178_v25 = vld [vmem:[%s11100_s5 + $0x884] ss:$36 sps:$4 sm:$0xff]  }
 0x214   : > { %3673 = vmatprep.mubr.bf16.mxu0 %v9383_v59  ;;  %3728 = vmatpush1.bf16.msra.mxu1 %v8095_v26  ;;  %v8181_v26 = vld [vmem:[%s11100_s5 + $0x88c] ss:$36 sps:$4 sm:$0xff]  }
 0x215   : > { %3759 = vmatprep.mubr.bf16.mxu1 %v9383_v59  ;;  %3643 = vmatprep.subr.bf16.mxu0 %v8100_v27  ;;  %v8176_v27 = vld [vmem:[%s11100_s5 + $0x880] ss:$36 sps:$4 sm:$0xff]  }
 0x216   : > { %3729 = vmatprep.subr.bf16.mxu1 %v8103_v28  ;;  %v8179_v28 = vld [vmem:[%s11100_s5 + $0x888] ss:$36 sps:$4 sm:$0xff]  }
 0x217   : > { %3644 = vmatpush1.bf16.msra.mxu0 %v8098_v29  ;;  %v8184_v29 = vld [vmem:[%s11100_s5 + $0x8cc] ss:$36 sps:$4 sm:$0xff]  }
 0x218   : > { %3730 = vmatpush1.bf16.msra.mxu1 %v8101_v30  ;;  %3645 = vmatprep.subr.bf16.mxu0 %v8106_v31  ;;  %v8187_v30 = vld [vmem:[%s11100_s5 + $0x8d4] ss:$36 sps:$4 sm:$0xff]   ;;  %v8182_v31 = vld [vmem:[%s11100_s5 + $0x8c8] ss:$36 sps:$4 sm:$0xff]  }
 0x219   : > { %3731 = vmatprep.subr.bf16.mxu1 %v8109_v32  ;;  %v8185_v32 = vld [vmem:[%s11100_s5 + $0x8d0] ss:$36 sps:$4 sm:$0xff]  }
 0x21b   : > { %3646 = vmatpush1.bf16.msra.mxu0 %v8104_v33  ;;  %v8188_v33 = vld [vmem:[%s11100_s5 + $0x260] ss:$36 sps:$4 sm:$0xff]  }
 0x21c   : > { %3732 = vmatpush1.bf16.msra.mxu1 %v8107_v34  ;;  %3647 = vmatprep.subr.bf16.mxu0 %v8112_v35  ;;  %v8189_v34 = vld [vmem:[%s11100_s5 + $0x6e0] ss:$36 sps:$4 sm:$0xff]  }
 0x21d   : > { %3733 = vmatprep.subr.bf16.mxu1 %v8115_v36  ;;  %v8190_v35 = vld [vmem:[%s11100_s5 + $0x20] ss:$36 sps:$4 sm:$0xff]  }
 0x21e   : > { %v8191_v36 = vld [vmem:[%s11100_s5 + $0x4a0] ss:$36 sps:$4 sm:$0xff]  }
 0x21f   : > { %3648 = vmatpush1.bf16.msra.mxu0 %v8110_v37  ;;  %v8192_v37 = vld [vmem:[%s11100_s5 + $0x2a8] ss:$36 sps:$4 sm:$0xff]  }
 0x220   : > { %3734 = vmatpush1.bf16.msra.mxu1 %v8113_v38  ;;  %3649 = vmatprep.subr.bf16.mxu0 %v8118_v39  ;;  %v8193_v38 = vld [vmem:[%s11100_s5 + $0x728] ss:$36 sps:$4 sm:$0xff]  }
 0x221   : > { %3735 = vmatprep.subr.bf16.mxu1 %v8121_v40  ;;  %v8194_v39 = vld [vmem:[%s11100_s5 + $0x68] ss:$36 sps:$4 sm:$0xff]  }
 0x222   : > { %v8195_v40 = vld [vmem:[%s11100_s5 + $0x4e8] ss:$36 sps:$4 sm:$0xff]  }
 0x223   : > { %3650 = vmatpush1.bf16.msra.mxu0 %v8116_v41  ;;  %v8196_v41 = vld [vmem:[%s11100_s5 + $0x2f0] ss:$36 sps:$4 sm:$0xff]  }
 0x224   : > { %3736 = vmatpush1.bf16.msra.mxu1 %v8119_v42  ;;  %3651 = vmatprep.subr.bf16.mxu0 %v8124_v43  ;;  %v8197_v42 = vld [vmem:[%s11100_s5 + $0x770] ss:$36 sps:$4 sm:$0xff]  }
 0x225   : > { %3737 = vmatprep.subr.bf16.mxu1 %v8127_v44  ;;  %v8199_v43 = vld [vmem:[%s11100_s5 + $0x530] ss:$36 sps:$4 sm:$0xff]   ;;  %v8201_v44 = vld [vmem:[%s11100_s5 + $0x7b8] ss:$36 sps:$4 sm:$0xff]  }
 0x227   : > { %3652 = vmatpush1.bf16.msra.mxu0 %v8122_v45  ;;  %v8202_v45 = vld [vmem:[%s11100_s5 + $0xf8] ss:$36 sps:$4 sm:$0xff]  }
 0x228   : > { %3738 = vmatpush1.bf16.msra.mxu1 %v8125_v46  ;;  %3653 = vmatprep.subr.bf16.mxu0 %v8130_v47  ;;  %v8203_v46 = vld [vmem:[%s11100_s5 + $0x578] ss:$36 sps:$4 sm:$0xff]   ;;  %v8204_v47 = vld [vmem:[%s11100_s5 + $0x380] ss:$36 sps:$4 sm:$0xff]  }
 0x229   : > { %3739 = vmatprep.subr.bf16.mxu1 %v8133_v48  ;;  %v8205_v48 = vld [vmem:[%s11100_s5 + $0x800] ss:$36 sps:$4 sm:$0xff]  }
 0x22b   : > { %3654 = vmatpush1.bf16.msra.mxu0 %v8128_v49  ;;  %v8206_v49 = vld [vmem:[%s11100_s5 + $0x140] ss:$36 sps:$4 sm:$0xff]  }
 0x22c   : > { %3740 = vmatpush1.bf16.msra.mxu1 %v8131_v50  ;;  %3655 = vmatprep.subr.bf16.mxu0 %v8136_v51  ;;  %v8207_v50 = vld [vmem:[%s11100_s5 + $0x5c0] ss:$36 sps:$4 sm:$0xff]   ;;  %v8208_v51 = vld [vmem:[%s11100_s5 + $0x3c8] ss:$36 sps:$4 sm:$0xff]  }
 0x22d   : > { %3741 = vmatprep.subr.bf16.mxu1 %v8139_v52  ;;  %v8209_v52 = vld [vmem:[%s11100_s5 + $0x848] ss:$36 sps:$4 sm:$0xff]  }
 0x22f   : > { %3656 = vmatpush1.bf16.msra.mxu0 %v8134_v53  ;;  %v8210_v53 = vld [vmem:[%s11100_s5 + $0x188] ss:$36 sps:$4 sm:$0xff]  }
 0x230   : > { %3742 = vmatpush1.bf16.msra.mxu1 %v8137_v54  ;;  %3657 = vmatprep.subr.bf16.mxu0 %v8142_v55  ;;  %v8211_v54 = vld [vmem:[%s11100_s5 + $0x608] ss:$36 sps:$4 sm:$0xff]   ;;  %v8212_v55 = vld [vmem:[%s11100_s5 + $0x410] ss:$36 sps:$4 sm:$0xff]  }
 0x231   : > { %3743 = vmatprep.subr.bf16.mxu1 %v8145_v57  ;;  %v8213_v57 = vld [vmem:[%s11100_s5 + $0x890] ss:$36 sps:$4 sm:$0xff]  }
 0x233   : > { %3658 = vmatpush1.bf16.msra.mxu0 %v8140_v58  ;;  %v8214_v58 = vld [vmem:[%s11100_s5 + $0x1d0] ss:$36 sps:$4 sm:$0xff]  }
 0x234   : > { %3744 = vmatpush1.bf16.msra.mxu1 %v8143_v60  ;;  %3659 = vmatprep.subr.bf16.mxu0 %v8148_v61  ;;  %v8215_v60 = vld [vmem:[%s11100_s5 + $0x650] ss:$36 sps:$4 sm:$0xff]   ;;  %v8216_v61 = vld [vmem:[%s11100_s5 + $0x458] ss:$36 sps:$4 sm:$0xff]  }
 0x235   : > { %3745 = vmatprep.subr.bf16.mxu1 %v8151_v62  ;;  %v8217_v62 = vld [vmem:[%s11100_s5 + $0x8d8] ss:$36 sps:$4 sm:$0xff]  }
 0x237   : > { %3660 = vmatpush1.bf16.msra.mxu0 %v8146_v1  ;;  %v8218_v1 = vld [vmem:[%s11100_s5 + $0x218] ss:$36 sps:$4 sm:$0xff]  }
 0x238   : > { %3746 = vmatpush1.bf16.msra.mxu1 %v8149_v2  ;;  %3661 = vmatprep.subr.bf16.mxu0 %v8154_v3  ;;  %v8219_v2 = vld [vmem:[%s11100_s5 + $0x698] ss:$36 sps:$4 sm:$0xff]   ;;  %v8222_v3 = vld [vmem:[%s11102_s7 + $0x4] ss:$12 sps:$4 sm:$0xff]  }
 0x239   : > { %3747 = vmatprep.subr.bf16.mxu1 %v8157_v4  ;;  %v8220_v4 = vld [vmem:[%s11102_s7] ss:$12 sps:$4 sm:$0xff]  }
 0x23b   : > { %3662 = vmatpush1.bf16.msra.mxu0 %v8152_v5  ;;  %v8225_v5 = vld [vmem:[%s11102_s7 + $0x1c] ss:$12 sps:$4 sm:$0xff]  }
 0x23c   : > { %3748 = vmatpush1.bf16.msra.mxu1 %v8155_v6  ;;  %3663 = vmatprep.subr.bf16.mxu0 %v8160_v7  ;;  %v8223_v6 = vld [vmem:[%s11102_s7 + $0x18] ss:$12 sps:$4 sm:$0xff]   ;;  %v8228_v7 = vld [vmem:[%s11102_s7 + $0x34] ss:$12 sps:$4 sm:$0xff]  }
 0x23d   : > { %3749 = vmatprep.subr.bf16.mxu1 %v8163_v9  ;;  %v8226_v9 = vld [vmem:[%s11102_s7 + $0x30] ss:$12 sps:$4 sm:$0xff]  }
 0x23f   : > { %3664 = vmatpush1.bf16.msra.mxu0 %v8158_v10  ;;  %v8232_v10 = vld [vmem:[%s11102_s7 + $0x60] ss:$12 sps:$4 sm:$0xff]  }
 0x240   : > { %3750 = vmatpush1.bf16.msra.mxu1 %v8161_v11  ;;  %3665 = vmatprep.subr.bf16.mxu0 %v8166_v12  ;;  %v8237_v11 = vld [vmem:[%s11102_s7 + $0x7c] ss:$12 sps:$4 sm:$0xff]   ;;  %v8235_v12 = vld [vmem:[%s11102_s7 + $0x78] ss:$12 sps:$4 sm:$0xff]  }
 0x241   : > { %3751 = vmatprep.subr.bf16.mxu1 %v8169_v13  ;;  %v8240_v13 = vld [vmem:[%s11102_s7 + $0x94] ss:$12 sps:$4 sm:$0xff]  }
 0x243   : > { %3666 = vmatpush1.bf16.msra.mxu0 %v8164_v14  ;;  %v8238_v14 = vld [vmem:[%s11102_s7 + $0x90] ss:$12 sps:$4 sm:$0xff]  }
 0x244   : > { %3752 = vmatpush1.bf16.msra.mxu1 %v8167_v15  ;;  %3667 = vmatprep.subr.bf16.mxu0 %v8172_v16  ;;  %v8243_v15 = vld [vmem:[%s11102_s7 + $0xac] ss:$12 sps:$4 sm:$0xff]   ;;  %v8241_v16 = vld [vmem:[%s11102_s7 + $0xa8] ss:$12 sps:$4 sm:$0xff]  }
 0x245   : > { %3753 = vmatprep.subr.bf16.mxu1 %v8175_v17  ;;  %v8246_v17 = vld [vmem:[%s11102_s7 + $0xc4] ss:$12 sps:$4 sm:$0xff]  }
 0x247   : > { %3668 = vmatpush1.bf16.msra.mxu0 %v8170_v18  ;;  %v8244_v18 = vld [vmem:[%s11102_s7 + $0xc0] ss:$12 sps:$4 sm:$0xff]  }
 0x248   : > { %3754 = vmatpush1.bf16.msra.mxu1 %v8173_v22  ;;  %3669 = vmatprep.subr.bf16.mxu0 %v8178_v25  ;;  %v8249_v22 = vld [vmem:[%s11102_s7 + $0xdc] ss:$12 sps:$4 sm:$0xff]   ;;  %v8247_v25 = vld [vmem:[%s11102_s7 + $0xd8] ss:$12 sps:$4 sm:$0xff]  }
 0x249   : > { %3755 = vmatprep.subr.bf16.mxu1 %v8181_v26  ;;  %v8252_v26 = vld [vmem:[%s11102_s7 + $0xf4] ss:$12 sps:$4 sm:$0xff]  }
 0x24b   : > { %3670 = vmatpush1.bf16.msra.mxu0 %v8176_v27  ;;  %v8250_v27 = vld [vmem:[%s11102_s7 + $0xf0] ss:$12 sps:$4 sm:$0xff]  }
 0x24c   : > { %3756 = vmatpush1.bf16.msra.mxu1 %v8179_v28  ;;  %3671 = vmatprep.subr.bf16.mxu0 %v8184_v29  ;;  %v8255_v28 = vld [vmem:[%s11102_s7 + $0x10c] ss:$12 sps:$4 sm:$0xff]   ;;  %v8253_v29 = vld [vmem:[%s11102_s7 + $0x108] ss:$12 sps:$4 sm:$0xff]  }
 0x24d   : > { %3757 = vmatprep.subr.bf16.mxu1 %v8187_v30  ;;  %v8258_v30 = vld [vmem:[%s11102_s7 + $0x124] ss:$12 sps:$4 sm:$0xff]  }
 0x24f   : > { %3672 = vmatpush1.bf16.msra.mxu0 %v8182_v31  ;;  %v8256_v31 = vld [vmem:[%s11102_s7 + $0x120] ss:$12 sps:$4 sm:$0xff]  }
 0x250   : > { %3758 = vmatpush1.bf16.msra.mxu1 %v8185_v32  ;;  %7141 = vmatprep.subr.bf16.mxu0 %v8188_v33  ;;  %v10157_v32 = vld [vmem:[%s11101_s6] sm:$0xff]  ;;  %v8261_v33 = vld [vmem:[%s11102_s7 + $0x13c] ss:$12 sps:$4 sm:$0xff]  }
 0x251   : > { %7163 = vmatprep.subr.bf16.mxu1 %v8189_v34  ;;  %v1912_v34 = vrot.slane %v10157_v32, %v9364_v20 }
 0x252   : > { %3674 = vmatmul.mubr.bf16.vlgmr.msra.gmra.mrb[8].mxu0 %v9381_v56 }
 0x253   : > { %3760 = vmatmul.mubr.bf16.vlgmr.msra.gmra.mrb[8].mxu1 %v9381_v56  ;;  %7142 = vmatpush3.bf16.msra.mxu0 %v8190_v35  ;;  %v1920_v35 = vrot.slane %v10157_v32, %v9373_v23 }
 0x254   : > { %3802 = vmatprep.mubr.bf16.mxu0 %v9393_v0  ;;  %7164 = vmatpush3.bf16.msra.mxu1 %v8191_v36  ;;  %v8198_v0 = vld [vmem:[%s11100_s5 + $0xb0] ss:$36 sps:$4 sm:$0xff]   ;;  %v1916_v36 = vrot.slane %v10157_v32, %v9367_v21 }
 0x255   : > { %3843 = vmatprep.mubr.bf16.mxu1 %v9383_v59  ;;  %7143 = vmatprep.subr.bf16.mxu0 %v8192_v37  ;;  %v8200_v59 = vld [vmem:[%s11100_s5 + $0x338] ss:$36 sps:$4 sm:$0xff]   ;;  %v1924_v37 = vrot.slane %v10157_v32, %v721_v24 }
 0x256   : > { %7165 = vmatprep.subr.bf16.mxu1 %v8193_v38  ;;  %v8259_v38 = vld [vmem:[%s11102_s7 + $0x138] ss:$12 sps:$4 sm:$0xff]   ;;  %v8262_v24 = vld [vmem:[%s11102_s7 + $0x150] ss:$12 sps:$4 sm:$0xff]  }
 0x257   : > { %7144 = vmatpush3.bf16.msra.mxu0 %v8194_v39  ;;  %v8264_v39 = vld [vmem:[%s11102_s7 + $0x154] ss:$12 sps:$4 sm:$0xff]  }
 0x258   : > { %7166 = vmatpush3.bf16.msra.mxu1 %v8195_v40  ;;  %7145 = vmatprep.subr.bf16.mxu0 %v8196_v41 }
 0x259   : > { %7167 = vmatprep.subr.bf16.mxu1 %v8197_v42 }
 0x25b   : > { %7146 = vmatpush3.bf16.msra.mxu0 %v8198_v0 }
 0x25c   : > { %7168 = vmatpush3.bf16.msra.mxu1 %v8199_v43  ;;  %7147 = vmatprep.subr.bf16.mxu0 %v8200_v59 }
 0x25d   : > { %7169 = vmatprep.subr.bf16.mxu1 %v8201_v44 }
 0x25f   : > { %7148 = vmatpush3.bf16.msra.mxu0 %v8202_v45 }
 0x260   : > { %7170 = vmatpush3.bf16.msra.mxu1 %v8203_v46  ;;  %7149 = vmatprep.subr.bf16.mxu0 %v8204_v47 }
 0x261   : > { %7171 = vmatprep.subr.bf16.mxu1 %v8205_v48 }
 0x263   : > { %7150 = vmatpush3.bf16.msra.mxu0 %v8206_v49 }
 0x264   : > { %7172 = vmatpush3.bf16.msra.mxu1 %v8207_v50  ;;  %7151 = vmatprep.subr.bf16.mxu0 %v8208_v51 }
 0x265   : > { %7173 = vmatprep.subr.bf16.mxu1 %v8209_v52  ;;  %v8267_v52 = vld [vmem:[%s11102_s7 + $0x16c] ss:$12 sps:$4 sm:$0xff]  }
 0x267   : > { %7152 = vmatpush3.bf16.msra.mxu0 %v8210_v53 }
 0x268   : > { %7174 = vmatpush3.bf16.msra.mxu1 %v8211_v54  ;;  %7153 = vmatprep.subr.bf16.mxu0 %v8212_v55 }
 0x269   : > { %7175 = vmatprep.subr.bf16.mxu1 %v8213_v57 }
 0x26b   : > { %7154 = vmatpush3.bf16.msra.mxu0 %v8214_v58 }
 0x26c   : > { %7176 = vmatpush3.bf16.msra.mxu1 %v8215_v60  ;;  %7155 = vmatprep.subr.bf16.mxu0 %v8216_v61 }
 0x26d   : > { %7177 = vmatprep.subr.bf16.mxu1 %v8217_v62 }
 0x26f   : > { %7156 = vmatpush3.bf16.msra.mxu0 %v8218_v1 }
 0x270   : > { %7178 = vmatpush3.bf16.msra.mxu1 %v8219_v2  ;;  %5260 = vmatprep.subr.bf16.mxu0 %v8222_v3  ;;  %v8265_v3 = vld [vmem:[%s11102_s7 + $0x168] ss:$12 sps:$4 sm:$0xff]  }
 0x272   : > { %3803 = vmatmul.mubr.bf16.vlgmr.msra.gmra.mrb[12].mxu0 %v9391_v63  ;;  %v8229_v63 = vld [vmem:[%s11102_s7 + $0x48] ss:$12 sps:$4 sm:$0xff]  }
 0x273   : > { %3844 = vmatmul.mubr.bf16.vlgmr.msra.gmra.mrb[12].mxu1 %v9381_v56  ;;  %5261 = vmatpush1.bf16.msra.mxu0 %v8220_v4  ;;  %v8231_v56 = vld [vmem:[%s11102_s7 + $0x4c] ss:$12 sps:$4 sm:$0xff]  }
 0x274   : > { %5262 = vmatprep.subr.bf16.mxu0 %v8225_v5  ;;  %5464 = vmatprep.mubr.bf16.mxu1 %v8597_v8  ;;  %v8234_v8 = vld [vmem:[%s11102_s7 + $0x64] ss:$12 sps:$4 sm:$0xff]  }
 0x277   : > { %5263 = vmatpush1.bf16.msra.mxu0 %v8223_v6  ;;  %v8270_v6 = vld [vmem:[%s11102_s7 + $0x184] ss:$12 sps:$4 sm:$0xff]  }
 0x278   : > { %5264 = vmatprep.subr.bf16.mxu0 %v8228_v7 }
 0x27b   : > { %5265 = vmatpush1.bf16.msra.mxu0 %v8226_v9 }
 0x27c   : > { %5266 = vmatprep.subr.bf16.mxu0 %v8231_v56  ;;  %v8268_v56 = vld [vmem:[%s11102_s7 + $0x180] ss:$12 sps:$4 sm:$0xff]  }
 0x27f   : > { %5267 = vmatpush1.bf16.msra.mxu0 %v8229_v63  ;;  %v8273_v63 = vld [vmem:[%s11102_s7 + $0x19c] ss:$12 sps:$4 sm:$0xff]  }
 0x280   : > { %5268 = vmatprep.subr.bf16.mxu0 %v8234_v8  ;;  %v8271_v8 = vld [vmem:[%s11102_s7 + $0x198] ss:$12 sps:$4 sm:$0xff]  }
 0x283   : > { %5269 = vmatpush1.bf16.msra.mxu0 %v8232_v10  ;;  %v8276_v10 = vld [vmem:[%s11102_s7 + $0x1b4] ss:$12 sps:$4 sm:$0xff]  }
 0x284   : > { %5270 = vmatprep.subr.bf16.mxu0 %v8237_v11  ;;  %v8274_v11 = vld [vmem:[%s11102_s7 + $0x1b0] ss:$12 sps:$4 sm:$0xff]  }
 0x287   : > { %5271 = vmatpush1.bf16.msra.mxu0 %v8235_v12  ;;  %v8279_v12 = vld [vmem:[%s11102_s7 + $0x1cc] ss:$12 sps:$4 sm:$0xff]  }
 0x288   : > { %5272 = vmatprep.subr.bf16.mxu0 %v8240_v13  ;;  %v8277_v13 = vld [vmem:[%s11102_s7 + $0x1c8] ss:$12 sps:$4 sm:$0xff]  }
 0x28b   : > { %5273 = vmatpush1.bf16.msra.mxu0 %v8238_v14  ;;  %v8282_v14 = vld [vmem:[%s11102_s7 + $0x1e4] ss:$12 sps:$4 sm:$0xff]  }
 0x28c   : > { %5274 = vmatprep.subr.bf16.mxu0 %v8243_v15  ;;  %v8280_v15 = vld [vmem:[%s11102_s7 + $0x1e0] ss:$12 sps:$4 sm:$0xff]  }
 0x28f   : > { %5275 = vmatpush1.bf16.msra.mxu0 %v8241_v16  ;;  %v8285_v16 = vld [vmem:[%s11102_s7 + $0x1fc] ss:$12 sps:$4 sm:$0xff]  }
 0x290   : > { %5276 = vmatprep.subr.bf16.mxu0 %v8246_v17  ;;  %v8379_v17 = vld [vmem:[%s11102_s7 + $0x600] ss:$12 sps:$4 sm:$0xff]  }
 0x293   : > { %5277 = vmatpush1.bf16.msra.mxu0 %v8244_v18  ;;  %v8381_v18 = vld [vmem:[%s11102_s7 + $0x604] ss:$12 sps:$4 sm:$0xff]  }
 0x294   : > { %5278 = vmatprep.subr.bf16.mxu0 %v8249_v22  ;;  %5432 = vmatprep.subr.bf16.mxu1 %v8381_v18  ;;  %v8283_v22 = vld [vmem:[%s11102_s7 + $0x1f8] ss:$12 sps:$4 sm:$0xff]   ;;  %v8352_v18 = vld [vmem:[%s11102_s7 + $0x420] ss:$12 sps:$4 sm:$0xff]  }
 0x295   : > { %5433 = vmatpush1.bf16.msra.mxu1 %v8379_v17  ;;  %v1927_v17 = vsub.s32 4, %v9361_v19 }
 0x297   : > { %5279 = vmatpush1.bf16.msra.mxu0 %v8247_v25  ;;  %v8288_v25 = vld [vmem:[%s11102_s7 + $0x214] ss:$12 sps:$4 sm:$0xff]  }
 0x298   : > { %5280 = vmatprep.subr.bf16.mxu0 %v8252_v26  ;;  %v8387_v26 = vld [vmem:[%s11102_s7 + $0x61c] ss:$12 sps:$4 sm:$0xff]  }
 0x299   : > { %5434 = vmatprep.subr.bf16.mxu1 %v8387_v26  ;;  %v1939_v26 = vsub.s32 7, %v9361_v19 }
 0x29b   : > { %5281 = vmatpush1.bf16.msra.mxu0 %v8250_v27  ;;  %v8286_v27 = vld [vmem:[%s11102_s7 + $0x210] ss:$12 sps:$4 sm:$0xff]  }
 0x29c   : > { %5282 = vmatprep.subr.bf16.mxu0 %v8255_v28  ;;  %v8385_v28 = vld [vmem:[%s11102_s7 + $0x618] ss:$12 sps:$4 sm:$0xff]  }
 0x29d   : > { %5435 = vmatpush1.bf16.msra.mxu1 %v8385_v28  ;;  %v1928_v28 = vrot.slane %v10157_v32, %v1927_v17 }
 0x29f   : > { %5283 = vmatpush1.bf16.msra.mxu0 %v8253_v29  ;;  %v8291_v29 = vld [vmem:[%s11102_s7 + $0x22c] ss:$12 sps:$4 sm:$0xff]  }
 0x2a0   : > { %5284 = vmatprep.subr.bf16.mxu0 %v8258_v30  ;;  %v8393_v30 = vld [vmem:[%s11102_s7 + $0x634] ss:$12 sps:$4 sm:$0xff]  }
 0x2a1   : > { %5436 = vmatprep.subr.bf16.mxu1 %v8393_v30 }
 0x2a3   : > { %5285 = vmatpush1.bf16.msra.mxu0 %v8256_v31  ;;  %v8289_v31 = vld [vmem:[%s11102_s7 + $0x228] ss:$12 sps:$4 sm:$0xff]  }
 0x2a4   : > { %5286 = vmatprep.subr.bf16.mxu0 %v8261_v33  ;;  %v8391_v33 = vld [vmem:[%s11102_s7 + $0x630] ss:$12 sps:$4 sm:$0xff]  }
 0x2a5   : > { %v3503_v40 = vpop.f32.mrb[4].mxu0  ;;  %v3589_v41 = vpop.f32.mrb[4].mxu1  ;;  %5437 = vmatpush1.bf16.msra.mxu1 %v8391_v33  ;;  %v1940_v33 = vrot.slane %v10157_v32, %v1939_v26 }
 0x2a6   : > { %v7483_v42 = vadd.f32 %v3503_v40, %v1912_v34  ;;  %v7487_v0 = vadd.f32 %v3589_v41, %v1920_v35  ;;  %v3505_v43 = vpop.f32.mrb[5].mxu0  ;;  %v3591_v59 = vpop.f32.mrb[5].mxu1  ;;  %v8295_v40 = vld [vmem:[%s11102_s7 + $0x258] ss:$12 sps:$4 sm:$0xff]   ;;  %v8300_v41 = vld [vmem:[%s11102_s7 + $0x274] ss:$12 sps:$4 sm:$0xff]  }
 0x2a7   : > { %v7484_v44 = vadd.f32 %v3505_v43, %v1916_v36  ;;  %v7488_v45 = vadd.f32 %v3591_v59, %v1924_v37  ;;  %v3507_v46 = vpop.f32.mrb[6].mxu0  ;;  %v3593_v47 = vpop.f32.mrb[6].mxu1  ;;  %5287 = vmatpush1.bf16.msra.mxu0 %v8259_v38  ;;  %v8297_v38 = vld [vmem:[%s11102_s7 + $0x25c] ss:$12 sps:$4 sm:$0xff]   ;;  %v8306_v59 = vld [vmem:[%s11102_s7 + $0x2a4] ss:$12 sps:$4 sm:$0xff]  }
 0x2a8   : > { %v7485_v48 = vadd.f32 %v3507_v46, %v1912_v34  ;;  %v7489_v49 = vadd.f32 %v3593_v47, %v1920_v35  ;;  %v3509_v50 = vpop.f32.mrb[7].mxu0  ;;  %v3595_v51 = vpop.f32.mrb[7].mxu1  ;;  %5288 = vmatprep.subr.bf16.mxu0 %v8264_v39  ;;  %v3852_v55 = vmax.f32 %v7483_v42, 0.0  ;;  %v3854_v57 = vmax.f32 %v7487_v0, 0.0  ;;  %v8294_v34 = vld [vmem:[%s11102_s7 + $0x244] ss:$12 sps:$4 sm:$0xff]  }
 0x2a9   : > { %v7486_v53 = vadd.f32 %v3509_v50, %v1916_v36  ;;  %v7490_v54 = vadd.f32 %v3595_v51, %v1924_v37  ;;  %v3853_v61 = vmax.f32 %v7484_v44, 0.0  ;;  %v3855_v62 = vmax.f32 %v7488_v45, 0.0  ;;  %v8399_v35 = vld [vmem:[%s11102_s7 + $0x64c] ss:$12 sps:$4 sm:$0xff]   ;;  %v8397_v37 = vld [vmem:[%s11102_s7 + $0x648] ss:$12 sps:$4 sm:$0xff]  }
 0x2aa   : > { %v3861_v58 = vmax.f32 %v7485_v48, 0.0  ;;  %v3863_v60 = vmax.f32 %v7489_v49, 0.0  ;;  %v8292_v36 = vld [vmem:[%s11102_s7 + $0x240] ss:$12 sps:$4 sm:$0xff]   ;;  %5438 = vmatprep.subr.bf16.mxu1 %v8399_v35  ;;  %v8403_v39 = vld [vmem:[%s11102_s7 + $0xc8] ss:$12 sps:$4 sm:$0xff]  }
 0x2ab   : > { %v3862_v1 = vmax.f32 %v7486_v53, 0.0  ;;  %v3864_v2 = vmax.f32 %v7490_v54, 0.0  ;;  %5289 = vmatpush1.bf16.msra.mxu0 %v8262_v24  ;;  %5439 = vmatpush1.bf16.msra.mxu1 %v8397_v37  ;;  %v8298_v42 = vld [vmem:[%s11102_s7 + $0x270] ss:$12 sps:$4 sm:$0xff]   ;;  %v8303_v0 = vld [vmem:[%s11102_s7 + $0x28c] ss:$12 sps:$4 sm:$0xff]  }
 0x2ac   : > { %v10186_v4 = vpack.c.bf16 %v3861_v58, %v3852_v55  ;;  %v10188_v5 = vpack.c.bf16 %v3863_v60, %v3854_v57  ;;  %5290 = vmatprep.subr.bf16.mxu0 %v8267_v52  ;;  %7185 = vmatprep.subr.bf16.mxu1 %v8403_v39  ;;  %v8301_v43 = vld [vmem:[%s11102_s7 + $0x288] ss:$12 sps:$4 sm:$0xff]   ;;  %v8304_v44 = vld [vmem:[%s11102_s7 + $0x2a0] ss:$12 sps:$4 sm:$0xff]   ;;  %v8307_v46 = vld [vmem:[%s11102_s7 + $0x2b8] ss:$12 sps:$4 sm:$0xff]  }
 0x2ad   : > { %v10193_v7 = vpack.c.bf16 %v3862_v1, %v3853_v61  ;;  %v10195_v9 = vpack.c.bf16 %v3864_v2, %v3855_v62  ;;  %v8309_v45 = vld [vmem:[%s11102_s7 + $0x2bc] ss:$12 sps:$4 sm:$0xff]   ;;  %v8312_v47 = vld [vmem:[%s11102_s7 + $0x2d4] ss:$12 sps:$4 sm:$0xff]   ;;  %v8315_v48 = vld [vmem:[%s11102_s7 + $0x2ec] ss:$12 sps:$4 sm:$0xff]  }
 0x2ae   : > { %v8310_v24 = vld [vmem:[%s11102_s7 + $0x2d0] ss:$12 sps:$4 sm:$0xff]   ;;  %v8313_v49 = vld [vmem:[%s11102_s7 + $0x2e8] ss:$12 sps:$4 sm:$0xff]   ;;  %v8316_v51 = vld [vmem:[%s11102_s7 + $0x300] ss:$12 sps:$4 sm:$0xff]  }
 0x2af   : > { %5291 = vmatpush1.bf16.msra.mxu0 %v8265_v3  ;;  %5292 = vmatprep.mubr.bf16.mxu0 %v10193_v7  ;;  %v8318_v50 = vld [vmem:[%s11102_s7 + $0x304] ss:$12 sps:$4 sm:$0xff]   ;;  %v8321_v52 = vld [vmem:[%s11102_s7 + $0x31c] ss:$12 sps:$4 sm:$0xff]   ;;  %v8324_v54 = vld [vmem:[%s11102_s7 + $0x334] ss:$12 sps:$4 sm:$0xff]  }
 0x2b0   : > { %5303 = vmatprep.subr.bf16.mxu0 %v8270_v6  ;;  %v8319_v53 = vld [vmem:[%s11102_s7 + $0x318] ss:$12 sps:$4 sm:$0xff]   ;;  %v8322_v55 = vld [vmem:[%s11102_s7 + $0x330] ss:$12 sps:$4 sm:$0xff]   ;;  %v8325_v58 = vld [vmem:[%s11102_s7 + $0x348] ss:$12 sps:$4 sm:$0xff]  }
 0x2b1   : > { %v8327_v57 = vld [vmem:[%s11102_s7 + $0x34c] ss:$12 sps:$4 sm:$0xff]   ;;  %v8330_v60 = vld [vmem:[%s11102_s7 + $0x364] ss:$12 sps:$4 sm:$0xff]   ;;  %v8333_v62 = vld [vmem:[%s11102_s7 + $0x37c] ss:$12 sps:$4 sm:$0xff]  }
 0x2b2   : > { %5293 = vmatmul.mubr.bf16.vlgmr.msra.gmra.mrb[16].mxu0 %v10186_v4  ;;  %v8328_v61 = vld [vmem:[%s11102_s7 + $0x360] ss:$12 sps:$4 sm:$0xff]   ;;  %v8331_v1 = vld [vmem:[%s11102_s7 + $0x378] ss:$12 sps:$4 sm:$0xff]   ;;  %v8334_v3 = vld [vmem:[%s11102_s7 + $0x390] ss:$12 sps:$4 sm:$0xff]  }
 0x2b3   : > { %5304 = vmatpush1.bf16.msra.mxu0 %v8268_v56  ;;  %5335 = vmatprep.mubr.bf16.mxu0 %v10195_v9  ;;  %v8336_v2 = vld [vmem:[%s11102_s7 + $0x394] ss:$12 sps:$4 sm:$0xff]   ;;  %v8339_v6 = vld [vmem:[%s11102_s7 + $0x3ac] ss:$12 sps:$4 sm:$0xff]  }
 0x2b4   : > { %5305 = vmatprep.subr.bf16.mxu0 %v8273_v63  ;;  %v8337_v56 = vld [vmem:[%s11102_s7 + $0x3a8] ss:$12 sps:$4 sm:$0xff]   ;;  %v8342_v63 = vld [vmem:[%s11102_s7 + $0x3c4] ss:$12 sps:$4 sm:$0xff]  }
 0x2b7   : > { %5306 = vmatpush1.bf16.msra.mxu0 %v8271_v8  ;;  %v8340_v8 = vld [vmem:[%s11102_s7 + $0x3c0] ss:$12 sps:$4 sm:$0xff]  }
 0x2b8   : > { %5307 = vmatprep.subr.bf16.mxu0 %v8276_v10  ;;  %v8345_v10 = vld [vmem:[%s11102_s7 + $0x3dc] ss:$12 sps:$4 sm:$0xff]  }
 0x2bb   : > { %5308 = vmatpush1.bf16.msra.mxu0 %v8274_v11  ;;  %v8343_v11 = vld [vmem:[%s11102_s7 + $0x3d8] ss:$12 sps:$4 sm:$0xff]  }
 0x2bc   : > { %5309 = vmatprep.subr.bf16.mxu0 %v8279_v12  ;;  %v8348_v12 = vld [vmem:[%s11102_s7 + $0x3f4] ss:$12 sps:$4 sm:$0xff]  }
 0x2bf   : > { %5310 = vmatpush1.bf16.msra.mxu0 %v8277_v13  ;;  %v8346_v13 = vld [vmem:[%s11102_s7 + $0x3f0] ss:$12 sps:$4 sm:$0xff]  }
 0x2c0   : > { %5311 = vmatprep.subr.bf16.mxu0 %v8282_v14  ;;  %v8351_v14 = vld [vmem:[%s11102_s7 + $0x40c] ss:$12 sps:$4 sm:$0xff]  }
 0x2c3   : > { %5312 = vmatpush1.bf16.msra.mxu0 %v8280_v15  ;;  %v8349_v15 = vld [vmem:[%s11102_s7 + $0x408] ss:$12 sps:$4 sm:$0xff]  }
 0x2c4   : > { %5313 = vmatprep.subr.bf16.mxu0 %v8285_v16  ;;  %v8354_v16 = vld [vmem:[%s11102_s7 + $0x424] ss:$12 sps:$4 sm:$0xff]  }
 0x2c7   : > { %5314 = vmatpush1.bf16.msra.mxu0 %v8283_v22  ;;  %v1935_v22 = vsub.s32 6, %v9361_v19 }
 0x2c8   : > { %5315 = vmatprep.subr.bf16.mxu0 %v8288_v25  ;;  %v1931_v25 = vsub.s32 5, %v9361_v19  ;;  %v8360_v19 = vld [vmem:[%s11102_s7 + $0x454] ss:$12 sps:$4 sm:$0xff]  }
 0x2ca   : > { %v1932_v30 = vrot.slane %v10157_v32, %v1931_v25 }
 0x2cb   : > { %5316 = vmatpush1.bf16.msra.mxu0 %v8286_v27  ;;  %v8357_v27 = vld [vmem:[%s11102_s7 + $0x43c] ss:$12 sps:$4 sm:$0xff]  }
 0x2cc   : > { %5317 = vmatprep.subr.bf16.mxu0 %v8291_v29  ;;  %v1936_v29 = vrot.slane %v10157_v32, %v1935_v22 }
 0x2cf   : > { %5318 = vmatpush1.bf16.msra.mxu0 %v8289_v31  ;;  %v8355_v31 = vld [vmem:[%s11102_s7 + $0x438] ss:$12 sps:$4 sm:$0xff]  }
 0x2d0   : > { %5319 = vmatprep.subr.bf16.mxu0 %v8294_v34 }
 0x2d3   : > { %5320 = vmatpush1.bf16.msra.mxu0 %v8292_v36 }
 0x2d4   : > { %5321 = vmatprep.subr.bf16.mxu0 %v8297_v38 }
 0x2d7   : > { %5322 = vmatpush1.bf16.msra.mxu0 %v8295_v40 }
 0x2d8   : > { %5323 = vmatprep.subr.bf16.mxu0 %v8300_v41 }
 0x2db   : > { %5324 = vmatpush1.bf16.msra.mxu0 %v8298_v42  ;;  %v8358_v42 = vld [vmem:[%s11102_s7 + $0x450] ss:$12 sps:$4 sm:$0xff]  }
 0x2dc   : > { %5325 = vmatprep.subr.bf16.mxu0 %v8303_v0 }
 0x2df   : > { %5326 = vmatpush1.bf16.msra.mxu0 %v8301_v43 }
 0x2e0   : > { %5327 = vmatprep.subr.bf16.mxu0 %v8306_v59 }
 0x2e3   : > { %5328 = vmatpush1.bf16.msra.mxu0 %v8304_v44  ;;  %v8363_v44 = vld [vmem:[%s11102_s7 + $0x46c] ss:$12 sps:$4 sm:$0xff]  }
 0x2e4   : > { %5329 = vmatprep.subr.bf16.mxu0 %v8309_v45 }
 0x2e7   : > { %5330 = vmatpush1.bf16.msra.mxu0 %v8307_v46 }
 0x2e8   : > { %5331 = vmatprep.subr.bf16.mxu0 %v8312_v47 }
 0x2eb   : > { %5332 = vmatpush1.bf16.msra.mxu0 %v8310_v24 }
 0x2ec   : > { %5333 = vmatprep.subr.bf16.mxu0 %v8315_v48 }
 0x2ef   : > { %5334 = vmatpush1.bf16.msra.mxu0 %v8313_v49 }
 0x2f0   : > { %5346 = vmatprep.subr.bf16.mxu0 %v8318_v50 }
 0x2f2   : > { %5336 = vmatmul.mubr.bf16.vlgmr.msra.gmra.mrb[16].mxu0 %v10188_v5 }
 0x2f3   : > { %5347 = vmatpush1.bf16.msra.mxu0 %v8316_v51 }
 0x2f4   : > { %5348 = vmatprep.subr.bf16.mxu0 %v8321_v52 }
 0x2f7   : > { %5349 = vmatpush1.bf16.msra.mxu0 %v8319_v53 }
 0x2f8   : > { %5350 = vmatprep.subr.bf16.mxu0 %v8324_v54  ;;  %v8361_v54 = vld [vmem:[%s11102_s7 + $0x468] ss:$12 sps:$4 sm:$0xff]  }
 0x2fb   : > { %5351 = vmatpush1.bf16.msra.mxu0 %v8322_v55 }
 0x2fc   : > { %5352 = vmatprep.subr.bf16.mxu0 %v8327_v57 }
 0x2ff   : > { %5353 = vmatpush1.bf16.msra.mxu0 %v8325_v58 }
 0x300   : > { %5354 = vmatprep.subr.bf16.mxu0 %v8330_v60  ;;  %v8366_v60 = vld [vmem:[%s11102_s7 + $0x484] ss:$12 sps:$4 sm:$0xff]  }
 0x303   : > { %5355 = vmatpush1.bf16.msra.mxu0 %v8328_v61 }
 0x304   : > { %5356 = vmatprep.subr.bf16.mxu0 %v8333_v62 }
 0x307   : > { %5357 = vmatpush1.bf16.msra.mxu0 %v8331_v1 }
 0x308   : > { %5358 = vmatprep.subr.bf16.mxu0 %v8336_v2  ;;  %v8364_v2 = vld [vmem:[%s11102_s7 + $0x480] ss:$12 sps:$4 sm:$0xff]  }
 0x30b   : > { %5359 = vmatpush1.bf16.msra.mxu0 %v8334_v3  ;;  %v8369_v3 = vld [vmem:[%s11102_s7 + $0x49c] ss:$12 sps:$4 sm:$0xff]  }
 0x30c   : > { %5360 = vmatprep.subr.bf16.mxu0 %v8339_v6  ;;  %v8367_v6 = vld [vmem:[%s11102_s7 + $0x498] ss:$12 sps:$4 sm:$0xff]  }
 0x30f   : > { %5361 = vmatpush1.bf16.msra.mxu0 %v8337_v56  ;;  %v8372_v56 = vld [vmem:[%s11102_s7 + $0x4b4] ss:$12 sps:$4 sm:$0xff]  }
 0x310   : > { %5362 = vmatprep.subr.bf16.mxu0 %v8342_v63  ;;  %v8370_v63 = vld [vmem:[%s11102_s7 + $0x4b0] ss:$12 sps:$4 sm:$0xff]  }
 0x313   : > { %5363 = vmatpush1.bf16.msra.mxu0 %v8340_v8  ;;  %v8375_v8 = vld [vmem:[%s11102_s7 + $0x4cc] ss:$12 sps:$4 sm:$0xff]  }
 0x314   : > { %5364 = vmatprep.subr.bf16.mxu0 %v8345_v10  ;;  %v8373_v10 = vld [vmem:[%s11102_s7 + $0x4c8] ss:$12 sps:$4 sm:$0xff]  }
 0x317   : > { %5365 = vmatpush1.bf16.msra.mxu0 %v8343_v11  ;;  %v8378_v11 = vld [vmem:[%s11102_s7 + $0x4e4] ss:$12 sps:$4 sm:$0xff]  }
 0x318   : > { %5366 = vmatprep.subr.bf16.mxu0 %v8348_v12  ;;  %v8376_v12 = vld [vmem:[%s11102_s7 + $0x4e0] ss:$12 sps:$4 sm:$0xff]  }
 0x31b   : > { %5367 = vmatpush1.bf16.msra.mxu0 %v8346_v13  ;;  %v8384_v13 = vld [vmem:[%s11102_s7 + $0x4fc] ss:$12 sps:$4 sm:$0xff]  }
 0x31c   : > { %5368 = vmatprep.subr.bf16.mxu0 %v8351_v14  ;;  %v8382_v14 = vld [vmem:[%s11102_s7 + $0x4f8] ss:$12 sps:$4 sm:$0xff]  }
 0x31f   : > { %5369 = vmatpush1.bf16.msra.mxu0 %v8349_v15  ;;  %v8390_v15 = vld [vmem:[%s11102_s7 + $0x514] ss:$12 sps:$4 sm:$0xff]  }
 0x320   : > { %5370 = vmatprep.subr.bf16.mxu0 %v8354_v16 }
 0x323   : > { %5371 = vmatpush1.bf16.msra.mxu0 %v8352_v18  ;;  %v6617_v18 = vld [vmem:[%s11101_s6 + $0x8] ss:$0 sm:$0xff] }
 0x324   : > { %5372 = vmatprep.subr.bf16.mxu0 %v8357_v27 }
 0x325   : > { %v3675_v34 = vpop.f32.mrb[8].mxu0 }
 0x326   : > { %v7491_v35 = vadd.f32 %v3675_v34, %v1928_v28  ;;  %v3761_v36 = vpop.f32.mrb[8].mxu1  ;;  %v3677_v37 = vpop.f32.mrb[9].mxu0 }
 0x327   : > { %v7495_v38 = vadd.f32 %v3761_v36, %v1936_v29  ;;  %v7492_v39 = vadd.f32 %v3677_v37, %v1932_v30  ;;  %v3763_v40 = vpop.f32.mrb[9].mxu1  ;;  %v3679_v41 = vpop.f32.mrb[10].mxu0  ;;  %5373 = vmatpush1.bf16.msra.mxu0 %v8355_v31 }
 0x328   : > { %v7496_v0 = vadd.f32 %v3763_v40, %v1940_v33  ;;  %v7493_v32 = vadd.f32 %v3679_v41, %v1928_v28  ;;  %v3765_v43 = vpop.f32.mrb[10].mxu1  ;;  %v3681_v59 = vpop.f32.mrb[11].mxu0  ;;  %5374 = vmatprep.subr.bf16.mxu0 %v8360_v19  ;;  %v3856_v24 = vmax.f32 %v7491_v35, 0.0  ;;  %v8388_v28 = vld [vmem:[%s11102_s7 + $0x510] ss:$12 sps:$4 sm:$0xff]  }
 0x329   : > { %v7497_v45 = vadd.f32 %v3765_v43, %v1936_v29  ;;  %v7494_v46 = vadd.f32 %v3681_v59, %v1932_v30  ;;  %v3767_v47 = vpop.f32.mrb[11].mxu1  ;;  %v3858_v50 = vmax.f32 %v7495_v38, 0.0  ;;  %v3857_v51 = vmax.f32 %v7492_v39, 0.0  ;;  %v8394_v39 = vld [vmem:[%s11102_s7 + $0x528] ss:$12 sps:$4 sm:$0xff]  }
 0x32a   : > { %v3865_v48 = vmax.f32 %v7493_v32, 0.0  ;;  %v7498_v49 = vadd.f32 %v3767_v47, %v1940_v33  ;;  %v3859_v55 = vmax.f32 %v7496_v0, 0.0  ;;  %v8396_v33 = vld [vmem:[%s11102_s7 + $0x52c] ss:$12 sps:$4 sm:$0xff]   ;;  %v8402_v40 = vld [vmem:[%s11102_s7 + $0x544] ss:$12 sps:$4 sm:$0xff]  }
 0x32b   : > { %v3867_v52 = vmax.f32 %v7497_v45, 0.0  ;;  %v3866_v53 = vmax.f32 %v7494_v46, 0.0  ;;  %5375 = vmatpush1.bf16.msra.mxu0 %v8358_v42  ;;  %v8400_v32 = vld [vmem:[%s11102_s7 + $0x540] ss:$12 sps:$4 sm:$0xff]   ;;  %v8404_v43 = vld [vmem:[%s11102_s7 + $0x8] ss:$12 sps:$4 sm:$0xff]  }
 0x32c   : > { %v10425_v57 = vpack.c.bf16 %v3865_v48, %v3856_v24  ;;  %v3868_v58 = vmax.f32 %v7498_v49, 0.0  ;;  %5376 = vmatprep.subr.bf16.mxu0 %v8363_v44  ;;  %v8407_v44 = vld [vmem:[%s11102_s7 + $0x55c] ss:$12 sps:$4 sm:$0xff]   ;;  %v8408_v45 = vld [vmem:[%s11102_s7 + $0xe0] ss:$12 sps:$4 sm:$0xff]  }
 0x32d   : > { %v10430_v61 = vpack.c.bf16 %v3867_v52, %v3858_v50  ;;  %v10432_v62 = vpack.c.bf16 %v3866_v53, %v3857_v51  ;;  %v8405_v46 = vld [vmem:[%s11102_s7 + $0x558] ss:$12 sps:$4 sm:$0xff]   ;;  %v8409_v47 = vld [vmem:[%s11102_s7 + $0x20] ss:$12 sps:$4 sm:$0xff]   ;;  %v8410_v49 = vld [vmem:[%s11102_s7 + $0x570] ss:$12 sps:$4 sm:$0xff]  }
 0x32e   : > { %v10434_v1 = vpack.c.bf16 %v3868_v58, %v3859_v55  ;;  %v8412_v24 = vld [vmem:[%s11102_s7 + $0x574] ss:$12 sps:$4 sm:$0xff]   ;;  %v8413_v48 = vld [vmem:[%s11102_s7 + $0xf8] ss:$12 sps:$4 sm:$0xff]   ;;  %v8418_v51 = vld [vmem:[%s11102_s7 + $0x110] ss:$12 sps:$4 sm:$0xff]  }
 0x32f   : > { %5377 = vmatpush1.bf16.msra.mxu0 %v8361_v54  ;;  %5378 = vmatprep.mubr.bf16.mxu0 %v10432_v62  ;;  %v8417_v50 = vld [vmem:[%s11102_s7 + $0x58c] ss:$12 sps:$4 sm:$0xff]   ;;  %v8415_v52 = vld [vmem:[%s11102_s7 + $0x588] ss:$12 sps:$4 sm:$0xff]   ;;  %v8419_v53 = vld [vmem:[%s11102_s7 + $0x50] ss:$12 sps:$4 sm:$0xff]  }
 0x330   : > { %5389 = vmatprep.subr.bf16.mxu0 %v8366_v60  ;;  %v8422_v54 = vld [vmem:[%s11102_s7 + $0x5a4] ss:$12 sps:$4 sm:$0xff]   ;;  %v8423_v55 = vld [vmem:[%s11102_s7 + $0x128] ss:$12 sps:$4 sm:$0xff]   ;;  %v8420_v58 = vld [vmem:[%s11102_s7 + $0x5a0] ss:$12 sps:$4 sm:$0xff]  }
 0x331   : > { %v8424_v60 = vld [vmem:[%s11102_s7 + $0x68] ss:$12 sps:$4 sm:$0xff]  }
 0x332   : > { %5379 = vmatmul.mubr.bf16.vlgmr.msra.gmra.mrb[16].mxu0 %v10425_v57 }
 0x333   : > { %5390 = vmatpush1.bf16.msra.mxu0 %v8364_v2  ;;  %5421 = vmatprep.mubr.bf16.mxu0 %v10434_v1  ;;  %v8427_v2 = vld [vmem:[%s11102_s7 + $0x5bc] ss:$12 sps:$4 sm:$0xff]  }
 0x334   : > { %5391 = vmatprep.subr.bf16.mxu0 %v8369_v3  ;;  %v8428_v3 = vld [vmem:[%s11102_s7 + $0x140] ss:$12 sps:$4 sm:$0xff]  }
 0x337   : > { %5392 = vmatpush1.bf16.msra.mxu0 %v8367_v6  ;;  %v8425_v6 = vld [vmem:[%s11102_s7 + $0x5b8] ss:$12 sps:$4 sm:$0xff]  }
 0x338   : > { %5393 = vmatprep.subr.bf16.mxu0 %v8372_v56  ;;  %v8429_v56 = vld [vmem:[%s11102_s7 + $0x80] ss:$12 sps:$4 sm:$0xff]  }
 0x33b   : > { %5394 = vmatpush1.bf16.msra.mxu0 %v8370_v63  ;;  %v8432_v63 = vld [vmem:[%s11102_s7 + $0x5d4] ss:$12 sps:$4 sm:$0xff]  }
 0x33c   : > { %5395 = vmatprep.subr.bf16.mxu0 %v8375_v8  ;;  %v8433_v8 = vld [vmem:[%s11102_s7 + $0x158] ss:$12 sps:$4 sm:$0xff]  }
 0x33f   : > { %5396 = vmatpush1.bf16.msra.mxu0 %v8373_v10  ;;  %v8430_v10 = vld [vmem:[%s11102_s7 + $0x5d0] ss:$12 sps:$4 sm:$0xff]  }
 0x340   : > { %5397 = vmatprep.subr.bf16.mxu0 %v8378_v11  ;;  %v8434_v11 = vld [vmem:[%s11102_s7 + $0x98] ss:$12 sps:$4 sm:$0xff]  }
 0x343   : > { %5398 = vmatpush1.bf16.msra.mxu0 %v8376_v12  ;;  %v8437_v12 = vld [vmem:[%s11102_s7 + $0x5ec] ss:$12 sps:$4 sm:$0xff]  }
 0x344   : > { %5399 = vmatprep.subr.bf16.mxu0 %v8384_v13  ;;  %v8438_v13 = vld [vmem:[%s11102_s7 + $0x170] ss:$12 sps:$4 sm:$0xff]  }
 0x345   : > { %v7157_v16 = vpop.f32.mrb[12].mxu0 }
 0x346   : > { %v7179_v17 = vpop.f32.mrb[12].mxu1  ;;  %v7158_v22 = vpop.f32.mrb[13].mxu0 }
 0x347   : > { %v7159_v25 = vadd.f32 %v7158_v22, %v7157_v16  ;;  %v7180_v26 = vpop.f32.mrb[13].mxu1  ;;  %v7160_v27 = vpop.f32.mrb[14].mxu0  ;;  %5400 = vmatpush1.bf16.msra.mxu0 %v8382_v14  ;;  %v8435_v14 = vld [vmem:[%s11102_s7 + $0x5e8] ss:$12 sps:$4 sm:$0xff]   ;;  %v8443_v22 = vld [vmem:[%s11102_s7 + $0x1a0] ss:$12 sps:$4 sm:$0xff]  }
 0x348   : > { %v7181_v29 = vadd.f32 %v7180_v26, %v7179_v17  ;;  %v7182_v30 = vpop.f32.mrb[14].mxu1  ;;  %v7161_v31 = vpop.f32.mrb[15].mxu0  ;;  %5401 = vmatprep.subr.bf16.mxu0 %v8390_v15  ;;  %v8439_v15 = vld [vmem:[%s11102_s7 + $0xb0] ss:$12 sps:$4 sm:$0xff]   ;;  %v8440_v16 = vld [vmem:[%s11102_s7 + $0x248] ss:$12 sps:$4 sm:$0xff]  }
 0x349   : > { %v3805_v19 = vadd.f32 %v7159_v25, %v6617_v18  ;;  %v7162_v34 = vadd.f32 %v7161_v31, %v7160_v27  ;;  %v7183_v35 = vpop.f32.mrb[15].mxu1  ;;  %v8441_v17 = vld [vmem:[%s11102_s7 + $0x188] ss:$12 sps:$4 sm:$0xff]   ;;  %v8444_v25 = vld [vmem:[%s11102_s7 + $0x278] ss:$12 sps:$4 sm:$0xff]  }
 0x34a   : > { %v7184_v36 = vadd.f32 %v7183_v35, %v7182_v30  ;;  %v8445_v26 = vld [vmem:[%s11102_s7 + $0x1b8] ss:$12 sps:$4 sm:$0xff]   ;;  %v8448_v27 = vld [vmem:[%s11102_s7 + $0x2a8] ss:$12 sps:$4 sm:$0xff]   ;;  %v8451_v30 = vld [vmem:[%s11102_s7 + $0x200] ss:$12 sps:$4 sm:$0xff]  }
 0x34b   : > { %v3846_v37 = vadd.f32 %v7181_v29, %v3805_v19  ;;  %v3808_v38 = vadd.f32 %v7162_v34, %v6617_v18  ;;  %5402 = vmatpush1.bf16.msra.mxu0 %v8388_v28  ;;  %v8442_v18 = vld [vmem:[%s11102_s7 + $0x260] ss:$12 sps:$4 sm:$0xff]   ;;  %v8449_v28 = vld [vmem:[%s11102_s7 + $0x1e8] ss:$12 sps:$4 sm:$0xff]   ;;  %v8452_v31 = vld [vmem:[%s11102_s7 + $0x2d8] ss:$12 sps:$4 sm:$0xff]  }
 0x34c   : > { %5403 = vmatprep.subr.bf16.mxu0 %v8396_v33  ;;  %v8450_v29 = vld [vmem:[%s11102_s7 + $0x2c0] ss:$12 sps:$4 sm:$0xff]   ;;  %v8453_v33 = vld [vmem:[%s11102_s7 + $0x218] ss:$12 sps:$4 sm:$0xff]   ;;  %v8454_v19 = vld [vmem:[%s11102_s7 + $0x2f0] ss:$12 sps:$4 sm:$0xff]  }
 0x34d   : > { %v3849_v41 = vadd.f32 %v7184_v36, %v3808_v38  ;;  %v3860_v42 = vmax.f32 %v3846_v37, 0.0  ;;  %v8455_v34 = vld [vmem:[%s11102_s7 + $0x230] ss:$12 sps:$4 sm:$0xff]   ;;  %v8456_v35 = vld [vmem:[%s11102_s7 + $0x3c8] ss:$12 sps:$4 sm:$0xff]  }
 0x34e   : > { %v8457_v36 = vld [vmem:[%s11102_s7 + $0x308] ss:$12 sps:$4 sm:$0xff]   ;;  %v8458_v37 = vld [vmem:[%s11102_s7 + $0x3e0] ss:$12 sps:$4 sm:$0xff]  }
 0x34f   : > { %v3869_v0 = vmax.f32 %v3849_v41, 0.0  ;;  %5404 = vmatpush1.bf16.msra.mxu0 %v8394_v39  ;;  %v8459_v38 = vld [vmem:[%s11102_s7 + $0x320] ss:$12 sps:$4 sm:$0xff]   ;;  %v8460_v39 = vld [vmem:[%s11102_s7 + $0x3f8] ss:$12 sps:$4 sm:$0xff]  }
 0x350   : > { %5405 = vmatprep.subr.bf16.mxu0 %v8402_v40  ;;  %v8461_v40 = vld [vmem:[%s11102_s7 + $0x338] ss:$12 sps:$4 sm:$0xff]   ;;  %v8464_v41 = vld [vmem:[%s11102_s7 + $0x428] ss:$12 sps:$4 sm:$0xff]  }
 0x351   : > { %v10496_v59 = vpack.c.bf16 %v3869_v0, %v3860_v42  ;;  %v8465_v42 = vld [vmem:[%s11102_s7 + $0x368] ss:$12 sps:$4 sm:$0xff]   ;;  %v8466_v0 = vld [vmem:[%s11102_s7 + $0x440] ss:$12 sps:$4 sm:$0xff]  }
 0x353   : > { %5406 = vmatpush1.bf16.msra.mxu0 %v8400_v32  ;;  %7110 = vmatmul.mubr.msk.bf16.vlgmr.msra.gmra.mrb[16].mxu1 %vm5256_vm0, %v10496_v59  ;;  %v8467_v32 = vld [vmem:[%s11102_s7 + $0x380] ss:$12 sps:$4 sm:$0xff]  }
 0x354   : > { %7186 = vmatpush3.bf16.msra.mxu1 %v8404_v43  ;;  %5507 = vmatprep.mubr.bf16.mxu1 %v10193_v7  ;;  %v8414_v7 = vld [vmem:[%s11102_s7 + $0x38] ss:$12 sps:$4 sm:$0xff]  }
 0x355   : > { %5407 = vmatprep.subr.bf16.mxu0 %v8407_v44  ;;  %7187 = vmatprep.subr.bf16.mxu1 %v8408_v45  ;;  %v8468_v43 = vld [vmem:[%s11102_s7 + $0x458] ss:$12 sps:$4 sm:$0xff]   ;;  %v8470_v45 = vld [vmem:[%s11102_s7 + $0x470] ss:$12 sps:$4 sm:$0xff]  }
 0x356   : > { %v8469_v44 = vld [vmem:[%s11102_s7 + $0x398] ss:$12 sps:$4 sm:$0xff]  }
 0x357   : > { %5408 = vmatpush1.bf16.msra.mxu0 %v8405_v46  ;;  %v8471_v46 = vld [vmem:[%s11102_s7 + $0x3b0] ss:$12 sps:$4 sm:$0xff]  }
 0x358   : > { %7188 = vmatpush3.bf16.msra.mxu1 %v8409_v47  ;;  %5409 = vmatprep.subr.bf16.mxu0 %v8412_v24  ;;  %v8472_v47 = vld [vmem:[%s11102_s7 + $0x548] ss:$12 sps:$4 sm:$0xff]  }
 0x359   : > { %7189 = vmatprep.subr.bf16.mxu1 %v8413_v48  ;;  %v8473_v24 = vld [vmem:[%s11102_s7 + $0x488] ss:$12 sps:$4 sm:$0xff]   ;;  %v8474_v48 = vld [vmem:[%s11102_s7 + $0x560] ss:$12 sps:$4 sm:$0xff]  }
 0x35b   : > { %5410 = vmatpush1.bf16.msra.mxu0 %v8410_v49  ;;  %v8475_v49 = vld [vmem:[%s11102_s7 + $0x4a0] ss:$12 sps:$4 sm:$0xff]  }
 0x35c   : > { %7190 = vmatpush3.bf16.msra.mxu1 %v8414_v7  ;;  %5411 = vmatprep.subr.bf16.mxu0 %v8417_v50  ;;  %v8476_v7 = vld [vmem:[%s11102_s7 + $0x578] ss:$12 sps:$4 sm:$0xff]  }
 0x35d   : > { %7191 = vmatprep.subr.bf16.mxu1 %v8418_v51  ;;  %v8477_v50 = vld [vmem:[%s11102_s7 + $0x4b8] ss:$12 sps:$4 sm:$0xff]   ;;  %v8480_v51 = vld [vmem:[%s11102_s7 + $0x5a8] ss:$12 sps:$4 sm:$0xff]  }
 0x35f   : > { %5412 = vmatpush1.bf16.msra.mxu0 %v8415_v52  ;;  %v8481_v52 = vld [vmem:[%s11102_s7 + $0x4e8] ss:$12 sps:$4 sm:$0xff]  }
 0x360   : > { %7192 = vmatpush3.bf16.msra.mxu1 %v8419_v53  ;;  %5413 = vmatprep.subr.bf16.mxu0 %v8422_v54  ;;  %v8482_v53 = vld [vmem:[%s11102_s7 + $0x5c0] ss:$12 sps:$4 sm:$0xff]  }
 0x361   : > { %7193 = vmatprep.subr.bf16.mxu1 %v8423_v55  ;;  %v8483_v54 = vld [vmem:[%s11102_s7 + $0x500] ss:$12 sps:$4 sm:$0xff]   ;;  %v8484_v55 = vld [vmem:[%s11102_s7 + $0x5d8] ss:$12 sps:$4 sm:$0xff]  }
 0x363   : > { %5414 = vmatpush1.bf16.msra.mxu0 %v8420_v58  ;;  %v8485_v58 = vld [vmem:[%s11102_s7 + $0x518] ss:$12 sps:$4 sm:$0xff]  }
 0x364   : > { %7194 = vmatpush3.bf16.msra.mxu1 %v8424_v60  ;;  %5415 = vmatprep.subr.bf16.mxu0 %v8427_v2  ;;  %v8486_v60 = vld [vmem:[%s11102_s7 + $0x5f0] ss:$12 sps:$4 sm:$0xff]  }
 0x365   : > { %7195 = vmatprep.subr.bf16.mxu1 %v8428_v3  ;;  %v8487_v2 = vld [vmem:[%s11102_s7 + $0x530] ss:$12 sps:$4 sm:$0xff]   ;;  %v8488_v3 = vld [vmem:[%s11102_s7 + $0x608] ss:$12 sps:$4 sm:$0xff]  }
 0x367   : > { %5416 = vmatpush1.bf16.msra.mxu0 %v8425_v6  ;;  %v8598_v6 = vmov 0.0  }
 0x368   : > { %7196 = vmatpush3.bf16.msra.mxu1 %v8429_v56  ;;  %5417 = vmatprep.subr.bf16.mxu0 %v8432_v63  ;;  %v8489_v56 = vld [vmem:[%s11102_s7 + $0x620] ss:$12 sps:$4 sm:$0xff]   ;;  %v8490_v63 = vld [vmem:[%s11102_s7 + $0x638] ss:$12 sps:$4 sm:$0xff]  }
 0x369   : > { %7197 = vmatprep.subr.bf16.mxu1 %v8433_v8 }
 0x36b   : > { %5418 = vmatpush1.bf16.msra.mxu0 %v8430_v10 }
 0x36c   : > { %7198 = vmatpush3.bf16.msra.mxu1 %v8434_v11  ;;  %5419 = vmatprep.subr.bf16.mxu0 %v8437_v12 }
 0x36d   : > { %7199 = vmatprep.subr.bf16.mxu1 %v8438_v13  ;;  %v8492_v13 = vld [vmem:[%s11104_s9] sm:$0xff]  }
 0x36f   : > { %5420 = vmatpush1.bf16.msra.mxu0 %v8435_v14  ;;  %v8493_v14 = vld [vmem:[%s11104_s9 + $0x8] sm:$0xff]  }
 0x370   : > { %7200 = vmatpush3.bf16.msra.mxu1 %v8439_v15  ;;  %v8495_v15 = vld [vmem:[%s11104_s9 + $0x18] sm:$0xff]  }
 0x371   : > { %7207 = vmatprep.subr.bf16.mxu1 %v8440_v16  ;;  %v5786_v16 = vld [vmem:[%s11109_s14 + $0x80] sm:$0xff] }
 0x372   : > { %5422 = vmatmul.mubr.bf16.vlgmr.msra.gmra.mrb[16].mxu0 %v10430_v61 }
 0x373   : > { %5508 = vmatmul.mubr.bf16.vlgmr.msra.gmra.mrb[20].mxu1 %v10186_v4  ;;  %v8446_v4 = vld [vmem:[%s11102_s7 + $0x290] ss:$12 sps:$4 sm:$0xff]  }
 0x374   : > { %7208 = vmatpush3.bf16.msra.mxu1 %v8441_v17  ;;  %5548 = vmatprep.mubr.bf16.mxu1 %v10195_v9  ;;  %v8447_v9 = vld [vmem:[%s11102_s7 + $0x1d0] ss:$12 sps:$4 sm:$0xff]   ;;  %v5787_v17 = vld [vmem:[%s11109_s14 + $0x88] sm:$0xff] }
 0x375   : > { %7209 = vmatprep.subr.bf16.mxu1 %v8442_v18  ;;  %v7409_v18 = vpack.c.bf16 %v5787_v17, %v5786_v16 }
 0x378   : > { %7210 = vmatpush3.bf16.msra.mxu1 %v8443_v22  ;;  %v4151_v22 = vld [vmem:[%s11103_s8] sm:$0x7] }
 0x379   : > { %7211 = vmatprep.subr.bf16.mxu1 %v8444_v25  ;;  %v4156_v25 = vrot.slane %v4151_v22, %v9364_v20 }
 0x37c   : > { %7212 = vmatpush3.bf16.msra.mxu1 %v8445_v26  ;;  %v4160_v26 = vrot.slane %v4151_v22, %v9367_v21 }
 0x37d   : > { %7213 = vmatprep.subr.bf16.mxu1 %v8446_v4 }
 0x380   : > { %7214 = vmatpush3.bf16.msra.mxu1 %v8447_v9 }
 0x381   : > { %7215 = vmatprep.subr.bf16.mxu1 %v8448_v27 }
 0x384   : > { %7216 = vmatpush3.bf16.msra.mxu1 %v8449_v28 }
 0x385   : > { %7217 = vmatprep.subr.bf16.mxu1 %v8450_v29  ;;  %v4164_v29 = vrot.slane %v4151_v22, %v9373_v23 }
 0x388   : > { %7218 = vmatpush3.bf16.msra.mxu1 %v8451_v30 }
 0x389   : > { %7219 = vmatprep.subr.bf16.mxu1 %v8452_v31 }
 0x38c   : > { %7220 = vmatpush3.bf16.msra.mxu1 %v8453_v33 }
 0x38d   : > { %7221 = vmatprep.subr.bf16.mxu1 %v8454_v19 }
 0x390   : > { %7222 = vmatpush3.bf16.msra.mxu1 %v8455_v34 }
 0x391   : > { %7229 = vmatprep.subr.bf16.mxu1 %v8456_v35 }
 0x393   : > { %5549 = vmatmul.mubr.bf16.vlgmr.msra.gmra.mrb[24].mxu1 %v10188_v5  ;;  %v8462_v5 = vld [vmem:[%s11102_s7 + $0x410] ss:$12 sps:$4 sm:$0xff]  }
 0x394   : > { %7230 = vmatpush3.bf16.msra.mxu1 %v8457_v36  ;;  %5589 = vmatprep.mubr.bf16.mxu1 %v10432_v62  ;;  %v8463_v62 = vld [vmem:[%s11102_s7 + $0x350] ss:$12 sps:$4 sm:$0xff]  }
 0x395   : > { %7231 = vmatprep.subr.bf16.mxu1 %v8458_v37 }
 0x398   : > { %7232 = vmatpush3.bf16.msra.mxu1 %v8459_v38 }
 0x399   : > { %7233 = vmatprep.subr.bf16.mxu1 %v8460_v39 }
 0x39c   : > { %7234 = vmatpush3.bf16.msra.mxu1 %v8461_v40 }
 0x39d   : > { %7235 = vmatprep.subr.bf16.mxu1 %v8462_v5 }
 0x3a0   : > { %7236 = vmatpush3.bf16.msra.mxu1 %v8463_v62 }
 0x3a1   : > { %7237 = vmatprep.subr.bf16.mxu1 %v8464_v41 }
 0x3a4   : > { %7238 = vmatpush3.bf16.msra.mxu1 %v8465_v42 }
 0x3a5   : > { %7239 = vmatprep.subr.bf16.mxu1 %v8466_v0 }
 0x3a8   : > { %7240 = vmatpush3.bf16.msra.mxu1 %v8467_v32 }
 0x3a9   : > { %7241 = vmatprep.subr.bf16.mxu1 %v8468_v43 }
 0x3ac   : > { %7242 = vmatpush3.bf16.msra.mxu1 %v8469_v44 }
 0x3ad   : > { %7243 = vmatprep.subr.bf16.mxu1 %v8470_v45 }
 0x3b0   : > { %7244 = vmatpush3.bf16.msra.mxu1 %v8471_v46 }
 0x3b1   : > { %7251 = vmatprep.subr.bf16.mxu1 %v8472_v47 }
 0x3b3   : > { %5590 = vmatmul.mubr.bf16.vlgmr.msra.gmra.mrb[28].mxu1 %v10425_v57  ;;  %v8478_v57 = vld [vmem:[%s11102_s7 + $0x590] ss:$12 sps:$4 sm:$0xff]  }
 0x3b4   : > { %7252 = vmatpush3.bf16.msra.mxu1 %v8473_v24  ;;  %5630 = vmatprep.mubr.bf16.mxu1 %v10434_v1  ;;  %v8479_v1 = vld [vmem:[%s11102_s7 + $0x4d0] ss:$12 sps:$4 sm:$0xff]  }
 0x3b5   : > { %7253 = vmatprep.subr.bf16.mxu1 %v8474_v48 }
 0x3b8   : > { %7254 = vmatpush3.bf16.msra.mxu1 %v8475_v49 }
 0x3b9   : > { %7255 = vmatprep.subr.bf16.mxu1 %v8476_v7 }
 0x3bc   : > { %7256 = vmatpush3.bf16.msra.mxu1 %v8477_v50 }
 0x3bd   : > { %7257 = vmatprep.subr.bf16.mxu1 %v8478_v57 }
 0x3c0   : > { %7258 = vmatpush3.bf16.msra.mxu1 %v8479_v1 }
 0x3c1   : > { %7259 = vmatprep.subr.bf16.mxu1 %v8480_v51 }
 0x3c4   : > { %7260 = vmatpush3.bf16.msra.mxu1 %v8481_v52 }
 0x3c5   : > { %7261 = vmatprep.subr.bf16.mxu1 %v8482_v53 }
 0x3c8   : > { %7262 = vmatpush3.bf16.msra.mxu1 %v8483_v54 }
 0x3c9   : > { %7263 = vmatprep.subr.bf16.mxu1 %v8484_v55 }
 0x3cc   : > { %7264 = vmatpush3.bf16.msra.mxu1 %v8485_v58 }
 0x3cd   : > { %7265 = vmatprep.subr.bf16.mxu1 %v8486_v60  ;;  %v10808_v60 = vld [vmem:[%s11106_s11] sm:$0xf] }
 0x3ce   : > { %7393 = vmatprep.subr.msk.mxu0 %vm5931_vm3, %v10808_v60 }
 0x3cf   : > { %7394 = vmatpush3.msk.msra.mxu0 %vm5931_vm3, %v10808_v60 }
 0x3d0   : > { %7266 = vmatpush3.bf16.msra.mxu1 %v8487_v2 }
 0x3d1   : > { %7369 = vmatprep.subr.bf16.mxu1 %v8598_v6 }
 0x3d3   : > { %5631 = vmatmul.mubr.bf16.vlgmr.msra.gmra.mrb[32].mxu1 %v10430_v61  ;;  %v8491_v61 = vld [vmem:[%s11102_s7 + $0x650] ss:$12 sps:$4 sm:$0xff]  }
 0x3d4   : > { %7370 = vmatpush3.bf16.msra.mxu1 %v8488_v3  ;;  %7377 = vmatprep.mubr.msk.bf16.mxu1 %vm8599_vm1, %v8598_v6 }
 0x3d5   : > { %7371 = vmatprep.subr.bf16.mxu1 %v8598_v6 }
 0x3d8   : > { %7372 = vmatpush3.bf16.msra.mxu1 %v8489_v56 }
 0x3d9   : > { %7373 = vmatprep.subr.bf16.mxu1 %v8598_v6 }
 0x3dc   : > { %7374 = vmatpush3.bf16.msra.mxu1 %v8490_v63 }
 0x3dd   : > { %7375 = vmatprep.subr.bf16.mxu1 %v8598_v6 }
 0x3e0   : > { %7376 = vmatpush3.bf16.msra.mxu1 %v8491_v61 }
 0x3e1   : > { %7381 = vmatprep.subr.bf16.mxu1 %v8598_v6 }
 0x3e3   : > { %7378 = vmatmul.mubr.msk.bf16.vlgmr.msra.gmra.mrb[36].mxu1 %vm5256_vm0, %v10496_v59  ;;  %v8494_v59 = vld [vmem:[%s11104_s9 + $0x10] sm:$0xff]  }
 0x3e4   : > { %7389 = vmatprep.mubr.msk.bf16.mxu1 %vm8599_vm1, %v8598_v6  ;;  %7382 = vmatpush3.bf16.msra.mxu1 %v8492_v13 }
 0x3e5   : > { %7383 = vmatprep.subr.bf16.mxu1 %v8598_v6 }
 0x3e8   : > { %7384 = vmatpush3.bf16.msra.mxu1 %v8493_v14 }
 0x3e9   : > { %7385 = vmatprep.subr.bf16.mxu1 %v8598_v6 }
 0x3ec   : > { %7386 = vmatpush3.bf16.msra.mxu1 %v8494_v59 }
 0x3ed   : > { %7387 = vmatprep.subr.bf16.mxu1 %v8598_v6 }
 0x3f0   : > { %7388 = vmatpush3.bf16.msra.mxu1 %v8495_v15 }
 0x3f1   : > { %7410 = vmatprep.subr.bf16.mxu1 %v7409_v18 }
 0x426   : > { %v5466_v8 = vpop.f32.mrb[16].mxu1 }
 0x427   : > { %v5468_v10 = vpop.f32.mrb[17].mxu1 }
 0x428   : > { %v5470_v11 = vpop.f32.mrb[18].mxu1 }
 0x429   : > { %v5472_v12 = vpop.f32.mrb[19].mxu1 }
 0x445   : > { %v5423_v4 = vpop.f32.mrb[16].mxu0 }
 0x446   : > { %v7499_v9 = vadd.f32 %v5423_v4, %v4156_v25  ;;  %v7201_v27 = vpop.f32.mrb[20].mxu1  ;;  %v5425_v28 = vpop.f32.mrb[17].mxu0 }
 0x447   : > { %v7501_v30 = vadd.f32 %v5425_v28, %v4160_v26  ;;  %v7202_v31 = vpop.f32.mrb[21].mxu1  ;;  %v5427_v33 = vpop.f32.mrb[18].mxu0  ;;  %v5770_v28 = vld [vmem:[%s11109_s14] sm:$0xff] }
 0x448   : > { %v7500_v19 = vadd.f32 %v7499_v9, %v5466_v8  ;;  %v7203_v34 = vadd.f32 %v7202_v31, %v7201_v27  ;;  %v7503_v35 = vadd.f32 %v5427_v33, %v4156_v25  ;;  %v7204_v36 = vpop.f32.mrb[22].mxu1  ;;  %v5429_v37 = vpop.f32.mrb[19].mxu0  ;;  %v5789_v31 = vld [vmem:[%s11109_s14 + $0x98] sm:$0xff] }
 0x449   : > { %v7502_v38 = vadd.f32 %v7501_v30, %v5468_v10  ;;  %v7505_v39 = vadd.f32 %v5429_v37, %v4160_v26  ;;  %v7205_v40 = vpop.f32.mrb[23].mxu1  ;;  %v5788_v30 = vld [vmem:[%s11109_s14 + $0x90] sm:$0xff] }
 0x44a   : > { %v10785_v5 = vmax.f32 %v7500_v19, 0.0  ;;  %v5510_v62 = vadd.f32 %v7203_v34, %v4164_v29  ;;  %v7504_v41 = vadd.f32 %v7503_v35, %v5470_v11  ;;  %v7206_v42 = vadd.f32 %v7205_v40, %v7204_v36  ;;  %v5772_v37 = vld [vmem:[%s11109_s14 + $0x10] sm:$0xff]  ;;  %v5791_v40 = vld [vmem:[%s11109_s14 + $0xa8] sm:$0xff] }
 0x44b   : > { %v7506_v0 = vadd.f32 %v7505_v39, %v5472_v12  ;;  %v10793_v45 = vmax.f32 %v7502_v38, 0.0  ;;  %v7413_v36 = vpack.c.bf16 %v5789_v31, %v5788_v30  ;;  %v5773_v38 = vld [vmem:[%s11109_s14 + $0x18] sm:$0xff]  ;;  %v5790_v39 = vld [vmem:[%s11109_s14 + $0xa0] sm:$0xff] }
 0x44c   : > { %v10787_v32 = vmax.f32 %v7504_v41, 0.0  ;;  %v5513_v23 = vadd.f32 %v7206_v42, %v4164_v29  ;;  %v5877_v43 = vsel %vm5256_vm0, %v10785_v5, -inf  ;;  %v5884_v46 = vsel %vm5883_vm2, %v10785_v5, -inf  ;;  %v5771_v29 = vld [vmem:[%s11109_s14 + $0x8] sm:$0xff]  ;;  %v5774_v42 = vld [vmem:[%s11109_s14 + $0x20] sm:$0xff] }
 0x44d   : > { %5878 = vmax.xlane.f32.xlu1 %v5877_v43  ;;  %v5890_v47 = vsel %vm5256_vm0, %v10793_v45, -inf  ;;  %v5896_v24 = vsel %vm5883_vm2, %v10793_v45, -inf  ;;  %v10799_v48 = vmax.f32 %v7506_v0, 0.0  ;;  %v7411_v34 = vpack.c.bf16 %v5771_v29, %v5770_v28  ;;  %v5775_v0 = vld [vmem:[%s11109_s14 + $0x28] sm:$0xff]  ;;  %v5793_v43 = vld [vmem:[%s11109_s14 + $0xb8] sm:$0xff] }
 0x44e   : > { %v5880_v44 = vsel %vm5256_vm0, %v10787_v32, -inf  ;;  %v5887_v49 = vsel %vm5883_vm2, %v10787_v32, -inf  ;;  %v7417_v41 = vpack.c.bf16 %v5791_v40, %v5790_v39 }
 0x44f   : > { %5881 = vmax.xlane.f32.xlu0 %v5880_v44  ;;  %v5893_v7 = vsel %vm5256_vm0, %v10799_v48, -inf  ;;  %v5899_v50 = vsel %vm5883_vm2, %v10799_v48, -inf  ;;  %v7419_v44 = vpack.c.bf16 %v5775_v0, %v5774_v42 }
 0x451   : > { %5885 = vmax.xlane.f32.xlu1 %v5884_v46 }
 0x455   : > { %5891 = vmax.xlane.f32.xlu1 %v5890_v47  ;;  %v5776_v47 = vld [vmem:[%s11109_s14 + $0x30] sm:$0xff] }
 0x459   : > { %5897 = vmax.xlane.f32.xlu1 %v5896_v24  ;;  %v5777_v24 = vld [vmem:[%s11109_s14 + $0x38] sm:$0xff] }
 0x45d   : > { %5888 = vmax.xlane.f32.xlu1 %v5887_v49  ;;  %v5794_v49 = vld [vmem:[%s11109_s14 + $0xc0] sm:$0xff] }
 0x461   : > { %5894 = vmax.xlane.f32.xlu1 %v5893_v7  ;;  %v5795_v7 = vld [vmem:[%s11109_s14 + $0xc8] sm:$0xff] }
 0x465   : > { %5900 = vmax.xlane.f32.xlu1 %v5899_v50  ;;  %v7423_v50 = vpack.c.bf16 %v5777_v24, %v5776_v47  ;;  %v5913_v47 = vld [vmem:[%s11107_s12] sm:$0x3] }
 0x466   : > { %v7223_v57 = vpop.f32.mrb[24].mxu1  ;;  %v5917_v24 = vrot.slane %v5913_v47, %v9364_v20 }
 0x467   : > { %v7224_v1 = vpop.f32.mrb[25].mxu1 }
 0x468   : > { %v7225_v51 = vadd.f32 %v7224_v1, %v7223_v57  ;;  %v7226_v52 = vpop.f32.mrb[26].mxu1  ;;  %v7425_v57 = vpack.c.bf16 %v5795_v7, %v5794_v49  ;;  %v5778_v1 = vld [vmem:[%s11109_s14 + $0x40] sm:$0xff] }
 0x469   : > { %v7227_v53 = vpop.f32.mrb[27].mxu1 }
 0x46a   : > { %v5551_v54 = vadd.f32 %v7225_v51, %v5510_v62  ;;  %v7228_v55 = vadd.f32 %v7227_v53, %v7226_v52  ;;  %v7415_v62 = vpack.c.bf16 %v5773_v38, %v5772_v37  ;;  %v5779_v51 = vld [vmem:[%s11109_s14 + $0x48] sm:$0xff]  ;;  %v5796_v52 = vld [vmem:[%s11109_s14 + $0xd0] sm:$0xff]  ;;  %v5797_v53 = vld [vmem:[%s11109_s14 + $0xd8] sm:$0xff] }
 0x46c   : > { %v5554_v58 = vadd.f32 %v7228_v55, %v5513_v23  ;;  %v5792_v23 = vld [vmem:[%s11109_s14 + $0xb0] sm:$0xff]  ;;  %v7429_v55 = vpack.c.bf16 %v5797_v53, %v5796_v52 }
 0x46d   : > { %v7421_v46 = vpack.c.bf16 %v5793_v43, %v5792_v23 }
 0x486   : > { %v7245_v2 = vpop.f32.mrb[28].mxu1 }
 0x487   : > { %v7246_v3 = vpop.f32.mrb[29].mxu1 }
 0x488   : > { %v7247_v56 = vadd.f32 %v7246_v3, %v7245_v2  ;;  %v7248_v63 = vpop.f32.mrb[30].mxu1  ;;  %v5781_v2 = vld [vmem:[%s11109_s14 + $0x58] sm:$0xff]  ;;  %v5798_v3 = vld [vmem:[%s11109_s14 + $0xe0] sm:$0xff] }
 0x489   : > { %v7249_v61 = vpop.f32.mrb[31].mxu1 }
 0x48a   : > { %v5592_v8 = vadd.f32 %v7247_v56, %v5551_v54  ;;  %v7250_v10 = vadd.f32 %v7249_v61, %v7248_v63  ;;  %v7427_v54 = vpack.c.bf16 %v5779_v51, %v5778_v1  ;;  %v5799_v56 = vld [vmem:[%s11109_s14 + $0xe8] sm:$0xff] }
 0x48b   : > { %v7433_v61 = vpack.c.bf16 %v5799_v56, %v5798_v3 }
 0x48c   : > { %v5595_v11 = vadd.f32 %v7250_v10, %v5554_v58  ;;  %v5780_v58 = vld [vmem:[%s11109_s14 + $0x50] sm:$0xff]  ;;  %v5783_v10 = vld [vmem:[%s11109_s14 + $0x68] sm:$0xff] }
 0x48d   : > { %v7431_v63 = vpack.c.bf16 %v5781_v2, %v5780_v58 }
 0x4a6   : > { %v7267_v12 = vpop.f32.mrb[32].mxu1 }
 0x4a7   : > { %v7268_v13 = vpop.f32.mrb[33].mxu1 }
 0x4a8   : > { %v7269_v14 = vadd.f32 %v7268_v13, %v7267_v12  ;;  %v7270_v59 = vpop.f32.mrb[34].mxu1  ;;  %v5801_v12 = vld [vmem:[%s11109_s14 + $0xf8] sm:$0xff] }
 0x4a9   : > { %v7271_v15 = vpop.f32.mrb[35].mxu1 }
 0x4aa   : > { %v7272_v16 = vadd.f32 %v7271_v15, %v7270_v59  ;;  %v5633_v17 = vadd.f32 %v7269_v14, %v5592_v8  ;;  %v5782_v8 = vld [vmem:[%s11109_s14 + $0x60] sm:$0xff]  ;;  %v5784_v59 = vld [vmem:[%s11109_s14 + $0x70] sm:$0xff]  ;;  %v5785_v15 = vld [vmem:[%s11109_s14 + $0x78] sm:$0xff] }
 0x4ab   : > { %v7435_v13 = vpack.c.bf16 %v5783_v10, %v5782_v8 }
 0x4ac   : > { %v5636_v18 = vadd.f32 %v7272_v16, %v5595_v11  ;;  %v5800_v11 = vld [vmem:[%s11109_s14 + $0xf0] sm:$0xff]  ;;  %v7439_v16 = vpack.c.bf16 %v5785_v15, %v5784_v59 }
 0x4ad   : > { %v7437_v14 = vpack.c.bf16 %v5801_v12, %v5800_v11 }
 0x4b6   : > { %v5673_v22 = vpop.f32.mrb[36].mxu1 }
 0x4b7   : > { %v5674_v25 = vadd.f32 %v5673_v22, %v5633_v17  ;;  %v7379_v26 = vpop.f32.mrb[37].mxu1 }
 0x4b8   : > { %v5676_v4 = vpop.f32.mrb[38].mxu1 }
 0x4b9   : > { %v5677_v9 = vadd.f32 %v5676_v4, %v5636_v18  ;;  %v7380_v27 = vpop.f32.mrb[39].mxu1  ;;  %v5682_v33 = vmax.f32 %v5674_v25, 0.0 }
 0x4bb   : > { %v5685_v19 = vmax.f32 %v5677_v9, 0.0 }
 0x4bd   : > { %v5686_v35 = vpack.c.bf16 %v5685_v19, %v5682_v33  ;;  %v7112_v19 = vld [vmem:[%s11105_s10] ss:$0 sm:$0xff] }
 0x4bf   : > { %7390 = vmatmul.mubr.msk.bf16.vlgmr.msra.gmra.mrb[40].mxu1 %vm5256_vm0, %v5686_v35 }
 0x4c0   : > { %7412 = vmatpush3.bf16.msra.mxu1 %v7411_v34  ;;  %5866 = vmatprep.mubr.f32.mxu1 %v10793_v45 }
 0x4c1   : > { %7414 = vmatprep.subr.bf16.mxu1 %v7413_v36 }
 0x4c4   : > { %7416 = vmatpush3.bf16.msra.mxu1 %v7415_v62 }
 0x4c5   : > { %7418 = vmatprep.subr.bf16.mxu1 %v7417_v41 }
 0x4c8   : > { %7420 = vmatpush3.bf16.msra.mxu1 %v7419_v44 }
 0x4c9   : > { %7422 = vmatprep.subr.bf16.mxu1 %v7421_v46  ;;  %v5912_v46 = vld [vmem:[%s11106_s11 + $0x4] sm:$0xf] }
 0x4cc   : > { %7424 = vmatpush3.bf16.msra.mxu1 %v7423_v50 }
 0x4cd   : > { %7426 = vmatprep.subr.bf16.mxu1 %v7425_v57 }
 0x4d0   : > { %7428 = vmatpush3.bf16.msra.mxu1 %v7427_v54 }
 0x4d1   : > { %7430 = vmatprep.subr.bf16.mxu1 %v7429_v55 }
 0x4d4   : > { %7432 = vmatpush3.bf16.msra.mxu1 %v7431_v63 }
 0x4d5   : > { %7434 = vmatprep.subr.bf16.mxu1 %v7433_v61 }
 0x4d8   : > { %7436 = vmatpush3.bf16.msra.mxu1 %v7435_v13 }
 0x4d9   : > { %7438 = vmatprep.subr.bf16.mxu1 %v7437_v14 }
 0x4da   : > { %v5879_v17 = vpop.xlane.xlu1 %5878 }
 0x4dc   : > { %7440 = vmatpush3.bf16.msra.mxu1 %v7439_v16  ;;  %v5882_v29 = vpop.xlane.xlu0 %5881 }
 0x4dd   : > { %7473 = vmatprep.subr.msk.mxu1 %vm5931_vm3, %v10808_v60 }
 0x4de   : > { %v5886_v18 = vpop.xlane.xlu1 %5885 }
 0x4df   : > { %5867 = vmatmul.mubr.f32.vlgmr.msra.gmra.mrb[44].mxu1 %v10785_v5  ;;  %v5903_v25 = vsel %vm5902_vm4, %v5879_v17, %v5886_v18  ;;  %v6159_v17 = vld [vmem:[%s11108_s13] sm:$0xff] }
 0x4e0   : > { %5871 = vmatprep.mubr.f32.mxu1 %v10799_v48  ;;  %7474 = vmatpush3.msk.msra.mxu1 %vm5931_vm3, %v10808_v60  ;;  %v6161_v18 = vcombine.high %v6159_v17, %v6159_v17 }
 0x4e1   : > { %7401 = vmatprep.subr.msk.mxu1 %vm5931_vm3, %v5912_v46 }
 0x4e2   : > { %v5892_v22 = vpop.xlane.xlu1 %5891 }
 0x4e3   : > { %5872 = vmatmul.mubr.f32.gmra.mrb[46].mxu1 %v10787_v32  ;;  %v5906_v26 = vsel %vm5905_vm5, %v5903_v25, %v5892_v22  ;;  %v6269_v22 = vld [vmem:[%s11110_s15 + $0x80] sm:$0xff]  ;;  %v6270_v25 = vld [vmem:[%s11110_s15 + $0x88] sm:$0xff] }
 0x4e6   : > { %v5898_v4 = vpop.xlane.xlu1 %5897 }
 0x4e7   : > { %v5909_v9 = vsel %vm5908_vm6, %v5906_v26, %v5898_v4  ;;  %v7441_v26 = vpack.c.bf16 %v6270_v25, %v6269_v22  ;;  %v6044_v4 = vrot.slane %v5913_v47, %v9367_v21  ;;  %v6254_v21 = vld [vmem:[%s11110_s15 + $0x8] sm:$0xff]  ;;  %v6268_v22 = vld [vmem:[%s11110_s15 + $0x78] sm:$0xff] }
 0x4e8   : > { %7398 = vmatprep.mubr.msk.f32.mxu1 %vm5918_vm7, %v5909_v9  ;;  %v6258_v47 = vld [vmem:[%s11110_s15 + $0x28] sm:$0xff] }
 0x4e9   : > { %v7509_v9 = vadd.f32 %v6044_v4, %v6044_v4 }
 0x4ea   : > { %v5889_v27 = vpop.xlane.xlu1 %5888 }
 0x4eb   : > { %v5904_v30 = vsel %vm5902_vm4, %v5882_v29, %v5889_v27 }
 0x4ee   : > { %v5895_v28 = vpop.xlane.xlu1 %5894 }
 0x4ef   : > { %v5907_v31 = vsel %vm5905_vm5, %v5904_v30, %v5895_v28 }
 0x4f2   : > { %v5901_v33 = vpop.xlane.xlu1 %5900 }
 0x4f3   : > { %v5910_v60 = vsel %vm5908_vm6, %v5907_v31, %v5901_v33 }
 0x4f4   : > { %7399 = vmatmul.mubr.msk.f32.vlgmr.msra.gmra.mrb[48].mxu1 %vm5918_vm7, %v5910_v60 }
 0x4f5   : > { %7402 = vmatpush3.msk.msra.mxu1 %vm5931_vm3, %v5912_v46  ;;  %v6257_v46 = vld [vmem:[%s11110_s15 + $0x20] sm:$0xff] }
 0x4f6   : > { %7130 = vmatprep.subr.msk.mxu1 %vm5931_vm3, %v6161_v18  ;;  %v6267_v18 = vld [vmem:[%s11110_s15 + $0x70] sm:$0xff] }
 0x4f7   : > { %v7471_v25 = vpack.c.bf16 %v6268_v22, %v6267_v18 }
 0x592   : > { %v5763_v34 = vpop.f32.mrb[40].mxu1 }
 0x593   : > { %v5764_v35 = vadd.f32 %v7112_v19, %v5763_v34  ;;  %v7391_v36 = vpop.f32.mrb[41].mxu1 }
 0x594   : > { %v5766_v37 = vpop.f32.mrb[42].mxu1  ;;  %v6253_v36 = vld [vmem:[%s11110_s15] sm:$0xff] }
 0x595   : > { %v5767_v38 = vadd.f32 %v7112_v19, %v5766_v37  ;;  %v7392_v39 = vpop.f32.mrb[43].mxu1  ;;  %6362 = vrot.lane.b32.xlu1 %v5764_v35, %s8600_s18  ;;  %v6271_v37 = vld [vmem:[%s11110_s15 + $0x90] sm:$0xff] }
 0x596   : > { %v7443_v39 = vpack.c.bf16 %v6254_v21, %v6253_v36 }
 0x597   : > { %6364 = vrot.lane.b32.xlu0 %v5767_v38, %s8600_s18  ;;  %v6272_v38 = vld [vmem:[%s11110_s15 + $0x98] sm:$0xff]  ;;  %s6386_s18 = sshll.u32 %s547_s2, 4  ;;  %s11046_s18 = int_to_ptr.vmem [resolvable:$true] %s6386_s18 }
 0x598   : > { %s8528_s26 = scalar_lea.vmem %s11046_s18, 256  ;;  %p8535_p13 = scmp.lt.s32.totalorder %s11046_s18, %s8533_s16 }
 0x599   : > { %p8529_p10 = scmp.ne.s32.totalorder %s11046_s18, %s8528_s26  ;;  %p8536_p0 = scmp.lt.s32.totalorder %s8534_s29, %s8528_s26 }
 0x59b   : > { %p8530_p11 = pnand %p8529_p10, %p8727_p5  ;;  %p8537_p1 = por %p8536_p0, %p8535_p13 }
 0x59d   : > { %p8531_p12 = pneg %p8530_p11 }
 0x59f   : > { %p8538_p2 = pnand %p8537_p1, %p8531_p12 }
 0x5b2   : > { %v7315_v40 = vpop.f32.mrb[44].mxu1 }
 0x5b3   : > { %v7316_v62 = vpop.f32.mrb[45].mxu1 }
 0x5b4   : > { %v7317_v41 = vadd.f32 %v7316_v62, %v7315_v40  ;;  %v7445_v40 = vpack.c.bf16 %v6272_v38, %v6271_v37  ;;  %v6255_v62 = vld [vmem:[%s11110_s15 + $0x10] sm:$0xff] }
 0x5b6   : > { %v7318_v42 = vpop.f32.mrb[46].mxu1  ;;  %7395 = vmatprep.mubr.msk.f32.mxu0 %vm5918_vm7, %v7317_v41  ;;  %v6256_v41 = vld [vmem:[%s11110_s15 + $0x18] sm:$0xff] }
 0x5b7   : > { %v7319_v0 = vpop.f32.mrb[47].mxu1 }
 0x5b8   : > { %v7320_v23 = vadd.f32 %v7319_v0, %v7318_v42  ;;  %v6273_v0 = vld [vmem:[%s11110_s15 + $0xa0] sm:$0xff] }
 0x5ba   : > { %7396 = vmatmul.mubr.msk.f32.vlgmr.msra.gmra.mrb[20].mxu0 %vm5918_vm7, %v7320_v23  ;;  %v6274_v23 = vld [vmem:[%s11110_s15 + $0xa8] sm:$0xff] }
 0x5c7   : > { %v7400_v43 = vpop.f32.mrb[48].mxu1 }
 0x5c8   : > { %v6011_v44 = vpop.f32.mrb[49].mxu1  ;;  %v6017_v52 = vadd.f32 %v7400_v43, %v5917_v24  ;;  %v7447_v43 = vpack.c.bf16 %v6256_v41, %v6255_v62 }
 0x5c9   : > { %v6012_v49 = vadd.f32 %v6011_v44, %v5917_v24  ;;  %v7449_v44 = vpack.c.bf16 %v6274_v23, %v6273_v0 }
 0x5ca   : > { %v6028_v55 = vmul.f32 0.70710677, %v6017_v52  ;;  %v6023_v15 = vmul.f32 0.5, %v6017_v52  ;;  %v6278_v52 = vld [vmem:[%s11110_s15 + $0xc8] sm:$0xff] }
 0x5cb   : > { %v6027_v7 = vmul.f32 0.70710677, %v6012_v49  ;;  %v6022_v10 = vmul.f32 0.5, %v6012_v49  ;;  %v6275_v49 = vld [vmem:[%s11110_s15 + $0xb0] sm:$0xff] }
 0x5cd   : > { %8497 = verf.f32 %v6027_v7  ;;  %v7451_v7 = vpack.c.bf16 %v6258_v47, %v6257_v46 }
 0x5d7   : > { %v8498_v58 = vpop.eup %8497 }
 0x5d8   : > { %v6035_v63 = vadd.f32 1.0, %v8498_v58  ;;  %v6262_v58 = vld [vmem:[%s11110_s15 + $0x48] sm:$0xff] }
 0x5da   : > { %v6039_v14 = vmul.f32 %v6035_v63, %v6022_v10  ;;  %v6282_v10 = vld [vmem:[%s11110_s15 + $0xe8] sm:$0xff] }
 0x68d   : > { %v7397_v50 = vpop.f32.mrb[20].mxu0 }
 0x68e   : > { %v6007_v57 = vadd.f32 %v7397_v50, %v5917_v24  ;;  %v6001_v1 = vpop.f32.mrb[21].mxu0 }
 0x68f   : > { %v6002_v51 = vadd.f32 %v6001_v1, %v5917_v24  ;;  %v6260_v1 = vld [vmem:[%s11110_s15 + $0x38] sm:$0xff] }
 0x690   : > { %v6026_v53 = vmul.f32 0.70710677, %v6007_v57  ;;  %v6021_v8 = vmul.f32 0.5, %v6007_v57  ;;  %v6259_v57 = vld [vmem:[%s11110_s15 + $0x30] sm:$0xff] }
 0x691   : > { %v6025_v54 = vmul.f32 0.70710677, %v6002_v51  ;;  %v6020_v20 = vmul.f32 0.5, %v6002_v51  ;;  %v6277_v51 = vld [vmem:[%s11110_s15 + $0xc0] sm:$0xff] }
 0x692   : > { %8499 = verf.f32 %v6026_v53  ;;  %v7455_v53 = vpack.c.bf16 %v6260_v1, %v6259_v57 }
 0x693   : > { %8501 = verf.f32 %v6025_v54  ;;  %v7457_v54 = vpack.c.bf16 %v6278_v52, %v6277_v51 }
 0x694   : > { %8503 = verf.f32 %v6028_v55  ;;  %v6261_v55 = vld [vmem:[%s11110_s15 + $0x40] sm:$0xff] }
 0x69c   : > { %v8500_v2 = vpop.eup %8499 }
 0x69d   : > { %v8502_v3 = vpop.eup %8501  ;;  %v6034_v56 = vadd.f32 1.0, %v8500_v2  ;;  %v6279_v2 = vld [vmem:[%s11110_s15 + $0xd0] sm:$0xff] }
 0x69e   : > { %v6033_v61 = vadd.f32 1.0, %v8502_v3  ;;  %v8504_v13 = vpop.eup %8503  ;;  %v6280_v3 = vld [vmem:[%s11110_s15 + $0xd8] sm:$0xff] }
 0x69f   : > { %v6038_v12 = vmul.f32 %v6034_v56, %v6021_v8  ;;  %v6036_v59 = vadd.f32 1.0, %v8504_v13  ;;  %v7459_v56 = vpack.c.bf16 %v6262_v58, %v6261_v55  ;;  %v7461_v63 = vpack.c.bf16 %v6280_v3, %v6279_v2  ;;  %v6281_v8 = vld [vmem:[%s11110_s15 + $0xe0] sm:$0xff] }
 0x6a0   : > { %v6037_v11 = vmul.f32 %v6033_v61, %v6020_v20  ;;  %v6263_v20 = vld [vmem:[%s11110_s15 + $0x50] sm:$0xff]  ;;  %v6264_v61 = vld [vmem:[%s11110_s15 + $0x58] sm:$0xff]  ;;  %v6265_v13 = vld [vmem:[%s11110_s15 + $0x60] sm:$0xff] }
 0x6a1   : > { %v6040_v16 = vmul.f32 %v6036_v59, %v6023_v15  ;;  %v6283_v15 = vld [vmem:[%s11110_s15 + $0xf0] sm:$0xff] }
 0x6a2   : > { %7403 = vmatprep.mubr.msk.f32.mxu1 %vm5918_vm7, %v6037_v11  ;;  %v7463_v11 = vpack.c.bf16 %v6264_v61, %v6263_v20 }
 0x6a3   : > { %7404 = vmatmul.mubr.msk.f32.vlgmr.msra.gmra.mrb[50].mxu1 %vm5918_vm7, %v6038_v12  ;;  %v7465_v12 = vpack.c.bf16 %v6282_v10, %v6281_v8 }
 0x6a4   : > { %7406 = vmatprep.mubr.msk.f32.mxu1 %vm5918_vm7, %v6039_v14  ;;  %7131 = vmatpush1.msk.msra.mxu1 %vm5931_vm3, %v6159_v17  ;;  %v6266_v14 = vld [vmem:[%s11110_s15 + $0x68] sm:$0xff] }
 0x6a5   : > { %7442 = vmatprep.subr.bf16.mxu1 %v7441_v26  ;;  %v7467_v59 = vpack.c.bf16 %v6266_v14, %v6265_v13 }
 0x6ab   : > { %7407 = vmatmul.mubr.msk.f32.gmra.mrb[50].mxu1 %vm5918_vm7, %v6040_v16  ;;  %v6284_v16 = vld [vmem:[%s11110_s15 + $0xf8] sm:$0xff] }
 0x6ac   : > { %6236 = vmatprep.mubr.f32.mxu1 %v8598_v6  ;;  %v7469_v17 = vpack.c.bf16 %v6284_v16, %v6283_v15 }
 0x77e   : > { %v7408_v27 = vpop.f32.mrb[50].mxu1 }
 0x77f   : > { %v7508_v28 = vadd.f32 %v7509_v9, %v7408_v27  ;;  %v6136_v29 = vpop.f32.mrb[51].mxu1 }
 0x780   : > { %v7510_v30 = vadd.f32 %v7509_v9, %v6136_v29 }
 0x781   : > { %v7129_v31 = vmul.f32 -1.442695, %v7508_v28 }
 0x782   : > { %v7128_v33 = vmul.f32 -1.442695, %v7510_v30 }
 0x783   : > { %8505 = vpow2.f32 %v7129_v31 }
 0x784   : > { %8507 = vpow2.f32 %v7128_v33 }
 0x78d   : > { %v8506_v60 = vpop.eup %8505 }
 0x78e   : > { %v8508_v19 = vpop.eup %8507  ;;  %v6154_v35 = vadd.f32 1.0, %v8506_v60 }
 0x78f   : > { %v6153_v34 = vadd.f32 1.0, %v8508_v19 }
 0x791   : > { %8509 = vrcp.f32 %v6153_v34  ;;  %v6363_v34 = vpop.permute.xlu1 %6362 }
 0x792   : > { %8511 = vrcp.f32 %v6154_v35 }
 0x79b   : > { %v8510_v42 = vpop.eup %8509 }
 0x79c   : > { %7132 = vmatmul.mubr.msk.f32.vlgmr.msra.gmra.mrb[52].mxu1 %vm5918_vm7, %v8510_v42  ;;  %v8512_v24 = vpop.eup %8511 }
 0x79d   : > { %6242 = vmatprep.mubr.f32.mxu1 %v8598_v6  ;;  %7444 = vmatpush3.bf16.msra.mxu1 %v7443_v39  ;;  %v6276_v6 = vld [vmem:[%s11110_s15 + $0xb8] sm:$0xff] }
 0x79e   : > { %7446 = vmatprep.subr.bf16.mxu1 %v7445_v40  ;;  %v7453_v50 = vpack.c.bf16 %v6276_v6, %v6275_v49 }
 0x7a0   : > { %7133 = vmatmul.mubr.msk.f32.gmra.mrb[54].mxu1 %vm5918_vm7, %v8512_v24 }
 0x7a1   : > { %7448 = vmatpush3.bf16.msra.mxu1 %v7447_v43 }
 0x7a2   : > { %7450 = vmatprep.subr.bf16.mxu1 %v7449_v44 }
 0x7a5   : > { %7452 = vmatpush3.bf16.msra.mxu1 %v7451_v7 }
 0x7a6   : > { %7454 = vmatprep.subr.bf16.mxu1 %v7453_v50 }
 0x7a9   : > { %7456 = vmatpush3.bf16.msra.mxu1 %v7455_v53 }
 0x7aa   : > { %7458 = vmatprep.subr.bf16.mxu1 %v7457_v54 }
 0x7ad   : > { %7460 = vmatpush3.bf16.msra.mxu1 %v7459_v56 }
 0x7ae   : > { %7462 = vmatprep.subr.bf16.mxu1 %v7461_v63 }
 0x7b1   : > { %7464 = vmatpush3.bf16.msra.mxu1 %v7463_v11 }
 0x7b2   : > { %7466 = vmatprep.subr.bf16.mxu1 %v7465_v12 }
 0x7b5   : > { %7468 = vmatpush3.bf16.msra.mxu1 %v7467_v59 }
 0x7b6   : > { %7470 = vmatprep.subr.bf16.mxu1 %v7469_v17 }
 0x7b9   : > { %7472 = vmatpush3.bf16.msra.mxu1 %v7471_v25 }
 0x86f   : > { %v6238_v26 = vpop.f32.mrb[52].mxu1 }
 0x870   : > { %v6240_v4 = vpop.f32.mrb[53].mxu1  ;;  %v6249_v27 = vmul.f32 %v6238_v26, %v10785_v5 }
 0x871   : > { %v6250_v9 = vmul.f32 %v6240_v4, %v10793_v45 }
 0x873   : > { %v6244_v28 = vpop.f32.mrb[54].mxu1  ;;  %6349 = vmatprep.mubr.f32.mxu1 %v6250_v9 }
 0x874   : > { %v6246_v29 = vpop.f32.mrb[55].mxu1  ;;  %6350 = vmatmul.mubr.f32.vlgmr.msra.gmra.mrb[56].mxu1 %v6249_v27  ;;  %v6251_v31 = vmul.f32 %v6244_v28, %v10787_v32 }
 0x875   : > { %v6252_v30 = vmul.f32 %v6246_v29, %v10799_v48  ;;  %v6365_v48 = vpop.permute.xlu0 %6364 }
 0x877   : > { %6354 = vmatprep.mubr.f32.mxu1 %v6252_v30 }
 0x878   : > { %6355 = vmatmul.mubr.f32.gmra.mrb[58].mxu1 %v6251_v31 }
 0x947   : > { %v7363_v33 = vpop.f32.mrb[56].mxu1 }
 0x948   : > { %v7364_v60 = vpop.f32.mrb[57].mxu1 }
 0x949   : > { %v7365_v19 = vadd.f32 %v7364_v60, %v7363_v33 }
 0x94b   : > { %v6368_v5 = vsel %vm5256_vm0, %v7365_v19, %v6363_v34  ;;  %v7366_v45 = vpop.f32.mrb[58].mxu1 }
 0x94c   : > { %6370 = vst [vmem:[%s547_s2] sm:$0xff] %v6368_v5  ;;  %v7367_v35 = vpop.f32.mrb[59].mxu1 }
 0x94d   : > { %v7368_v32 = vadd.f32 %v7367_v35, %v7366_v45 }
 0x94f   : > { %v6369_v36 = vsel %vm5256_vm0, %v7368_v32, %v6365_v48 }
 0x950   : > { %6371 = vst [vmem:[%s547_s2 + $0x8] sm:$0xff] %v6369_v36 }
 0x951   : > { %8541 = shalt.err (!%p8538_p2)
}
 0x952   : > { %s8542_s23 = scalar_lea.hbm %s11051_s20, 256  ;;  %s8546_s2 = scalar_lea.hbm %s11137_s19, 512 }
 0x953   : > { %p8543_p3 = scmp.ne.s32.totalorder %s11051_s20, %s8542_s23  ;;  %p8547_p8 = scmp.lt.u32.totalorder %s11051_s20, %s11137_s19 }
 0x954   : > { %p8548_p9 = scmp.lt.u32.totalorder %s8546_s2, %s8542_s23  ;;  %p8550_p11 = scmp.lt.u32.totalorder %s8542_s23, %s11051_s20 }
 0x955   : > { %p8544_p4 = pnand %p8543_p3, %p8727_p5 }
 0x956   : > { %p8549_p10 = por %p8548_p9, %p8547_p8 }
 0x957   : > { %p8545_p7 = pneg %p8544_p4 }
 0x958   : > { %p8551_p12 = por %p8550_p11, %p8549_p10 }
 0x95a   : > { %p8552_p13 = pnand %p8551_p12, %p8545_p7 }
 0x95c   : > { %8555 = shalt.err (!%p8552_p13)
}
 0x95d   : > { %s8602_s28 = smov 128   ;;  %s8603_s26 = smov 8  }
 0x95e   : > { %7553 = dma.vmem_to_hbm [thread:$0]  (%p8727_p5), %s11046_s18, 256, %s11051_s20, %s11054_s25, %s8602_s28, %s8602_s28, %s8603_s26  }
 0x95f PF: > { %s11138_s30 = sld [smem:[#allocation10_spill]]  ;;  %s11139_s16 = sld [smem:[#allocation8_spill]] }
 0x965   : > { %p7565_p0 = scmp.ge.s32.totalorder %s11138_s30, 2  ;;  %s6401_s24 = sand.u32 1, %s11139_s16  }
 0x966   : > { %s6402_s23 = scalar_lea.sflag [#allocation3], %s6401_s24 }
 0x967   : > { %p7560_p1 = pnand %p7565_p0, %p8731_p6 }
 0x969   : > { %8577 = dma.done.wait (!%p7560_p1), %s6402_s23, 256  }
 0x96a   : > { %8579 = vsyncadd (!%p7560_p1), %s6402_s23, 4294967040  ;;  %s11141_s24 = sld [smem:[#allocation11_spill]]  ;;  %s11142_s2 = sld [smem:[#allocation9_spill]] }
 0x96b   : > { %s11143_s23 = sld [smem:[#allocation12_spill]]  ;;  %s11144_s21 = smov %s8586_s22 }
 0x970   : > { %p27_p2 = scmp.ge.s32.totalorder %s11141_s24, 4   ;;  %s11145_s22 = smov %s11142_s2 }
 0x972   :  { %29 = sbr.rel (!%p27_p2) target bundleno = 8 (0x8), region = 127 }
 0x979   :  { %6407 = vsyncpa [#allocation3], 1 }
 0x97a   :  { %6409 = vsyncpa [#allocation3 + $0x1], 1 }
 0x97b   :  { %6410 = vsyncpa [#allocation4], 1 }
 0x97c   :  { %6412 = vsyncpa [#allocation4 + $0x1], 1 }

</bundles_post_ra>
